<compile_context>
chip_gen: v6e
topology: v6e:2x2x1
jax: 0.10.0
libtpu: 0.0.40
codegen_flags: <defaults>
</compile_context>

<pallas_src>
import jax
import jax.numpy as jnp
from jax.experimental import pallas as pl
from jax.experimental.pallas import tpu as pltpu

# ---------------------------------------------------------------------------
# Model sizes (small, deterministic; all powers of two)
# ---------------------------------------------------------------------------
B = 2            # batch
C_IN = 4         # image channels
IMG = 16         # spatial (H = W)
C_OUT = 8        # conv channels
HID = 32         # hidden size
T = 8            # caption length
VOCAB = 64       # vocab size
NUM_LAYERS = 2   # decoder GRU layers
KSZ = 3          # conv kernel
HW = IMG * IMG
BT = B * T

B_SHIFT = B.bit_length() - 1      # log2(B)
T_SHIFT = T.bit_length() - 1      # log2(T)
HW_SHIFT = HW.bit_length() - 1    # log2(HW)

_VMEM = pl.BlockSpec(memory_space=pltpu.MemorySpace.VMEM)


# ---------------------------------------------------------------------------
# Fused kernel: encoder -> embedding -> 2-layer GRU -> vocab proj -> loss
# ---------------------------------------------------------------------------
def fused_kernel(patches_ref, wconv_ref, bconv_ref, wfc_ref, bfc_ref,
                 emb_tbl_ref, cap_ref, len_ref,
                 wih_ref, whh_ref, bih_ref, bhh_ref,
                 wout_ref, bout_ref, tgt_ref,
                 logits_ref, loss_ref, ncorrect_ref):
    f32 = jnp.float32

    # ---- encoder: conv-as-matmul -> ReLU -> avg-pool (matmul) -> FC -------
    conv = jnp.dot(patches_ref[...], wconv_ref[...],
                   preferred_element_type=f32) + bconv_ref[...]        # (B*HW, C_OUT)
    conv = jnp.maximum(conv, 0.0)
    # pooling as a (B, B*HW) averaging matmul: keeps the 8-lane intermediate in
    # registers, one MXU push instead of B XLU reduce chains + concatenate.
    row_b = jax.lax.broadcasted_iota(jnp.int32, (B, B * HW), 0)
    col_p = jax.lax.broadcasted_iota(jnp.int32, (B, B * HW), 1)
    pool = jnp.where(jnp.right_shift(col_p, HW_SHIFT) == row_b, 1.0 / HW, 0.0)
    pooled = jnp.dot(pool, conv, preferred_element_type=f32)            # (B, C_OUT)
    feat = jnp.dot(pooled, wfc_ref[...],
                   preferred_element_type=f32) + bfc_ref[...]           # (B, HID)

    # ---- embedding lookup via one-hot matmul (batch-major rows b*T+t) -----
    cap = cap_ref[...]                                                   # (BT, 1) int32
    vcol = jax.lax.broadcasted_iota(jnp.int32, (BT, VOCAB), 1)
    onehot = (vcol == cap).astype(f32)                                   # (BT, V)
    emb_bt = jnp.dot(onehot, emb_tbl_ref[...],
                     preferred_element_type=f32)                         # (BT, HID)

    # ---- permutation matmuls between batch-major and time-major orders ----
    ri = jax.lax.broadcasted_iota(jnp.int32, (BT, BT), 0)
    cj = jax.lax.broadcasted_iota(jnp.int32, (BT, BT), 1)
    # time-major row i = t*B+b pulls batch-major row j = b*T+t
    p_tm_from_bt = (cj == jnp.bitwise_and(ri, B - 1) * T
                    + jnp.right_shift(ri, B_SHIFT)).astype(f32)
    # batch-major row i = b*T+t pulls time-major row j = t*B+b
    p_bt_from_tm = (cj == jnp.bitwise_and(ri, T - 1) * B
                    + jnp.right_shift(ri, T_SHIFT)).astype(f32)

    seq_tm = jnp.dot(p_tm_from_bt, emb_bt, preferred_element_type=f32)   # (T*B, HID)

    # ---- 2-layer GRU, time-major, fully unrolled, input matmul hoisted ----
    len_col = len_ref[...]                                               # (B, 1) int32
    for layer in range(NUM_LAYERS):
        w_ih = wih_ref[layer]          # (H, 3H)
        w_hh = whh_ref[layer]          # (H, 3H)
        b_ih = bih_ref[layer]          # (1, 3H)
        b_hh = bhh_ref[layer]          # (1, 3H)

        # one fat input-side matmul per layer instead of T tiny ones
        gi_all = jnp.dot(seq_tm, w_ih, preferred_element_type=f32) + b_ih  # (T*B, 3H)

        h = feat                        # h0 == image features (repeated per layer)
        outs = []
        for t in range(T):              # static unroll, T fixed
            gi = gi_all[t * B:(t + 1) * B, :]                              # (B, 3H)
            gh = jnp.dot(h, w_hh, preferred_element_type=f32) + b_hh       # (B, 3H)
            i_r, i_z, i_n = gi[:, 0:HID], gi[:, HID:2 * HID], gi[:, 2 * HID:3 * HID]
            h_r, h_z, h_n = gh[:, 0:HID], gh[:, HID:2 * HID], gh[:, 2 * HID:3 * HID]
            r = jax.nn.sigmoid(i_r + h_r)
            z = jax.nn.sigmoid(i_z + h_z)
            n = jnp.tanh(i_n + r * h_n)
            h_new = (1.0 - z) * n + z * h
            # hold last valid hidden state past seq_length (masked recurrence)
            h = jnp.where(len_col > t, h_new, h)
            outs.append(h)
        seq_tm = jnp.concatenate(outs, axis=0)                             # (T*B, HID)

    # ---- vocab projection (batch-major) + cross-entropy(mean) + correct ---
    dec_bt = jnp.dot(p_bt_from_tm, seq_tm, preferred_element_type=f32)     # (B*T, HID)
    logits = jnp.dot(dec_bt, wout_ref[...],
                     preferred_element_type=f32) + bout_ref[...]           # (B*T, V)
    logits_ref[...] = logits

    mx = jnp.max(logits, axis=-1, keepdims=True)
    lse = mx + jnp.log(jnp.sum(jnp.exp(logits - mx), axis=-1, keepdims=True))
    tgt = tgt_ref[...]                                                     # (B*T, 1)
    tgt_logit = jnp.sum(jnp.where(vcol == tgt, logits, 0.0),
                        axis=-1, keepdims=True)                            # (B*T, 1)
    loss_ref[...] = (jnp.sum(lse - tgt_logit) / float(BT)).reshape(1, 1)

    # argmax (first index of max) == target
    pred = jnp.min(jnp.where(logits == mx, vcol, VOCAB), axis=-1, keepdims=True)
    ncorrect_ref[...] = jnp.sum((pred == tgt).astype(jnp.int32)).reshape(1, 1)


def encoder_decoder_fused(patches, wconv, bconv, wfc, bfc, emb_tbl,
                          cap_bt, len_col, wih, whh, bih, bhh, wout, bout, tgt_bt):
    return pl.pallas_call(
        fused_kernel,
        out_shape=(
            jax.ShapeDtypeStruct((BT, VOCAB), jnp.float32),   # logits (batch-major rows)
            jax.ShapeDtypeStruct((1, 1), jnp.float32),        # loss
            jax.ShapeDtypeStruct((1, 1), jnp.int32),          # num_correct
        ),
        in_specs=[_VMEM] * 15,
        out_specs=(_VMEM, _VMEM, _VMEM),
    )(patches, wconv, bconv, wfc, bfc, emb_tbl, cap_bt, len_col,
      wih, whh, bih, bhh, wout, bout, tgt_bt)


# ---------------------------------------------------------------------------
# Glue: im2col (layout only), parameter init, full forward
# ---------------------------------------------------------------------------
def im2col(img, k=KSZ):
    # img: (B, C, H, W) NCHW, 'same' padding for 3x3; rows are b*HW + (y*W + x)
    b, c, h, w = img.shape
    pad = k // 2
    imgp = jnp.pad(img, ((0, 0), (0, 0), (pad, pad), (pad, pad)))
    cols = []
    for dy in range(k):
        for dx in range(k):
            cols.append(imgp[:, :, dy:dy + h, dx:dx + w])        # (B, C, H, W)
    p = jnp.stack(cols, axis=2)                                   # (B, C, K*K, H, W)
    p = jnp.transpose(p, (0, 3, 4, 1, 2)).reshape(b * h * w, c * k * k)
    return p


def init_params(key):
    ks = jax.random.split(key, 12)
    s = 0.1
    return {
        # encoder
        "wconv": s * jax.random.normal(ks[0], (C_IN * KSZ * KSZ, C_OUT), jnp.float32),
        "bconv": s * jax.random.normal(ks[1], (1, C_OUT), jnp.float32),
        "wfc":   s * jax.random.normal(ks[2], (C_OUT, HID), jnp.float32),
        "bfc":   s * jax.random.normal(ks[3], (1, HID), jnp.float32),
        # decoder
        "embedding": s * jax.random.normal(ks[4], (VOCAB, HID), jnp.float32),
        "wih": s * jax.random.normal(ks[5], (NUM_LAYERS, HID, 3 * HID), jnp.float32),
        "whh": s * jax.random.normal(ks[6], (NUM_LAYERS, HID, 3 * HID), jnp.float32),
        "bih": s * jax.random.normal(ks[7], (NUM_LAYERS, 1, 3 * HID), jnp.float32),
        "bhh": s * jax.random.normal(ks[8], (NUM_LAYERS, 1, 3 * HID), jnp.float32),
        "wout": s * jax.random.normal(ks[9], (HID, VOCAB), jnp.float32),
        "bout": s * jax.random.normal(ks[10], (1, VOCAB), jnp.float32),
    }


@jax.jit
def encoder_decoder_forward(params, img, caption, seq_lengths, targets):
    patches = im2col(img)                                   # (B*HW, C*9) layout prep
    cap_bt = caption.reshape(BT, 1).astype(jnp.int32)       # free reshape (rows b*T+t)
    tgt_bt = targets.reshape(BT, 1).astype(jnp.int32)
    len_col = seq_lengths.reshape(B, 1).astype(jnp.int32)

    logits_flat, loss, ncorrect = encoder_decoder_fused(
        patches, params["wconv"], params["bconv"], params["wfc"], params["bfc"],
        params["embedding"], cap_bt, len_col,
        params["wih"], params["whh"], params["bih"], params["bhh"],
        params["wout"], params["bout"], tgt_bt)

    logits = logits_flat.reshape(B, T, VOCAB)               # metadata-only reshape
    return logits, loss[0, 0], ncorrect[0, 0], targets.shape[0]


# ---------------------------------------------------------------------------
if __name__ == "__main__":
    key = jax.random.PRNGKey(0)
    kp, ki, kc, kt = jax.random.split(key, 4)

    params = init_params(kp)
    img = jax.random.normal(ki, (B, C_IN, IMG, IMG), jnp.float32)      # NCHW
    caption = jax.random.randint(kc, (B, T), 0, VOCAB, jnp.int32)
    targets = jax.random.randint(kt, (B, T), 0, VOCAB, jnp.int32)
    seq_lengths = jnp.array([T, T - 3], dtype=jnp.int32)

    logits, loss, num_correct, batch_size = encoder_decoder_forward(
        params, img, caption, seq_lengths, targets)
    jax.block_until_ready((logits, loss, num_correct))

    assert logits.shape == (B, T, VOCAB)
    assert bool(jnp.isfinite(loss))
    assert 0 <= int(num_correct) <= B * T
    # TODO(synk): logging / count_parameters / .item() are host-side concerns,
    # not part of the device kernels.
    print("KERNEL_OK")
</pallas_src>

<mosaic_0001>
module attributes {stable_mosaic.version = 11 : i64} {
  func.func @fused_kernel(%arg0: memref<512x36xf32, #tpu.memory_space<vmem>>, %arg1: memref<36x8xf32, #tpu.memory_space<vmem>>, %arg2: memref<1x8xf32, #tpu.memory_space<vmem>>, %arg3: memref<8x32xf32, #tpu.memory_space<vmem>>, %arg4: memref<1x32xf32, #tpu.memory_space<vmem>>, %arg5: memref<64x32xf32, #tpu.memory_space<vmem>>, %arg6: memref<16x1xi32, #tpu.memory_space<vmem>>, %arg7: memref<2x1xi32, #tpu.memory_space<vmem>>, %arg8: memref<2x32x96xf32, #tpu.memory_space<vmem>>, %arg9: memref<2x32x96xf32, #tpu.memory_space<vmem>>, %arg10: memref<2x1x96xf32, #tpu.memory_space<vmem>>, %arg11: memref<2x1x96xf32, #tpu.memory_space<vmem>>, %arg12: memref<32x64xf32, #tpu.memory_space<vmem>>, %arg13: memref<1x64xf32, #tpu.memory_space<vmem>>, %arg14: memref<16x1xi32, #tpu.memory_space<vmem>>, %arg15: memref<16x64xf32, #tpu.memory_space<vmem>>, %arg16: memref<1x1xf32, #tpu.memory_space<vmem>>, %arg17: memref<1x1xi32, #tpu.memory_space<vmem>>) attributes {dimension_semantics = [], scalar_prefetch = 0 : i64, scratch_operands = 0 : i64, tpu.core_type = #tpu.core_type<tc>} {
    %c0 = arith.constant 0 : index
    %c0_0 = arith.constant 0 : index
    %0 = vector.load %arg0[%c0, %c0_0] : memref<512x36xf32, #tpu.memory_space<vmem>>, vector<512x36xf32>
    %c0_1 = arith.constant 0 : index
    %c0_2 = arith.constant 0 : index
    %1 = vector.load %arg1[%c0_1, %c0_2] : memref<36x8xf32, #tpu.memory_space<vmem>>, vector<36x8xf32>
    %cst = arith.constant dense<0.000000e+00> : vector<512x8xf32>
    %2 = tpu.matmul %0, %1, %cst {dimension_numbers = #tpu.dot_dimension_numbers<[1], [0], [0], [1], [0, 0, 1, 1], [], []>} : vector<512x36xf32>, vector<36x8xf32>, vector<512x8xf32> -> vector<512x8xf32>
    %c0_3 = arith.constant 0 : index
    %c0_4 = arith.constant 0 : index
    %3 = vector.load %arg2[%c0_3, %c0_4] : memref<1x8xf32, #tpu.memory_space<vmem>>, vector<1x8xf32>
    %4 = vector.broadcast %3 : vector<1x8xf32> to vector<512x8xf32>
    %5 = arith.addf %2, %4 : vector<512x8xf32>
    %cst_5 = arith.constant 0.000000e+00 : f32
    %6 = vector.broadcast %cst_5 : f32 to vector<512x8xf32>
    %7 = arith.maximumf %5, %6 : vector<512x8xf32>
    %8 = tpu.iota {dimensions = array<i32: 0>} : vector<2x512xi32>
    %9 = tpu.iota {dimensions = array<i32: 1>} : vector<2x512xi32>
    %c8_i32 = arith.constant 8 : i32
    %10 = vector.broadcast %c8_i32 : i32 to vector<2x512xi32>
    %11 = arith.shrsi %9, %10 : vector<2x512xi32>
    %12 = arith.cmpi eq, %11, %8 : vector<2x512xi32>
    %cst_6 = arith.constant 3.906250e-03 : f32
    %cst_7 = arith.constant 0.000000e+00 : f32
    %13 = vector.broadcast %cst_6 : f32 to vector<2x512xf32>
    %14 = vector.broadcast %cst_7 : f32 to vector<2x512xf32>
    %15 = arith.select %12, %13, %14 : vector<2x512xi1>, vector<2x512xf32>
    %cst_8 = arith.constant dense<0.000000e+00> : vector<2x8xf32>
    %16 = tpu.matmul %15, %7, %cst_8 {dimension_numbers = #tpu.dot_dimension_numbers<[1], [0], [0], [1], [0, 0, 1, 1], [], []>} : vector<2x512xf32>, vector<512x8xf32>, vector<2x8xf32> -> vector<2x8xf32>
    %c0_9 = arith.constant 0 : index
    %c0_10 = arith.constant 0 : index
    %17 = vector.load %arg3[%c0_9, %c0_10] : memref<8x32xf32, #tpu.memory_space<vmem>>, vector<8x32xf32>
    %cst_11 = arith.constant dense<0.000000e+00> : vector<2x32xf32>
    %18 = tpu.matmul %16, %17, %cst_11 {dimension_numbers = #tpu.dot_dimension_numbers<[1], [0], [0], [1], [0, 0, 1, 1], [], []>} : vector<2x8xf32>, vector<8x32xf32>, vector<2x32xf32> -> vector<2x32xf32>
    %c0_12 = arith.constant 0 : index
    %c0_13 = arith.constant 0 : index
    %19 = vector.load %arg4[%c0_12, %c0_13] : memref<1x32xf32, #tpu.memory_space<vmem>>, vector<1x32xf32>
    %20 = vector.broadcast %19 : vector<1x32xf32> to vector<2x32xf32>
    %21 = arith.addf %18, %20 : vector<2x32xf32>
    %c0_14 = arith.constant 0 : index
    %c0_15 = arith.constant 0 : index
    %22 = vector.load %arg6[%c0_14, %c0_15] : memref<16x1xi32, #tpu.memory_space<vmem>>, vector<16x1xi32>
    %23 = tpu.iota {dimensions = array<i32: 1>} : vector<16x64xi32>
    %24 = vector.broadcast %22 : vector<16x1xi32> to vector<16x64xi32>
    %25 = arith.cmpi eq, %23, %24 : vector<16x64xi32>
    %26 = arith.extui %25 : vector<16x64xi1> to vector<16x64xi32>
    %27 = arith.sitofp %26 : vector<16x64xi32> to vector<16x64xf32>
    %c0_16 = arith.constant 0 : index
    %c0_17 = arith.constant 0 : index
    %28 = vector.load %arg5[%c0_16, %c0_17] : memref<64x32xf32, #tpu.memory_space<vmem>>, vector<64x32xf32>
    %cst_18 = arith.constant dense<0.000000e+00> : vector<16x32xf32>
    %29 = tpu.matmul %27, %28, %cst_18 {dimension_numbers = #tpu.dot_dimension_numbers<[1], [0], [0], [1], [0, 0, 1, 1], [], []>} : vector<16x64xf32>, vector<64x32xf32>, vector<16x32xf32> -> vector<16x32xf32>
    %30 = tpu.iota {dimensions = array<i32: 0>} : vector<16x16xi32>
    %31 = tpu.iota {dimensions = array<i32: 1>} : vector<16x16xi32>
    %c1_i32 = arith.constant 1 : i32
    %32 = vector.broadcast %c1_i32 : i32 to vector<16x16xi32>
    %33 = arith.andi %30, %32 : vector<16x16xi32>
    %c8_i32_19 = arith.constant 8 : i32
    %34 = vector.broadcast %c8_i32_19 : i32 to vector<16x16xi32>
    %35 = arith.muli %33, %34 : vector<16x16xi32>
    %c1_i32_20 = arith.constant 1 : i32
    %36 = vector.broadcast %c1_i32_20 : i32 to vector<16x16xi32>
    %37 = arith.shrsi %30, %36 : vector<16x16xi32>
    %38 = arith.addi %35, %37 : vector<16x16xi32>
    %39 = arith.cmpi eq, %31, %38 : vector<16x16xi32>
    %40 = arith.extui %39 : vector<16x16xi1> to vector<16x16xi32>
    %41 = arith.sitofp %40 : vector<16x16xi32> to vector<16x16xf32>
    %c7_i32 = arith.constant 7 : i32
    %42 = vector.broadcast %c7_i32 : i32 to vector<16x16xi32>
    %43 = arith.andi %30, %42 : vector<16x16xi32>
    %c2_i32 = arith.constant 2 : i32
    %44 = vector.broadcast %c2_i32 : i32 to vector<16x16xi32>
    %45 = arith.muli %43, %44 : vector<16x16xi32>
    %c3_i32 = arith.constant 3 : i32
    %46 = vector.broadcast %c3_i32 : i32 to vector<16x16xi32>
    %47 = arith.shrsi %30, %46 : vector<16x16xi32>
    %48 = arith.addi %45, %47 : vector<16x16xi32>
    %49 = arith.cmpi eq, %31, %48 : vector<16x16xi32>
    %50 = arith.extui %49 : vector<16x16xi1> to vector<16x16xi32>
    %51 = arith.sitofp %50 : vector<16x16xi32> to vector<16x16xf32>
    %cst_21 = arith.constant dense<0.000000e+00> : vector<16x32xf32>
    %52 = tpu.matmul %41, %29, %cst_21 {dimension_numbers = #tpu.dot_dimension_numbers<[1], [0], [0], [1], [0, 0, 1, 1], [], []>} : vector<16x16xf32>, vector<16x32xf32>, vector<16x32xf32> -> vector<16x32xf32>
    %c0_22 = arith.constant 0 : index
    %c0_23 = arith.constant 0 : index
    %53 = vector.load %arg7[%c0_22, %c0_23] : memref<2x1xi32, #tpu.memory_space<vmem>>, vector<2x1xi32>
    %c0_24 = arith.constant 0 : index
    %c0_25 = arith.constant 0 : index
    %c0_26 = arith.constant 0 : index
    %54 = vector.load %arg8[%c0_24, %c0_25, %c0_26] : memref<2x32x96xf32, #tpu.memory_space<vmem>>, vector<1x32x96xf32>
    %55 = vector.shape_cast %54 : vector<1x32x96xf32> to vector<32x96xf32>
    %c0_27 = arith.constant 0 : index
    %c0_28 = arith.constant 0 : index
    %c0_29 = arith.constant 0 : index
    %56 = vector.load %arg9[%c0_27, %c0_28, %c0_29] : memref<2x32x96xf32, #tpu.memory_space<vmem>>, vector<1x32x96xf32>
    %57 = vector.shape_cast %56 : vector<1x32x96xf32> to vector<32x96xf32>
    %c0_30 = arith.constant 0 : index
    %c0_31 = arith.constant 0 : index
    %c0_32 = arith.constant 0 : index
    %58 = vector.load %arg10[%c0_30, %c0_31, %c0_32] : memref<2x1x96xf32, #tpu.memory_space<vmem>>, vector<1x1x96xf32>
    %59 = vector.shape_cast %58 : vector<1x1x96xf32> to vector<1x96xf32>
    %c0_33 = arith.constant 0 : index
    %c0_34 = arith.constant 0 : index
    %c0_35 = arith.constant 0 : index
    %60 = vector.load %arg11[%c0_33, %c0_34, %c0_35] : memref<2x1x96xf32, #tpu.memory_space<vmem>>, vector<1x1x96xf32>
    %61 = vector.shape_cast %60 : vector<1x1x96xf32> to vector<1x96xf32>
    %cst_36 = arith.constant dense<0.000000e+00> : vector<16x96xf32>
    %62 = tpu.matmul %52, %55, %cst_36 {dimension_numbers = #tpu.dot_dimension_numbers<[1], [0], [0], [1], [0, 0, 1, 1], [], []>} : vector<16x32xf32>, vector<32x96xf32>, vector<16x96xf32> -> vector<16x96xf32>
    %63 = vector.broadcast %59 : vector<1x96xf32> to vector<16x96xf32>
    %64 = arith.addf %62, %63 : vector<16x96xf32>
    %65 = vector.extract_strided_slice %64 {offsets = [0, 0], sizes = [2, 96], strides = [1, 1]} : vector<16x96xf32> to vector<2x96xf32>
    %cst_37 = arith.constant dense<0.000000e+00> : vector<2x96xf32>
    %66 = tpu.matmul %21, %57, %cst_37 {dimension_numbers = #tpu.dot_dimension_numbers<[1], [0], [0], [1], [0, 0, 1, 1], [], []>} : vector<2x32xf32>, vector<32x96xf32>, vector<2x96xf32> -> vector<2x96xf32>
    %67 = vector.broadcast %61 : vector<1x96xf32> to vector<2x96xf32>
    %68 = arith.addf %66, %67 : vector<2x96xf32>
    %69 = vector.extract_strided_slice %65 {offsets = [0, 0], sizes = [2, 32], strides = [1, 1]} : vector<2x96xf32> to vector<2x32xf32>
    %70 = vector.extract_strided_slice %65 {offsets = [0, 32], sizes = [2, 32], strides = [1, 1]} : vector<2x96xf32> to vector<2x32xf32>
    %71 = vector.extract_strided_slice %65 {offsets = [0, 64], sizes = [2, 32], strides = [1, 1]} : vector<2x96xf32> to vector<2x32xf32>
    %72 = vector.extract_strided_slice %68 {offsets = [0, 0], sizes = [2, 32], strides = [1, 1]} : vector<2x96xf32> to vector<2x32xf32>
    %73 = vector.extract_strided_slice %68 {offsets = [0, 32], sizes = [2, 32], strides = [1, 1]} : vector<2x96xf32> to vector<2x32xf32>
    %74 = vector.extract_strided_slice %68 {offsets = [0, 64], sizes = [2, 32], strides = [1, 1]} : vector<2x96xf32> to vector<2x32xf32>
    %75 = arith.addf %69, %72 : vector<2x32xf32>
    %76 = arith.negf %75 : vector<2x32xf32>
    %77 = math.exp %76 : vector<2x32xf32>
    %cst_38 = arith.constant 1.000000e+00 : f32
    %78 = vector.broadcast %cst_38 : f32 to vector<2x32xf32>
    %79 = arith.addf %78, %77 : vector<2x32xf32>
    %80 = arith.divf %78, %79 : vector<2x32xf32>
    %81 = arith.addf %70, %73 : vector<2x32xf32>
    %82 = arith.negf %81 : vector<2x32xf32>
    %83 = math.exp %82 : vector<2x32xf32>
    %cst_39 = arith.constant 1.000000e+00 : f32
    %84 = vector.broadcast %cst_39 : f32 to vector<2x32xf32>
    %85 = arith.addf %84, %83 : vector<2x32xf32>
    %86 = arith.divf %84, %85 : vector<2x32xf32>
    %87 = arith.mulf %80, %74 : vector<2x32xf32>
    %88 = arith.addf %71, %87 : vector<2x32xf32>
    %89 = math.tanh %88 : vector<2x32xf32>
    %cst_40 = arith.constant 1.000000e+00 : f32
    %90 = vector.broadcast %cst_40 : f32 to vector<2x32xf32>
    %91 = arith.subf %90, %86 : vector<2x32xf32>
    %92 = arith.mulf %91, %89 : vector<2x32xf32>
    %93 = arith.mulf %86, %21 : vector<2x32xf32>
    %94 = arith.addf %92, %93 : vector<2x32xf32>
    %c0_i32 = arith.constant 0 : i32
    %95 = vector.broadcast %c0_i32 : i32 to vector<2x1xi32>
    %96 = arith.cmpi sgt, %53, %95 : vector<2x1xi32>
    %97 = vector.shape_cast %96 : vector<2x1xi1> to vector<2x1xi1>
    %98 = vector.broadcast %97 : vector<2x1xi1> to vector<2x32xi1>
    %99 = arith.select %98, %94, %21 : vector<2x32xi1>, vector<2x32xf32>
    %100 = vector.extract_strided_slice %64 {offsets = [2, 0], sizes = [2, 96], strides = [1, 1]} : vector<16x96xf32> to vector<2x96xf32>
    %cst_41 = arith.constant dense<0.000000e+00> : vector<2x96xf32>
    %101 = tpu.matmul %99, %57, %cst_41 {dimension_numbers = #tpu.dot_dimension_numbers<[1], [0], [0], [1], [0, 0, 1, 1], [], []>} : vector<2x32xf32>, vector<32x96xf32>, vector<2x96xf32> -> vector<2x96xf32>
    %102 = vector.broadcast %61 : vector<1x96xf32> to vector<2x96xf32>
    %103 = arith.addf %101, %102 : vector<2x96xf32>
    %104 = vector.extract_strided_slice %100 {offsets = [0, 0], sizes = [2, 32], strides = [1, 1]} : vector<2x96xf32> to vector<2x32xf32>
    %105 = vector.extract_strided_slice %100 {offsets = [0, 32], sizes = [2, 32], strides = [1, 1]} : vector<2x96xf32> to vector<2x32xf32>
    %106 = vector.extract_strided_slice %100 {offsets = [0, 64], sizes = [2, 32], strides = [1, 1]} : vector<2x96xf32> to vector<2x32xf32>
    %107 = vector.extract_strided_slice %103 {offsets = [0, 0], sizes = [2, 32], strides = [1, 1]} : vector<2x96xf32> to vector<2x32xf32>
    %108 = vector.extract_strided_slice %103 {offsets = [0, 32], sizes = [2, 32], strides = [1, 1]} : vector<2x96xf32> to vector<2x32xf32>
    %109 = vector.extract_strided_slice %103 {offsets = [0, 64], sizes = [2, 32], strides = [1, 1]} : vector<2x96xf32> to vector<2x32xf32>
    %110 = arith.addf %104, %107 : vector<2x32xf32>
    %111 = arith.negf %110 : vector<2x32xf32>
    %112 = math.exp %111 : vector<2x32xf32>
    %cst_42 = arith.constant 1.000000e+00 : f32
    %113 = vector.broadcast %cst_42 : f32 to vector<2x32xf32>
    %114 = arith.addf %113, %112 : vector<2x32xf32>
    %115 = arith.divf %113, %114 : vector<2x32xf32>
    %116 = arith.addf %105, %108 : vector<2x32xf32>
    %117 = arith.negf %116 : vector<2x32xf32>
    %118 = math.exp %117 : vector<2x32xf32>
    %cst_43 = arith.constant 1.000000e+00 : f32
    %119 = vector.broadcast %cst_43 : f32 to vector<2x32xf32>
    %120 = arith.addf %119, %118 : vector<2x32xf32>
    %121 = arith.divf %119, %120 : vector<2x32xf32>
    %122 = arith.mulf %115, %109 : vector<2x32xf32>
    %123 = arith.addf %106, %122 : vector<2x32xf32>
    %124 = math.tanh %123 : vector<2x32xf32>
    %cst_44 = arith.constant 1.000000e+00 : f32
    %125 = vector.broadcast %cst_44 : f32 to vector<2x32xf32>
    %126 = arith.subf %125, %121 : vector<2x32xf32>
    %127 = arith.mulf %126, %124 : vector<2x32xf32>
    %128 = arith.mulf %121, %99 : vector<2x32xf32>
    %129 = arith.addf %127, %128 : vector<2x32xf32>
    %c1_i32_45 = arith.constant 1 : i32
    %130 = vector.broadcast %c1_i32_45 : i32 to vector<2x1xi32>
    %131 = arith.cmpi sgt, %53, %130 : vector<2x1xi32>
    %132 = vector.shape_cast %131 : vector<2x1xi1> to vector<2x1xi1>
    %133 = vector.broadcast %132 : vector<2x1xi1> to vector<2x32xi1>
    %134 = arith.select %133, %129, %99 : vector<2x32xi1>, vector<2x32xf32>
    %135 = vector.extract_strided_slice %64 {offsets = [4, 0], sizes = [2, 96], strides = [1, 1]} : vector<16x96xf32> to vector<2x96xf32>
    %cst_46 = arith.constant dense<0.000000e+00> : vector<2x96xf32>
    %136 = tpu.matmul %134, %57, %cst_46 {dimension_numbers = #tpu.dot_dimension_numbers<[1], [0], [0], [1], [0, 0, 1, 1], [], []>} : vector<2x32xf32>, vector<32x96xf32>, vector<2x96xf32> -> vector<2x96xf32>
    %137 = vector.broadcast %61 : vector<1x96xf32> to vector<2x96xf32>
    %138 = arith.addf %136, %137 : vector<2x96xf32>
    %139 = vector.extract_strided_slice %135 {offsets = [0, 0], sizes = [2, 32], strides = [1, 1]} : vector<2x96xf32> to vector<2x32xf32>
    %140 = vector.extract_strided_slice %135 {offsets = [0, 32], sizes = [2, 32], strides = [1, 1]} : vector<2x96xf32> to vector<2x32xf32>
    %141 = vector.extract_strided_slice %135 {offsets = [0, 64], sizes = [2, 32], strides = [1, 1]} : vector<2x96xf32> to vector<2x32xf32>
    %142 = vector.extract_strided_slice %138 {offsets = [0, 0], sizes = [2, 32], strides = [1, 1]} : vector<2x96xf32> to vector<2x32xf32>
    %143 = vector.extract_strided_slice %138 {offsets = [0, 32], sizes = [2, 32], strides = [1, 1]} : vector<2x96xf32> to vector<2x32xf32>
    %144 = vector.extract_strided_slice %138 {offsets = [0, 64], sizes = [2, 32], strides = [1, 1]} : vector<2x96xf32> to vector<2x32xf32>
    %145 = arith.addf %139, %142 : vector<2x32xf32>
    %146 = arith.negf %145 : vector<2x32xf32>
    %147 = math.exp %146 : vector<2x32xf32>
    %cst_47 = arith.constant 1.000000e+00 : f32
    %148 = vector.broadcast %cst_47 : f32 to vector<2x32xf32>
    %149 = arith.addf %148, %147 : vector<2x32xf32>
    %150 = arith.divf %148, %149 : vector<2x32xf32>
    %151 = arith.addf %140, %143 : vector<2x32xf32>
    %152 = arith.negf %151 : vector<2x32xf32>
    %153 = math.exp %152 : vector<2x32xf32>
    %cst_48 = arith.constant 1.000000e+00 : f32
    %154 = vector.broadcast %cst_48 : f32 to vector<2x32xf32>
    %155 = arith.addf %154, %153 : vector<2x32xf32>
    %156 = arith.divf %154, %155 : vector<2x32xf32>
    %157 = arith.mulf %150, %144 : vector<2x32xf32>
    %158 = arith.addf %141, %157 : vector<2x32xf32>
    %159 = math.tanh %158 : vector<2x32xf32>
    %cst_49 = arith.constant 1.000000e+00 : f32
    %160 = vector.broadcast %cst_49 : f32 to vector<2x32xf32>
    %161 = arith.subf %160, %156 : vector<2x32xf32>
    %162 = arith.mulf %161, %159 : vector<2x32xf32>
    %163 = arith.mulf %156, %134 : vector<2x32xf32>
    %164 = arith.addf %162, %163 : vector<2x32xf32>
    %c2_i32_50 = arith.constant 2 : i32
    %165 = vector.broadcast %c2_i32_50 : i32 to vector<2x1xi32>
    %166 = arith.cmpi sgt, %53, %165 : vector<2x1xi32>
    %167 = vector.shape_cast %166 : vector<2x1xi1> to vector<2x1xi1>
    %168 = vector.broadcast %167 : vector<2x1xi1> to vector<2x32xi1>
    %169 = arith.select %168, %164, %134 : vector<2x32xi1>, vector<2x32xf32>
    %170 = vector.extract_strided_slice %64 {offsets = [6, 0], sizes = [2, 96], strides = [1, 1]} : vector<16x96xf32> to vector<2x96xf32>
    %cst_51 = arith.constant dense<0.000000e+00> : vector<2x96xf32>
    %171 = tpu.matmul %169, %57, %cst_51 {dimension_numbers = #tpu.dot_dimension_numbers<[1], [0], [0], [1], [0, 0, 1, 1], [], []>} : vector<2x32xf32>, vector<32x96xf32>, vector<2x96xf32> -> vector<2x96xf32>
    %172 = vector.broadcast %61 : vector<1x96xf32> to vector<2x96xf32>
    %173 = arith.addf %171, %172 : vector<2x96xf32>
    %174 = vector.extract_strided_slice %170 {offsets = [0, 0], sizes = [2, 32], strides = [1, 1]} : vector<2x96xf32> to vector<2x32xf32>
    %175 = vector.extract_strided_slice %170 {offsets = [0, 32], sizes = [2, 32], strides = [1, 1]} : vector<2x96xf32> to vector<2x32xf32>
    %176 = vector.extract_strided_slice %170 {offsets = [0, 64], sizes = [2, 32], strides = [1, 1]} : vector<2x96xf32> to vector<2x32xf32>
    %177 = vector.extract_strided_slice %173 {offsets = [0, 0], sizes = [2, 32], strides = [1, 1]} : vector<2x96xf32> to vector<2x32xf32>
    %178 = vector.extract_strided_slice %173 {offsets = [0, 32], sizes = [2, 32], strides = [1, 1]} : vector<2x96xf32> to vector<2x32xf32>
    %179 = vector.extract_strided_slice %173 {offsets = [0, 64], sizes = [2, 32], strides = [1, 1]} : vector<2x96xf32> to vector<2x32xf32>
    %180 = arith.addf %174, %177 : vector<2x32xf32>
    %181 = arith.negf %180 : vector<2x32xf32>
    %182 = math.exp %181 : vector<2x32xf32>
    %cst_52 = arith.constant 1.000000e+00 : f32
    %183 = vector.broadcast %cst_52 : f32 to vector<2x32xf32>
    %184 = arith.addf %183, %182 : vector<2x32xf32>
    %185 = arith.divf %183, %184 : vector<2x32xf32>
    %186 = arith.addf %175, %178 : vector<2x32xf32>
    %187 = arith.negf %186 : vector<2x32xf32>
    %188 = math.exp %187 : vector<2x32xf32>
    %cst_53 = arith.constant 1.000000e+00 : f32
    %189 = vector.broadcast %cst_53 : f32 to vector<2x32xf32>
    %190 = arith.addf %189, %188 : vector<2x32xf32>
    %191 = arith.divf %189, %190 : vector<2x32xf32>
    %192 = arith.mulf %185, %179 : vector<2x32xf32>
    %193 = arith.addf %176, %192 : vector<2x32xf32>
    %194 = math.tanh %193 : vector<2x32xf32>
    %cst_54 = arith.constant 1.000000e+00 : f32
    %195 = vector.broadcast %cst_54 : f32 to vector<2x32xf32>
    %196 = arith.subf %195, %191 : vector<2x32xf32>
    %197 = arith.mulf %196, %194 : vector<2x32xf32>
    %198 = arith.mulf %191, %169 : vector<2x32xf32>
    %199 = arith.addf %197, %198 : vector<2x32xf32>
    %c3_i32_55 = arith.constant 3 : i32
    %200 = vector.broadcast %c3_i32_55 : i32 to vector<2x1xi32>
    %201 = arith.cmpi sgt, %53, %200 : vector<2x1xi32>
    %202 = vector.shape_cast %201 : vector<2x1xi1> to vector<2x1xi1>
    %203 = vector.broadcast %202 : vector<2x1xi1> to vector<2x32xi1>
    %204 = arith.select %203, %199, %169 : vector<2x32xi1>, vector<2x32xf32>
    %205 = vector.extract_strided_slice %64 {offsets = [8, 0], sizes = [2, 96], strides = [1, 1]} : vector<16x96xf32> to vector<2x96xf32>
    %cst_56 = arith.constant dense<0.000000e+00> : vector<2x96xf32>
    %206 = tpu.matmul %204, %57, %cst_56 {dimension_numbers = #tpu.dot_dimension_numbers<[1], [0], [0], [1], [0, 0, 1, 1], [], []>} : vector<2x32xf32>, vector<32x96xf32>, vector<2x96xf32> -> vector<2x96xf32>
    %207 = vector.broadcast %61 : vector<1x96xf32> to vector<2x96xf32>
    %208 = arith.addf %206, %207 : vector<2x96xf32>
    %209 = vector.extract_strided_slice %205 {offsets = [0, 0], sizes = [2, 32], strides = [1, 1]} : vector<2x96xf32> to vector<2x32xf32>
    %210 = vector.extract_strided_slice %205 {offsets = [0, 32], sizes = [2, 32], strides = [1, 1]} : vector<2x96xf32> to vector<2x32xf32>
    %211 = vector.extract_strided_slice %205 {offsets = [0, 64], sizes = [2, 32], strides = [1, 1]} : vector<2x96xf32> to vector<2x32xf32>
    %212 = vector.extract_strided_slice %208 {offsets = [0, 0], sizes = [2, 32], strides = [1, 1]} : vector<2x96xf32> to vector<2x32xf32>
    %213 = vector.extract_strided_slice %208 {offsets = [0, 32], sizes = [2, 32], strides = [1, 1]} : vector<2x96xf32> to vector<2x32xf32>
    %214 = vector.extract_strided_slice %208 {offsets = [0, 64], sizes = [2, 32], strides = [1, 1]} : vector<2x96xf32> to vector<2x32xf32>
    %215 = arith.addf %209, %212 : vector<2x32xf32>
    %216 = arith.negf %215 : vector<2x32xf32>
    %217 = math.exp %216 : vector<2x32xf32>
    %cst_57 = arith.constant 1.000000e+00 : f32
    %218 = vector.broadcast %cst_57 : f32 to vector<2x32xf32>
    %219 = arith.addf %218, %217 : vector<2x32xf32>
    %220 = arith.divf %218, %219 : vector<2x32xf32>
    %221 = arith.addf %210, %213 : vector<2x32xf32>
    %222 = arith.negf %221 : vector<2x32xf32>
    %223 = math.exp %222 : vector<2x32xf32>
    %cst_58 = arith.constant 1.000000e+00 : f32
    %224 = vector.broadcast %cst_58 : f32 to vector<2x32xf32>
    %225 = arith.addf %224, %223 : vector<2x32xf32>
    %226 = arith.divf %224, %225 : vector<2x32xf32>
    %227 = arith.mulf %220, %214 : vector<2x32xf32>
    %228 = arith.addf %211, %227 : vector<2x32xf32>
    %229 = math.tanh %228 : vector<2x32xf32>
    %cst_59 = arith.constant 1.000000e+00 : f32
    %230 = vector.broadcast %cst_59 : f32 to vector<2x32xf32>
    %231 = arith.subf %230, %226 : vector<2x32xf32>
    %232 = arith.mulf %231, %229 : vector<2x32xf32>
    %233 = arith.mulf %226, %204 : vector<2x32xf32>
    %234 = arith.addf %232, %233 : vector<2x32xf32>
    %c4_i32 = arith.constant 4 : i32
    %235 = vector.broadcast %c4_i32 : i32 to vector<2x1xi32>
    %236 = arith.cmpi sgt, %53, %235 : vector<2x1xi32>
    %237 = vector.shape_cast %236 : vector<2x1xi1> to vector<2x1xi1>
    %238 = vector.broadcast %237 : vector<2x1xi1> to vector<2x32xi1>
    %239 = arith.select %238, %234, %204 : vector<2x32xi1>, vector<2x32xf32>
    %240 = vector.extract_strided_slice %64 {offsets = [10, 0], sizes = [2, 96], strides = [1, 1]} : vector<16x96xf32> to vector<2x96xf32>
    %cst_60 = arith.constant dense<0.000000e+00> : vector<2x96xf32>
    %241 = tpu.matmul %239, %57, %cst_60 {dimension_numbers = #tpu.dot_dimension_numbers<[1], [0], [0], [1], [0, 0, 1, 1], [], []>} : vector<2x32xf32>, vector<32x96xf32>, vector<2x96xf32> -> vector<2x96xf32>
    %242 = vector.broadcast %61 : vector<1x96xf32> to vector<2x96xf32>
    %243 = arith.addf %241, %242 : vector<2x96xf32>
    %244 = vector.extract_strided_slice %240 {offsets = [0, 0], sizes = [2, 32], strides = [1, 1]} : vector<2x96xf32> to vector<2x32xf32>
    %245 = vector.extract_strided_slice %240 {offsets = [0, 32], sizes = [2, 32], strides = [1, 1]} : vector<2x96xf32> to vector<2x32xf32>
    %246 = vector.extract_strided_slice %240 {offsets = [0, 64], sizes = [2, 32], strides = [1, 1]} : vector<2x96xf32> to vector<2x32xf32>
    %247 = vector.extract_strided_slice %243 {offsets = [0, 0], sizes = [2, 32], strides = [1, 1]} : vector<2x96xf32> to vector<2x32xf32>
    %248 = vector.extract_strided_slice %243 {offsets = [0, 32], sizes = [2, 32], strides = [1, 1]} : vector<2x96xf32> to vector<2x32xf32>
    %249 = vector.extract_strided_slice %243 {offsets = [0, 64], sizes = [2, 32], strides = [1, 1]} : vector<2x96xf32> to vector<2x32xf32>
    %250 = arith.addf %244, %247 : vector<2x32xf32>
    %251 = arith.negf %250 : vector<2x32xf32>
    %252 = math.exp %251 : vector<2x32xf32>
    %cst_61 = arith.constant 1.000000e+00 : f32
    %253 = vector.broadcast %cst_61 : f32 to vector<2x32xf32>
    %254 = arith.addf %253, %252 : vector<2x32xf32>
    %255 = arith.divf %253, %254 : vector<2x32xf32>
    %256 = arith.addf %245, %248 : vector<2x32xf32>
    %257 = arith.negf %256 : vector<2x32xf32>
    %258 = math.exp %257 : vector<2x32xf32>
    %cst_62 = arith.constant 1.000000e+00 : f32
    %259 = vector.broadcast %cst_62 : f32 to vector<2x32xf32>
    %260 = arith.addf %259, %258 : vector<2x32xf32>
    %261 = arith.divf %259, %260 : vector<2x32xf32>
    %262 = arith.mulf %255, %249 : vector<2x32xf32>
    %263 = arith.addf %246, %262 : vector<2x32xf32>
    %264 = math.tanh %263 : vector<2x32xf32>
    %cst_63 = arith.constant 1.000000e+00 : f32
    %265 = vector.broadcast %cst_63 : f32 to vector<2x32xf32>
    %266 = arith.subf %265, %261 : vector<2x32xf32>
    %267 = arith.mulf %266, %264 : vector<2x32xf32>
    %268 = arith.mulf %261, %239 : vector<2x32xf32>
    %269 = arith.addf %267, %268 : vector<2x32xf32>
    %c5_i32 = arith.constant 5 : i32
    %270 = vector.broadcast %c5_i32 : i32 to vector<2x1xi32>
    %271 = arith.cmpi sgt, %53, %270 : vector<2x1xi32>
    %272 = vector.shape_cast %271 : vector<2x1xi1> to vector<2x1xi1>
    %273 = vector.broadcast %272 : vector<2x1xi1> to vector<2x32xi1>
    %274 = arith.select %273, %269, %239 : vector<2x32xi1>, vector<2x32xf32>
    %275 = vector.extract_strided_slice %64 {offsets = [12, 0], sizes = [2, 96], strides = [1, 1]} : vector<16x96xf32> to vector<2x96xf32>
    %cst_64 = arith.constant dense<0.000000e+00> : vector<2x96xf32>
    %276 = tpu.matmul %274, %57, %cst_64 {dimension_numbers = #tpu.dot_dimension_numbers<[1], [0], [0], [1], [0, 0, 1, 1], [], []>} : vector<2x32xf32>, vector<32x96xf32>, vector<2x96xf32> -> vector<2x96xf32>
    %277 = vector.broadcast %61 : vector<1x96xf32> to vector<2x96xf32>
    %278 = arith.addf %276, %277 : vector<2x96xf32>
    %279 = vector.extract_strided_slice %275 {offsets = [0, 0], sizes = [2, 32], strides = [1, 1]} : vector<2x96xf32> to vector<2x32xf32>
    %280 = vector.extract_strided_slice %275 {offsets = [0, 32], sizes = [2, 32], strides = [1, 1]} : vector<2x96xf32> to vector<2x32xf32>
    %281 = vector.extract_strided_slice %275 {offsets = [0, 64], sizes = [2, 32], strides = [1, 1]} : vector<2x96xf32> to vector<2x32xf32>
    %282 = vector.extract_strided_slice %278 {offsets = [0, 0], sizes = [2, 32], strides = [1, 1]} : vector<2x96xf32> to vector<2x32xf32>
    %283 = vector.extract_strided_slice %278 {offsets = [0, 32], sizes = [2, 32], strides = [1, 1]} : vector<2x96xf32> to vector<2x32xf32>
    %284 = vector.extract_strided_slice %278 {offsets = [0, 64], sizes = [2, 32], strides = [1, 1]} : vector<2x96xf32> to vector<2x32xf32>
    %285 = arith.addf %279, %282 : vector<2x32xf32>
    %286 = arith.negf %285 : vector<2x32xf32>
    %287 = math.exp %286 : vector<2x32xf32>
    %cst_65 = arith.constant 1.000000e+00 : f32
    %288 = vector.broadcast %cst_65 : f32 to vector<2x32xf32>
    %289 = arith.addf %288, %287 : vector<2x32xf32>
    %290 = arith.divf %288, %289 : vector<2x32xf32>
    %291 = arith.addf %280, %283 : vector<2x32xf32>
    %292 = arith.negf %291 : vector<2x32xf32>
    %293 = math.exp %292 : vector<2x32xf32>
    %cst_66 = arith.constant 1.000000e+00 : f32
    %294 = vector.broadcast %cst_66 : f32 to vector<2x32xf32>
    %295 = arith.addf %294, %293 : vector<2x32xf32>
    %296 = arith.divf %294, %295 : vector<2x32xf32>
    %297 = arith.mulf %290, %284 : vector<2x32xf32>
    %298 = arith.addf %281, %297 : vector<2x32xf32>
    %299 = math.tanh %298 : vector<2x32xf32>
    %cst_67 = arith.constant 1.000000e+00 : f32
    %300 = vector.broadcast %cst_67 : f32 to vector<2x32xf32>
    %301 = arith.subf %300, %296 : vector<2x32xf32>
    %302 = arith.mulf %301, %299 : vector<2x32xf32>
    %303 = arith.mulf %296, %274 : vector<2x32xf32>
    %304 = arith.addf %302, %303 : vector<2x32xf32>
    %c6_i32 = arith.constant 6 : i32
    %305 = vector.broadcast %c6_i32 : i32 to vector<2x1xi32>
    %306 = arith.cmpi sgt, %53, %305 : vector<2x1xi32>
    %307 = vector.shape_cast %306 : vector<2x1xi1> to vector<2x1xi1>
    %308 = vector.broadcast %307 : vector<2x1xi1> to vector<2x32xi1>
    %309 = arith.select %308, %304, %274 : vector<2x32xi1>, vector<2x32xf32>
    %310 = vector.extract_strided_slice %64 {offsets = [14, 0], sizes = [2, 96], strides = [1, 1]} : vector<16x96xf32> to vector<2x96xf32>
    %cst_68 = arith.constant dense<0.000000e+00> : vector<2x96xf32>
    %311 = tpu.matmul %309, %57, %cst_68 {dimension_numbers = #tpu.dot_dimension_numbers<[1], [0], [0], [1], [0, 0, 1, 1], [], []>} : vector<2x32xf32>, vector<32x96xf32>, vector<2x96xf32> -> vector<2x96xf32>
    %312 = vector.broadcast %61 : vector<1x96xf32> to vector<2x96xf32>
    %313 = arith.addf %311, %312 : vector<2x96xf32>
    %314 = vector.extract_strided_slice %310 {offsets = [0, 0], sizes = [2, 32], strides = [1, 1]} : vector<2x96xf32> to vector<2x32xf32>
    %315 = vector.extract_strided_slice %310 {offsets = [0, 32], sizes = [2, 32], strides = [1, 1]} : vector<2x96xf32> to vector<2x32xf32>
    %316 = vector.extract_strided_slice %310 {offsets = [0, 64], sizes = [2, 32], strides = [1, 1]} : vector<2x96xf32> to vector<2x32xf32>
    %317 = vector.extract_strided_slice %313 {offsets = [0, 0], sizes = [2, 32], strides = [1, 1]} : vector<2x96xf32> to vector<2x32xf32>
    %318 = vector.extract_strided_slice %313 {offsets = [0, 32], sizes = [2, 32], strides = [1, 1]} : vector<2x96xf32> to vector<2x32xf32>
    %319 = vector.extract_strided_slice %313 {offsets = [0, 64], sizes = [2, 32], strides = [1, 1]} : vector<2x96xf32> to vector<2x32xf32>
    %320 = arith.addf %314, %317 : vector<2x32xf32>
    %321 = arith.negf %320 : vector<2x32xf32>
    %322 = math.exp %321 : vector<2x32xf32>
    %cst_69 = arith.constant 1.000000e+00 : f32
    %323 = vector.broadcast %cst_69 : f32 to vector<2x32xf32>
    %324 = arith.addf %323, %322 : vector<2x32xf32>
    %325 = arith.divf %323, %324 : vector<2x32xf32>
    %326 = arith.addf %315, %318 : vector<2x32xf32>
    %327 = arith.negf %326 : vector<2x32xf32>
    %328 = math.exp %327 : vector<2x32xf32>
    %cst_70 = arith.constant 1.000000e+00 : f32
    %329 = vector.broadcast %cst_70 : f32 to vector<2x32xf32>
    %330 = arith.addf %329, %328 : vector<2x32xf32>
    %331 = arith.divf %329, %330 : vector<2x32xf32>
    %332 = arith.mulf %325, %319 : vector<2x32xf32>
    %333 = arith.addf %316, %332 : vector<2x32xf32>
    %334 = math.tanh %333 : vector<2x32xf32>
    %cst_71 = arith.constant 1.000000e+00 : f32
    %335 = vector.broadcast %cst_71 : f32 to vector<2x32xf32>
    %336 = arith.subf %335, %331 : vector<2x32xf32>
    %337 = arith.mulf %336, %334 : vector<2x32xf32>
    %338 = arith.mulf %331, %309 : vector<2x32xf32>
    %339 = arith.addf %337, %338 : vector<2x32xf32>
    %c7_i32_72 = arith.constant 7 : i32
    %340 = vector.broadcast %c7_i32_72 : i32 to vector<2x1xi32>
    %341 = arith.cmpi sgt, %53, %340 : vector<2x1xi32>
    %342 = vector.shape_cast %341 : vector<2x1xi1> to vector<2x1xi1>
    %343 = vector.broadcast %342 : vector<2x1xi1> to vector<2x32xi1>
    %344 = arith.select %343, %339, %309 : vector<2x32xi1>, vector<2x32xf32>
    %345 = tpu.concatenate %99, %134, %169, %204, %239, %274, %309, %344 in 0 : vector<2x32xf32>, vector<2x32xf32>, vector<2x32xf32>, vector<2x32xf32>, vector<2x32xf32>, vector<2x32xf32>, vector<2x32xf32>, vector<2x32xf32> -> vector<16x32xf32>
    %c1 = arith.constant 1 : index
    %c0_73 = arith.constant 0 : index
    %c0_74 = arith.constant 0 : index
    %346 = vector.load %arg8[%c1, %c0_73, %c0_74] : memref<2x32x96xf32, #tpu.memory_space<vmem>>, vector<1x32x96xf32>
    %347 = vector.shape_cast %346 : vector<1x32x96xf32> to vector<32x96xf32>
    %c1_75 = arith.constant 1 : index
    %c0_76 = arith.constant 0 : index
    %c0_77 = arith.constant 0 : index
    %348 = vector.load %arg9[%c1_75, %c0_76, %c0_77] : memref<2x32x96xf32, #tpu.memory_space<vmem>>, vector<1x32x96xf32>
    %349 = vector.shape_cast %348 : vector<1x32x96xf32> to vector<32x96xf32>
    %c1_78 = arith.constant 1 : index
    %c0_79 = arith.constant 0 : index
    %c0_80 = arith.constant 0 : index
    %350 = vector.load %arg10[%c1_78, %c0_79, %c0_80] : memref<2x1x96xf32, #tpu.memory_space<vmem>>, vector<1x1x96xf32>
    %351 = vector.shape_cast %350 : vector<1x1x96xf32> to vector<1x96xf32>
    %c1_81 = arith.constant 1 : index
    %c0_82 = arith.constant 0 : index
    %c0_83 = arith.constant 0 : index
    %352 = vector.load %arg11[%c1_81, %c0_82, %c0_83] : memref<2x1x96xf32, #tpu.memory_space<vmem>>, vector<1x1x96xf32>
    %353 = vector.shape_cast %352 : vector<1x1x96xf32> to vector<1x96xf32>
    %cst_84 = arith.constant dense<0.000000e+00> : vector<16x96xf32>
    %354 = tpu.matmul %345, %347, %cst_84 {dimension_numbers = #tpu.dot_dimension_numbers<[1], [0], [0], [1], [0, 0, 1, 1], [], []>} : vector<16x32xf32>, vector<32x96xf32>, vector<16x96xf32> -> vector<16x96xf32>
    %355 = vector.broadcast %351 : vector<1x96xf32> to vector<16x96xf32>
    %356 = arith.addf %354, %355 : vector<16x96xf32>
    %357 = vector.extract_strided_slice %356 {offsets = [0, 0], sizes = [2, 96], strides = [1, 1]} : vector<16x96xf32> to vector<2x96xf32>
    %cst_85 = arith.constant dense<0.000000e+00> : vector<2x96xf32>
    %358 = tpu.matmul %21, %349, %cst_85 {dimension_numbers = #tpu.dot_dimension_numbers<[1], [0], [0], [1], [0, 0, 1, 1], [], []>} : vector<2x32xf32>, vector<32x96xf32>, vector<2x96xf32> -> vector<2x96xf32>
    %359 = vector.broadcast %353 : vector<1x96xf32> to vector<2x96xf32>
    %360 = arith.addf %358, %359 : vector<2x96xf32>
    %361 = vector.extract_strided_slice %357 {offsets = [0, 0], sizes = [2, 32], strides = [1, 1]} : vector<2x96xf32> to vector<2x32xf32>
    %362 = vector.extract_strided_slice %357 {offsets = [0, 32], sizes = [2, 32], strides = [1, 1]} : vector<2x96xf32> to vector<2x32xf32>
    %363 = vector.extract_strided_slice %357 {offsets = [0, 64], sizes = [2, 32], strides = [1, 1]} : vector<2x96xf32> to vector<2x32xf32>
    %364 = vector.extract_strided_slice %360 {offsets = [0, 0], sizes = [2, 32], strides = [1, 1]} : vector<2x96xf32> to vector<2x32xf32>
    %365 = vector.extract_strided_slice %360 {offsets = [0, 32], sizes = [2, 32], strides = [1, 1]} : vector<2x96xf32> to vector<2x32xf32>
    %366 = vector.extract_strided_slice %360 {offsets = [0, 64], sizes = [2, 32], strides = [1, 1]} : vector<2x96xf32> to vector<2x32xf32>
    %367 = arith.addf %361, %364 : vector<2x32xf32>
    %368 = arith.negf %367 : vector<2x32xf32>
    %369 = math.exp %368 : vector<2x32xf32>
    %cst_86 = arith.constant 1.000000e+00 : f32
    %370 = vector.broadcast %cst_86 : f32 to vector<2x32xf32>
    %371 = arith.addf %370, %369 : vector<2x32xf32>
    %372 = arith.divf %370, %371 : vector<2x32xf32>
    %373 = arith.addf %362, %365 : vector<2x32xf32>
    %374 = arith.negf %373 : vector<2x32xf32>
    %375 = math.exp %374 : vector<2x32xf32>
    %cst_87 = arith.constant 1.000000e+00 : f32
    %376 = vector.broadcast %cst_87 : f32 to vector<2x32xf32>
    %377 = arith.addf %376, %375 : vector<2x32xf32>
    %378 = arith.divf %376, %377 : vector<2x32xf32>
    %379 = arith.mulf %372, %366 : vector<2x32xf32>
    %380 = arith.addf %363, %379 : vector<2x32xf32>
    %381 = math.tanh %380 : vector<2x32xf32>
    %cst_88 = arith.constant 1.000000e+00 : f32
    %382 = vector.broadcast %cst_88 : f32 to vector<2x32xf32>
    %383 = arith.subf %382, %378 : vector<2x32xf32>
    %384 = arith.mulf %383, %381 : vector<2x32xf32>
    %385 = arith.mulf %378, %21 : vector<2x32xf32>
    %386 = arith.addf %384, %385 : vector<2x32xf32>
    %c0_i32_89 = arith.constant 0 : i32
    %387 = vector.broadcast %c0_i32_89 : i32 to vector<2x1xi32>
    %388 = arith.cmpi sgt, %53, %387 : vector<2x1xi32>
    %389 = vector.shape_cast %388 : vector<2x1xi1> to vector<2x1xi1>
    %390 = vector.broadcast %389 : vector<2x1xi1> to vector<2x32xi1>
    %391 = arith.select %390, %386, %21 : vector<2x32xi1>, vector<2x32xf32>
    %392 = vector.extract_strided_slice %356 {offsets = [2, 0], sizes = [2, 96], strides = [1, 1]} : vector<16x96xf32> to vector<2x96xf32>
    %cst_90 = arith.constant dense<0.000000e+00> : vector<2x96xf32>
    %393 = tpu.matmul %391, %349, %cst_90 {dimension_numbers = #tpu.dot_dimension_numbers<[1], [0], [0], [1], [0, 0, 1, 1], [], []>} : vector<2x32xf32>, vector<32x96xf32>, vector<2x96xf32> -> vector<2x96xf32>
    %394 = vector.broadcast %353 : vector<1x96xf32> to vector<2x96xf32>
    %395 = arith.addf %393, %394 : vector<2x96xf32>
    %396 = vector.extract_strided_slice %392 {offsets = [0, 0], sizes = [2, 32], strides = [1, 1]} : vector<2x96xf32> to vector<2x32xf32>
    %397 = vector.extract_strided_slice %392 {offsets = [0, 32], sizes = [2, 32], strides = [1, 1]} : vector<2x96xf32> to vector<2x32xf32>
    %398 = vector.extract_strided_slice %392 {offsets = [0, 64], sizes = [2, 32], strides = [1, 1]} : vector<2x96xf32> to vector<2x32xf32>
    %399 = vector.extract_strided_slice %395 {offsets = [0, 0], sizes = [2, 32], strides = [1, 1]} : vector<2x96xf32> to vector<2x32xf32>
    %400 = vector.extract_strided_slice %395 {offsets = [0, 32], sizes = [2, 32], strides = [1, 1]} : vector<2x96xf32> to vector<2x32xf32>
    %401 = vector.extract_strided_slice %395 {offsets = [0, 64], sizes = [2, 32], strides = [1, 1]} : vector<2x96xf32> to vector<2x32xf32>
    %402 = arith.addf %396, %399 : vector<2x32xf32>
    %403 = arith.negf %402 : vector<2x32xf32>
    %404 = math.exp %403 : vector<2x32xf32>
    %cst_91 = arith.constant 1.000000e+00 : f32
    %405 = vector.broadcast %cst_91 : f32 to vector<2x32xf32>
    %406 = arith.addf %405, %404 : vector<2x32xf32>
    %407 = arith.divf %405, %406 : vector<2x32xf32>
    %408 = arith.addf %397, %400 : vector<2x32xf32>
    %409 = arith.negf %408 : vector<2x32xf32>
    %410 = math.exp %409 : vector<2x32xf32>
    %cst_92 = arith.constant 1.000000e+00 : f32
    %411 = vector.broadcast %cst_92 : f32 to vector<2x32xf32>
    %412 = arith.addf %411, %410 : vector<2x32xf32>
    %413 = arith.divf %411, %412 : vector<2x32xf32>
    %414 = arith.mulf %407, %401 : vector<2x32xf32>
    %415 = arith.addf %398, %414 : vector<2x32xf32>
    %416 = math.tanh %415 : vector<2x32xf32>
    %cst_93 = arith.constant 1.000000e+00 : f32
    %417 = vector.broadcast %cst_93 : f32 to vector<2x32xf32>
    %418 = arith.subf %417, %413 : vector<2x32xf32>
    %419 = arith.mulf %418, %416 : vector<2x32xf32>
    %420 = arith.mulf %413, %391 : vector<2x32xf32>
    %421 = arith.addf %419, %420 : vector<2x32xf32>
    %c1_i32_94 = arith.constant 1 : i32
    %422 = vector.broadcast %c1_i32_94 : i32 to vector<2x1xi32>
    %423 = arith.cmpi sgt, %53, %422 : vector<2x1xi32>
    %424 = vector.shape_cast %423 : vector<2x1xi1> to vector<2x1xi1>
    %425 = vector.broadcast %424 : vector<2x1xi1> to vector<2x32xi1>
    %426 = arith.select %425, %421, %391 : vector<2x32xi1>, vector<2x32xf32>
    %427 = vector.extract_strided_slice %356 {offsets = [4, 0], sizes = [2, 96], strides = [1, 1]} : vector<16x96xf32> to vector<2x96xf32>
    %cst_95 = arith.constant dense<0.000000e+00> : vector<2x96xf32>
    %428 = tpu.matmul %426, %349, %cst_95 {dimension_numbers = #tpu.dot_dimension_numbers<[1], [0], [0], [1], [0, 0, 1, 1], [], []>} : vector<2x32xf32>, vector<32x96xf32>, vector<2x96xf32> -> vector<2x96xf32>
    %429 = vector.broadcast %353 : vector<1x96xf32> to vector<2x96xf32>
    %430 = arith.addf %428, %429 : vector<2x96xf32>
    %431 = vector.extract_strided_slice %427 {offsets = [0, 0], sizes = [2, 32], strides = [1, 1]} : vector<2x96xf32> to vector<2x32xf32>
    %432 = vector.extract_strided_slice %427 {offsets = [0, 32], sizes = [2, 32], strides = [1, 1]} : vector<2x96xf32> to vector<2x32xf32>
    %433 = vector.extract_strided_slice %427 {offsets = [0, 64], sizes = [2, 32], strides = [1, 1]} : vector<2x96xf32> to vector<2x32xf32>
    %434 = vector.extract_strided_slice %430 {offsets = [0, 0], sizes = [2, 32], strides = [1, 1]} : vector<2x96xf32> to vector<2x32xf32>
    %435 = vector.extract_strided_slice %430 {offsets = [0, 32], sizes = [2, 32], strides = [1, 1]} : vector<2x96xf32> to vector<2x32xf32>
    %436 = vector.extract_strided_slice %430 {offsets = [0, 64], sizes = [2, 32], strides = [1, 1]} : vector<2x96xf32> to vector<2x32xf32>
    %437 = arith.addf %431, %434 : vector<2x32xf32>
    %438 = arith.negf %437 : vector<2x32xf32>
    %439 = math.exp %438 : vector<2x32xf32>
    %cst_96 = arith.constant 1.000000e+00 : f32
    %440 = vector.broadcast %cst_96 : f32 to vector<2x32xf32>
    %441 = arith.addf %440, %439 : vector<2x32xf32>
    %442 = arith.divf %440, %441 : vector<2x32xf32>
    %443 = arith.addf %432, %435 : vector<2x32xf32>
    %444 = arith.negf %443 : vector<2x32xf32>
    %445 = math.exp %444 : vector<2x32xf32>
    %cst_97 = arith.constant 1.000000e+00 : f32
    %446 = vector.broadcast %cst_97 : f32 to vector<2x32xf32>
    %447 = arith.addf %446, %445 : vector<2x32xf32>
    %448 = arith.divf %446, %447 : vector<2x32xf32>
    %449 = arith.mulf %442, %436 : vector<2x32xf32>
    %450 = arith.addf %433, %449 : vector<2x32xf32>
    %451 = math.tanh %450 : vector<2x32xf32>
    %cst_98 = arith.constant 1.000000e+00 : f32
    %452 = vector.broadcast %cst_98 : f32 to vector<2x32xf32>
    %453 = arith.subf %452, %448 : vector<2x32xf32>
    %454 = arith.mulf %453, %451 : vector<2x32xf32>
    %455 = arith.mulf %448, %426 : vector<2x32xf32>
    %456 = arith.addf %454, %455 : vector<2x32xf32>
    %c2_i32_99 = arith.constant 2 : i32
    %457 = vector.broadcast %c2_i32_99 : i32 to vector<2x1xi32>
    %458 = arith.cmpi sgt, %53, %457 : vector<2x1xi32>
    %459 = vector.shape_cast %458 : vector<2x1xi1> to vector<2x1xi1>
    %460 = vector.broadcast %459 : vector<2x1xi1> to vector<2x32xi1>
    %461 = arith.select %460, %456, %426 : vector<2x32xi1>, vector<2x32xf32>
    %462 = vector.extract_strided_slice %356 {offsets = [6, 0], sizes = [2, 96], strides = [1, 1]} : vector<16x96xf32> to vector<2x96xf32>
    %cst_100 = arith.constant dense<0.000000e+00> : vector<2x96xf32>
    %463 = tpu.matmul %461, %349, %cst_100 {dimension_numbers = #tpu.dot_dimension_numbers<[1], [0], [0], [1], [0, 0, 1, 1], [], []>} : vector<2x32xf32>, vector<32x96xf32>, vector<2x96xf32> -> vector<2x96xf32>
    %464 = vector.broadcast %353 : vector<1x96xf32> to vector<2x96xf32>
    %465 = arith.addf %463, %464 : vector<2x96xf32>
    %466 = vector.extract_strided_slice %462 {offsets = [0, 0], sizes = [2, 32], strides = [1, 1]} : vector<2x96xf32> to vector<2x32xf32>
    %467 = vector.extract_strided_slice %462 {offsets = [0, 32], sizes = [2, 32], strides = [1, 1]} : vector<2x96xf32> to vector<2x32xf32>
    %468 = vector.extract_strided_slice %462 {offsets = [0, 64], sizes = [2, 32], strides = [1, 1]} : vector<2x96xf32> to vector<2x32xf32>
    %469 = vector.extract_strided_slice %465 {offsets = [0, 0], sizes = [2, 32], strides = [1, 1]} : vector<2x96xf32> to vector<2x32xf32>
    %470 = vector.extract_strided_slice %465 {offsets = [0, 32], sizes = [2, 32], strides = [1, 1]} : vector<2x96xf32> to vector<2x32xf32>
    %471 = vector.extract_strided_slice %465 {offsets = [0, 64], sizes = [2, 32], strides = [1, 1]} : vector<2x96xf32> to vector<2x32xf32>
    %472 = arith.addf %466, %469 : vector<2x32xf32>
    %473 = arith.negf %472 : vector<2x32xf32>
    %474 = math.exp %473 : vector<2x32xf32>
    %cst_101 = arith.constant 1.000000e+00 : f32
    %475 = vector.broadcast %cst_101 : f32 to vector<2x32xf32>
    %476 = arith.addf %475, %474 : vector<2x32xf32>
    %477 = arith.divf %475, %476 : vector<2x32xf32>
    %478 = arith.addf %467, %470 : vector<2x32xf32>
    %479 = arith.negf %478 : vector<2x32xf32>
    %480 = math.exp %479 : vector<2x32xf32>
    %cst_102 = arith.constant 1.000000e+00 : f32
    %481 = vector.broadcast %cst_102 : f32 to vector<2x32xf32>
    %482 = arith.addf %481, %480 : vector<2x32xf32>
    %483 = arith.divf %481, %482 : vector<2x32xf32>
    %484 = arith.mulf %477, %471 : vector<2x32xf32>
    %485 = arith.addf %468, %484 : vector<2x32xf32>
    %486 = math.tanh %485 : vector<2x32xf32>
    %cst_103 = arith.constant 1.000000e+00 : f32
    %487 = vector.broadcast %cst_103 : f32 to vector<2x32xf32>
    %488 = arith.subf %487, %483 : vector<2x32xf32>
    %489 = arith.mulf %488, %486 : vector<2x32xf32>
    %490 = arith.mulf %483, %461 : vector<2x32xf32>
    %491 = arith.addf %489, %490 : vector<2x32xf32>
    %c3_i32_104 = arith.constant 3 : i32
    %492 = vector.broadcast %c3_i32_104 : i32 to vector<2x1xi32>
    %493 = arith.cmpi sgt, %53, %492 : vector<2x1xi32>
    %494 = vector.shape_cast %493 : vector<2x1xi1> to vector<2x1xi1>
    %495 = vector.broadcast %494 : vector<2x1xi1> to vector<2x32xi1>
    %496 = arith.select %495, %491, %461 : vector<2x32xi1>, vector<2x32xf32>
    %497 = vector.extract_strided_slice %356 {offsets = [8, 0], sizes = [2, 96], strides = [1, 1]} : vector<16x96xf32> to vector<2x96xf32>
    %cst_105 = arith.constant dense<0.000000e+00> : vector<2x96xf32>
    %498 = tpu.matmul %496, %349, %cst_105 {dimension_numbers = #tpu.dot_dimension_numbers<[1], [0], [0], [1], [0, 0, 1, 1], [], []>} : vector<2x32xf32>, vector<32x96xf32>, vector<2x96xf32> -> vector<2x96xf32>
    %499 = vector.broadcast %353 : vector<1x96xf32> to vector<2x96xf32>
    %500 = arith.addf %498, %499 : vector<2x96xf32>
    %501 = vector.extract_strided_slice %497 {offsets = [0, 0], sizes = [2, 32], strides = [1, 1]} : vector<2x96xf32> to vector<2x32xf32>
    %502 = vector.extract_strided_slice %497 {offsets = [0, 32], sizes = [2, 32], strides = [1, 1]} : vector<2x96xf32> to vector<2x32xf32>
    %503 = vector.extract_strided_slice %497 {offsets = [0, 64], sizes = [2, 32], strides = [1, 1]} : vector<2x96xf32> to vector<2x32xf32>
    %504 = vector.extract_strided_slice %500 {offsets = [0, 0], sizes = [2, 32], strides = [1, 1]} : vector<2x96xf32> to vector<2x32xf32>
    %505 = vector.extract_strided_slice %500 {offsets = [0, 32], sizes = [2, 32], strides = [1, 1]} : vector<2x96xf32> to vector<2x32xf32>
    %506 = vector.extract_strided_slice %500 {offsets = [0, 64], sizes = [2, 32], strides = [1, 1]} : vector<2x96xf32> to vector<2x32xf32>
    %507 = arith.addf %501, %504 : vector<2x32xf32>
    %508 = arith.negf %507 : vector<2x32xf32>
    %509 = math.exp %508 : vector<2x32xf32>
    %cst_106 = arith.constant 1.000000e+00 : f32
    %510 = vector.broadcast %cst_106 : f32 to vector<2x32xf32>
    %511 = arith.addf %510, %509 : vector<2x32xf32>
    %512 = arith.divf %510, %511 : vector<2x32xf32>
    %513 = arith.addf %502, %505 : vector<2x32xf32>
    %514 = arith.negf %513 : vector<2x32xf32>
    %515 = math.exp %514 : vector<2x32xf32>
    %cst_107 = arith.constant 1.000000e+00 : f32
    %516 = vector.broadcast %cst_107 : f32 to vector<2x32xf32>
    %517 = arith.addf %516, %515 : vector<2x32xf32>
    %518 = arith.divf %516, %517 : vector<2x32xf32>
    %519 = arith.mulf %512, %506 : vector<2x32xf32>
    %520 = arith.addf %503, %519 : vector<2x32xf32>
    %521 = math.tanh %520 : vector<2x32xf32>
    %cst_108 = arith.constant 1.000000e+00 : f32
    %522 = vector.broadcast %cst_108 : f32 to vector<2x32xf32>
    %523 = arith.subf %522, %518 : vector<2x32xf32>
    %524 = arith.mulf %523, %521 : vector<2x32xf32>
    %525 = arith.mulf %518, %496 : vector<2x32xf32>
    %526 = arith.addf %524, %525 : vector<2x32xf32>
    %c4_i32_109 = arith.constant 4 : i32
    %527 = vector.broadcast %c4_i32_109 : i32 to vector<2x1xi32>
    %528 = arith.cmpi sgt, %53, %527 : vector<2x1xi32>
    %529 = vector.shape_cast %528 : vector<2x1xi1> to vector<2x1xi1>
    %530 = vector.broadcast %529 : vector<2x1xi1> to vector<2x32xi1>
    %531 = arith.select %530, %526, %496 : vector<2x32xi1>, vector<2x32xf32>
    %532 = vector.extract_strided_slice %356 {offsets = [10, 0], sizes = [2, 96], strides = [1, 1]} : vector<16x96xf32> to vector<2x96xf32>
    %cst_110 = arith.constant dense<0.000000e+00> : vector<2x96xf32>
    %533 = tpu.matmul %531, %349, %cst_110 {dimension_numbers = #tpu.dot_dimension_numbers<[1], [0], [0], [1], [0, 0, 1, 1], [], []>} : vector<2x32xf32>, vector<32x96xf32>, vector<2x96xf32> -> vector<2x96xf32>
    %534 = vector.broadcast %353 : vector<1x96xf32> to vector<2x96xf32>
    %535 = arith.addf %533, %534 : vector<2x96xf32>
    %536 = vector.extract_strided_slice %532 {offsets = [0, 0], sizes = [2, 32], strides = [1, 1]} : vector<2x96xf32> to vector<2x32xf32>
    %537 = vector.extract_strided_slice %532 {offsets = [0, 32], sizes = [2, 32], strides = [1, 1]} : vector<2x96xf32> to vector<2x32xf32>
    %538 = vector.extract_strided_slice %532 {offsets = [0, 64], sizes = [2, 32], strides = [1, 1]} : vector<2x96xf32> to vector<2x32xf32>
    %539 = vector.extract_strided_slice %535 {offsets = [0, 0], sizes = [2, 32], strides = [1, 1]} : vector<2x96xf32> to vector<2x32xf32>
    %540 = vector.extract_strided_slice %535 {offsets = [0, 32], sizes = [2, 32], strides = [1, 1]} : vector<2x96xf32> to vector<2x32xf32>
    %541 = vector.extract_strided_slice %535 {offsets = [0, 64], sizes = [2, 32], strides = [1, 1]} : vector<2x96xf32> to vector<2x32xf32>
    %542 = arith.addf %536, %539 : vector<2x32xf32>
    %543 = arith.negf %542 : vector<2x32xf32>
    %544 = math.exp %543 : vector<2x32xf32>
    %cst_111 = arith.constant 1.000000e+00 : f32
    %545 = vector.broadcast %cst_111 : f32 to vector<2x32xf32>
    %546 = arith.addf %545, %544 : vector<2x32xf32>
    %547 = arith.divf %545, %546 : vector<2x32xf32>
    %548 = arith.addf %537, %540 : vector<2x32xf32>
    %549 = arith.negf %548 : vector<2x32xf32>
    %550 = math.exp %549 : vector<2x32xf32>
    %cst_112 = arith.constant 1.000000e+00 : f32
    %551 = vector.broadcast %cst_112 : f32 to vector<2x32xf32>
    %552 = arith.addf %551, %550 : vector<2x32xf32>
    %553 = arith.divf %551, %552 : vector<2x32xf32>
    %554 = arith.mulf %547, %541 : vector<2x32xf32>
    %555 = arith.addf %538, %554 : vector<2x32xf32>
    %556 = math.tanh %555 : vector<2x32xf32>
    %cst_113 = arith.constant 1.000000e+00 : f32
    %557 = vector.broadcast %cst_113 : f32 to vector<2x32xf32>
    %558 = arith.subf %557, %553 : vector<2x32xf32>
    %559 = arith.mulf %558, %556 : vector<2x32xf32>
    %560 = arith.mulf %553, %531 : vector<2x32xf32>
    %561 = arith.addf %559, %560 : vector<2x32xf32>
    %c5_i32_114 = arith.constant 5 : i32
    %562 = vector.broadcast %c5_i32_114 : i32 to vector<2x1xi32>
    %563 = arith.cmpi sgt, %53, %562 : vector<2x1xi32>
    %564 = vector.shape_cast %563 : vector<2x1xi1> to vector<2x1xi1>
    %565 = vector.broadcast %564 : vector<2x1xi1> to vector<2x32xi1>
    %566 = arith.select %565, %561, %531 : vector<2x32xi1>, vector<2x32xf32>
    %567 = vector.extract_strided_slice %356 {offsets = [12, 0], sizes = [2, 96], strides = [1, 1]} : vector<16x96xf32> to vector<2x96xf32>
    %cst_115 = arith.constant dense<0.000000e+00> : vector<2x96xf32>
    %568 = tpu.matmul %566, %349, %cst_115 {dimension_numbers = #tpu.dot_dimension_numbers<[1], [0], [0], [1], [0, 0, 1, 1], [], []>} : vector<2x32xf32>, vector<32x96xf32>, vector<2x96xf32> -> vector<2x96xf32>
    %569 = vector.broadcast %353 : vector<1x96xf32> to vector<2x96xf32>
    %570 = arith.addf %568, %569 : vector<2x96xf32>
    %571 = vector.extract_strided_slice %567 {offsets = [0, 0], sizes = [2, 32], strides = [1, 1]} : vector<2x96xf32> to vector<2x32xf32>
    %572 = vector.extract_strided_slice %567 {offsets = [0, 32], sizes = [2, 32], strides = [1, 1]} : vector<2x96xf32> to vector<2x32xf32>
    %573 = vector.extract_strided_slice %567 {offsets = [0, 64], sizes = [2, 32], strides = [1, 1]} : vector<2x96xf32> to vector<2x32xf32>
    %574 = vector.extract_strided_slice %570 {offsets = [0, 0], sizes = [2, 32], strides = [1, 1]} : vector<2x96xf32> to vector<2x32xf32>
    %575 = vector.extract_strided_slice %570 {offsets = [0, 32], sizes = [2, 32], strides = [1, 1]} : vector<2x96xf32> to vector<2x32xf32>
    %576 = vector.extract_strided_slice %570 {offsets = [0, 64], sizes = [2, 32], strides = [1, 1]} : vector<2x96xf32> to vector<2x32xf32>
    %577 = arith.addf %571, %574 : vector<2x32xf32>
    %578 = arith.negf %577 : vector<2x32xf32>
    %579 = math.exp %578 : vector<2x32xf32>
    %cst_116 = arith.constant 1.000000e+00 : f32
    %580 = vector.broadcast %cst_116 : f32 to vector<2x32xf32>
    %581 = arith.addf %580, %579 : vector<2x32xf32>
    %582 = arith.divf %580, %581 : vector<2x32xf32>
    %583 = arith.addf %572, %575 : vector<2x32xf32>
    %584 = arith.negf %583 : vector<2x32xf32>
    %585 = math.exp %584 : vector<2x32xf32>
    %cst_117 = arith.constant 1.000000e+00 : f32
    %586 = vector.broadcast %cst_117 : f32 to vector<2x32xf32>
    %587 = arith.addf %586, %585 : vector<2x32xf32>
    %588 = arith.divf %586, %587 : vector<2x32xf32>
    %589 = arith.mulf %582, %576 : vector<2x32xf32>
    %590 = arith.addf %573, %589 : vector<2x32xf32>
    %591 = math.tanh %590 : vector<2x32xf32>
    %cst_118 = arith.constant 1.000000e+00 : f32
    %592 = vector.broadcast %cst_118 : f32 to vector<2x32xf32>
    %593 = arith.subf %592, %588 : vector<2x32xf32>
    %594 = arith.mulf %593, %591 : vector<2x32xf32>
    %595 = arith.mulf %588, %566 : vector<2x32xf32>
    %596 = arith.addf %594, %595 : vector<2x32xf32>
    %c6_i32_119 = arith.constant 6 : i32
    %597 = vector.broadcast %c6_i32_119 : i32 to vector<2x1xi32>
    %598 = arith.cmpi sgt, %53, %597 : vector<2x1xi32>
    %599 = vector.shape_cast %598 : vector<2x1xi1> to vector<2x1xi1>
    %600 = vector.broadcast %599 : vector<2x1xi1> to vector<2x32xi1>
    %601 = arith.select %600, %596, %566 : vector<2x32xi1>, vector<2x32xf32>
    %602 = vector.extract_strided_slice %356 {offsets = [14, 0], sizes = [2, 96], strides = [1, 1]} : vector<16x96xf32> to vector<2x96xf32>
    %cst_120 = arith.constant dense<0.000000e+00> : vector<2x96xf32>
    %603 = tpu.matmul %601, %349, %cst_120 {dimension_numbers = #tpu.dot_dimension_numbers<[1], [0], [0], [1], [0, 0, 1, 1], [], []>} : vector<2x32xf32>, vector<32x96xf32>, vector<2x96xf32> -> vector<2x96xf32>
    %604 = vector.broadcast %353 : vector<1x96xf32> to vector<2x96xf32>
    %605 = arith.addf %603, %604 : vector<2x96xf32>
    %606 = vector.extract_strided_slice %602 {offsets = [0, 0], sizes = [2, 32], strides = [1, 1]} : vector<2x96xf32> to vector<2x32xf32>
    %607 = vector.extract_strided_slice %602 {offsets = [0, 32], sizes = [2, 32], strides = [1, 1]} : vector<2x96xf32> to vector<2x32xf32>
    %608 = vector.extract_strided_slice %602 {offsets = [0, 64], sizes = [2, 32], strides = [1, 1]} : vector<2x96xf32> to vector<2x32xf32>
    %609 = vector.extract_strided_slice %605 {offsets = [0, 0], sizes = [2, 32], strides = [1, 1]} : vector<2x96xf32> to vector<2x32xf32>
    %610 = vector.extract_strided_slice %605 {offsets = [0, 32], sizes = [2, 32], strides = [1, 1]} : vector<2x96xf32> to vector<2x32xf32>
    %611 = vector.extract_strided_slice %605 {offsets = [0, 64], sizes = [2, 32], strides = [1, 1]} : vector<2x96xf32> to vector<2x32xf32>
    %612 = arith.addf %606, %609 : vector<2x32xf32>
    %613 = arith.negf %612 : vector<2x32xf32>
    %614 = math.exp %613 : vector<2x32xf32>
    %cst_121 = arith.constant 1.000000e+00 : f32
    %615 = vector.broadcast %cst_121 : f32 to vector<2x32xf32>
    %616 = arith.addf %615, %614 : vector<2x32xf32>
    %617 = arith.divf %615, %616 : vector<2x32xf32>
    %618 = arith.addf %607, %610 : vector<2x32xf32>
    %619 = arith.negf %618 : vector<2x32xf32>
    %620 = math.exp %619 : vector<2x32xf32>
    %cst_122 = arith.constant 1.000000e+00 : f32
    %621 = vector.broadcast %cst_122 : f32 to vector<2x32xf32>
    %622 = arith.addf %621, %620 : vector<2x32xf32>
    %623 = arith.divf %621, %622 : vector<2x32xf32>
    %624 = arith.mulf %617, %611 : vector<2x32xf32>
    %625 = arith.addf %608, %624 : vector<2x32xf32>
    %626 = math.tanh %625 : vector<2x32xf32>
    %cst_123 = arith.constant 1.000000e+00 : f32
    %627 = vector.broadcast %cst_123 : f32 to vector<2x32xf32>
    %628 = arith.subf %627, %623 : vector<2x32xf32>
    %629 = arith.mulf %628, %626 : vector<2x32xf32>
    %630 = arith.mulf %623, %601 : vector<2x32xf32>
    %631 = arith.addf %629, %630 : vector<2x32xf32>
    %c7_i32_124 = arith.constant 7 : i32
    %632 = vector.broadcast %c7_i32_124 : i32 to vector<2x1xi32>
    %633 = arith.cmpi sgt, %53, %632 : vector<2x1xi32>
    %634 = vector.shape_cast %633 : vector<2x1xi1> to vector<2x1xi1>
    %635 = vector.broadcast %634 : vector<2x1xi1> to vector<2x32xi1>
    %636 = arith.select %635, %631, %601 : vector<2x32xi1>, vector<2x32xf32>
    %637 = tpu.concatenate %391, %426, %461, %496, %531, %566, %601, %636 in 0 : vector<2x32xf32>, vector<2x32xf32>, vector<2x32xf32>, vector<2x32xf32>, vector<2x32xf32>, vector<2x32xf32>, vector<2x32xf32>, vector<2x32xf32> -> vector<16x32xf32>
    %cst_125 = arith.constant dense<0.000000e+00> : vector<16x32xf32>
    %638 = tpu.matmul %51, %637, %cst_125 {dimension_numbers = #tpu.dot_dimension_numbers<[1], [0], [0], [1], [0, 0, 1, 1], [], []>} : vector<16x16xf32>, vector<16x32xf32>, vector<16x32xf32> -> vector<16x32xf32>
    %c0_126 = arith.constant 0 : index
    %c0_127 = arith.constant 0 : index
    %639 = vector.load %arg12[%c0_126, %c0_127] : memref<32x64xf32, #tpu.memory_space<vmem>>, vector<32x64xf32>
    %cst_128 = arith.constant dense<0.000000e+00> : vector<16x64xf32>
    %640 = tpu.matmul %638, %639, %cst_128 {dimension_numbers = #tpu.dot_dimension_numbers<[1], [0], [0], [1], [0, 0, 1, 1], [], []>} : vector<16x32xf32>, vector<32x64xf32>, vector<16x64xf32> -> vector<16x64xf32>
    %c0_129 = arith.constant 0 : index
    %c0_130 = arith.constant 0 : index
    %641 = vector.load %arg13[%c0_129, %c0_130] : memref<1x64xf32, #tpu.memory_space<vmem>>, vector<1x64xf32>
    %642 = vector.broadcast %641 : vector<1x64xf32> to vector<16x64xf32>
    %643 = arith.addf %640, %642 : vector<16x64xf32>
    %c0_131 = arith.constant 0 : index
    %c0_132 = arith.constant 0 : index
    %644 = vector.load %arg15[%c0_131, %c0_132] : memref<16x64xf32, #tpu.memory_space<vmem>>, vector<16x64xf32>
    tpu.vector_store %arg15[%c0_131, %c0_132], %643 {strides = array<i32>} : memref<16x64xf32, #tpu.memory_space<vmem>>, vector<16x64xf32>,
    %cst_133 = arith.constant dense<0xFF800000> : vector<16xf32>
    %645 = vector.multi_reduction <maximumf>, %643, %cst_133 [1] : vector<16x64xf32> to vector<16xf32>
    %646 = vector.shape_cast %645 : vector<16xf32> to vector<16x1xf32>
    %647 = vector.broadcast %646 : vector<16x1xf32> to vector<16x64xf32>
    %648 = arith.subf %643, %647 : vector<16x64xf32>
    %649 = math.exp %648 : vector<16x64xf32>
    %cst_134 = arith.constant dense<0.000000e+00> : vector<16xf32>
    %650 = vector.multi_reduction <add>, %649, %cst_134 [1] : vector<16x64xf32> to vector<16xf32>
    %651 = vector.shape_cast %650 : vector<16xf32> to vector<16x1xf32>
    %652 = math.log %651 : vector<16x1xf32>
    %653 = arith.addf %646, %652 : vector<16x1xf32>
    %c0_135 = arith.constant 0 : index
    %c0_136 = arith.constant 0 : index
    %654 = vector.load %arg14[%c0_135, %c0_136] : memref<16x1xi32, #tpu.memory_space<vmem>>, vector<16x1xi32>
    %655 = vector.broadcast %654 : vector<16x1xi32> to vector<16x64xi32>
    %656 = arith.cmpi eq, %23, %655 : vector<16x64xi32>
    %cst_137 = arith.constant 0.000000e+00 : f32
    %657 = vector.broadcast %cst_137 : f32 to vector<16x64xf32>
    %658 = arith.select %656, %643, %657 : vector<16x64xi1>, vector<16x64xf32>
    %cst_138 = arith.constant dense<0.000000e+00> : vector<16xf32>
    %659 = vector.multi_reduction <add>, %658, %cst_138 [1] : vector<16x64xf32> to vector<16xf32>
    %660 = vector.shape_cast %659 : vector<16xf32> to vector<16x1xf32>
    %661 = arith.subf %653, %660 : vector<16x1xf32>
    %662 = vector.shape_cast %661 : vector<16x1xf32> to vector<1x16x1xf32>
    %cst_139 = arith.constant dense<0.000000e+00> : vector<1xf32>
    %663 = vector.multi_reduction <add>, %662, %cst_139 [1, 2] : vector<1x16x1xf32> to vector<1xf32>
    %664 = vector.shape_cast %663 : vector<1xf32> to vector<1x1x1xf32>
    %665 = vector.extract %664[0, 0, 0] : f32 from vector<1x1x1xf32>
    %cst_140 = arith.constant 1.600000e+01 : f32
    %666 = arith.divf %665, %cst_140 : f32
    %667 = vector.broadcast %666 : f32 to vector<1x1xf32>
    %c0_141 = arith.constant 0 : index
    %c0_142 = arith.constant 0 : index
    %668 = vector.load %arg16[%c0_141, %c0_142] : memref<1x1xf32, #tpu.memory_space<vmem>>, vector<1x1xf32>
    tpu.vector_store %arg16[%c0_141, %c0_142], %667 {strides = array<i32>} : memref<1x1xf32, #tpu.memory_space<vmem>>, vector<1x1xf32>,
    %669 = vector.broadcast %646 : vector<16x1xf32> to vector<16x64xf32>
    %670 = arith.cmpf oeq, %643, %669 : vector<16x64xf32>
    %c64_i32 = arith.constant 64 : i32
    %671 = vector.broadcast %c64_i32 : i32 to vector<16x64xi32>
    %672 = arith.select %670, %23, %671 : vector<16x64xi1>, vector<16x64xi32>
    %cst_143 = arith.constant dense<2147483647> : vector<16xi32>
    %673 = vector.multi_reduction <minsi>, %672, %cst_143 [1] : vector<16x64xi32> to vector<16xi32>
    %674 = vector.shape_cast %673 : vector<16xi32> to vector<16x1xi32>
    %675 = arith.cmpi eq, %674, %654 : vector<16x1xi32>
    %676 = arith.extui %675 : vector<16x1xi1> to vector<16x1xi32>
    %677 = vector.shape_cast %676 : vector<16x1xi32> to vector<1x16x1xi32>
    %cst_144 = arith.constant dense<0> : vector<1xi32>
    %678 = vector.multi_reduction <add>, %677, %cst_144 [1, 2] : vector<1x16x1xi32> to vector<1xi32>
    %679 = vector.shape_cast %678 : vector<1xi32> to vector<1x1x1xi32>
    %680 = vector.extract %679[0, 0, 0] : i32 from vector<1x1x1xi32>
    %681 = vector.broadcast %680 : i32 to vector<1x1xi32>
    %c0_145 = arith.constant 0 : index
    %c0_146 = arith.constant 0 : index
    %682 = vector.load %arg17[%c0_145, %c0_146] : memref<1x1xi32, #tpu.memory_space<vmem>>, vector<1x1xi32>
    tpu.vector_store %arg17[%c0_145, %c0_146], %681 {strides = array<i32>} : memref<1x1xi32, #tpu.memory_space<vmem>>, vector<1x1xi32>,
    return
  }
}

</mosaic_0001>

<bundles_post_ra>
// kernel: encoder_decoder_forward.1
= control target key start
LH: loop header
LB: loop body
LE: loop exit
PB: predicated region body
PF: predicated region fallthrough
CT: control target
= control target key end

     0   :  { %s5860_s0 = inlined_call_operand.vmem [shape: f32[512,36], index: 0, kind: input, shape index: {}]   ;;  %s5861_s1 = inlined_call_operand.vmem [shape: f32[36,8], index: 1, kind: input, shape index: {}]   ;;  %s5862_s2 = inlined_call_operand.vmem [shape: f32[1,8], index: 2, kind: input, shape index: {}]   ;;  %s5863_s3 = inlined_call_operand.vmem [shape: f32[8,32], index: 3, kind: input, shape index: {}]   ;;  %s5864_s4 = inlined_call_operand.vmem [shape: f32[1,32], index: 4, kind: input, shape index: {}]   ;;  %s5865_s5 = inlined_call_operand.vmem [shape: f32[64,32], index: 5, kind: input, shape index: {}]   ;;  %s5866_s6 = inlined_call_operand.vmem [shape: s32[16,1], index: 6, kind: input, shape index: {}]   ;;  %s5867_s7 = inlined_call_operand.vmem [shape: s32[2,1], index: 7, kind: input, shape index: {}]   ;;  %s5868_s8 = inlined_call_operand.vmem [shape: f32[2,32,96], index: 8, kind: input, shape index: {}]   ;;  %s5869_s9 = inlined_call_operand.vmem [shape: f32[2,32,96], index: 9, kind: input, shape index: {}]   ;;  %s5870_s10 = inlined_call_operand.vmem [shape: f32[2,1,96], index: 10, kind: input, shape index: {}]   ;;  %s5871_s11 = inlined_call_operand.vmem [shape: f32[2,1,96], index: 11, kind: input, shape index: {}]   ;;  %s5872_s12 = inlined_call_operand.vmem [shape: f32[32,64], index: 12, kind: input, shape index: {}]   ;;  %s5873_s13 = inlined_call_operand.vmem [shape: f32[1,64], index: 13, kind: input, shape index: {}]   ;;  %s5874_s14 = inlined_call_operand.vmem [shape: s32[16,1], index: 14, kind: input, shape index: {}]   ;;  %s5875_s15 = inlined_call_operand.hbm [shape: f32[16,64], index: 15, kind: output, shape index: {0}]   ;;  %s5876_s16 = inlined_call_operand.hbm [shape: f32[1,1], index: 16, kind: output, shape index: {1}]   ;;  %s5877_s17 = inlined_call_operand.hbm [shape: s32[1,1], index: 17, kind: output, shape index: {2}]  }
   0x1   :  { %5880 = sst [smem:[#allocation9_spill]] %s5860_s0 }
   0x2   :  { %5881 = sst [smem:[#allocation10_spill]] %s5861_s1 }
   0x3   :  { %23 = vsyncpa [#allocation3], 0  ;;  %s5882_s26 = sld [smem:[#allocation10_spill]]  ;;  %vm324_vm0 = vcmask 1043456   ;;  %vm131_vm1 = vcmask 293888  }
   0x4   :  { %s5883_s30 = sld [smem:[#allocation9_spill]] }
   0x9   :  { %v123_v0 = vld [vmem:[%s5882_s26 + $0x20] sm:$0xf]  ;;  %v122_v1 = vld [vmem:[%s5882_s26 + $0x18] sm:$0xff]  ;;  %v121_v3 = vld [vmem:[%s5882_s26 + $0x10] sm:$0xff] }
   0xa   :  { %4048 = vmatprep.subr.msk.mxu0 %vm324_vm0, %v123_v0  ;;  %v55_v2 = vld [vmem:[%s5883_s30] sm:$0xff]  ;;  %v120_v4 = vld [vmem:[%s5882_s26 + $0x8] sm:$0xff]  ;;  %v57_v7 = vld [vmem:[%s5883_s30 + $0x10] sm:$0xff] }
   0xb   :  { %4049 = vmatpush3.msk.msra.mxu0 %vm324_vm0, %v123_v0  ;;  %4058 = vmatprep.mubr.msk.f32.mxu0 %vm131_vm1, %v55_v2  ;;  %v119_v5 = vld [vmem:[%s5882_s26] sm:$0xff]  ;;  %v56_v6 = vld [vmem:[%s5883_s30 + $0x8] sm:$0xff]  ;;  %v58_v8 = vld [vmem:[%s5883_s30 + $0x18] sm:$0xff] }
   0xc   :  { %4050 = vmatprep.subr.mxu0 %v122_v1  ;;  %v59_v9 = vld [vmem:[%s5883_s30 + $0x20] sm:$0xff]  ;;  %v60_v10 = vld [vmem:[%s5883_s30 + $0x28] sm:$0xff]  ;;  %v61_v11 = vld [vmem:[%s5883_s30 + $0x30] sm:$0xff] }
   0xd   :  { %4051 = vmatpush3.msra.mxu0 %v122_v1  ;;  %v62_v12 = vld [vmem:[%s5883_s30 + $0x38] sm:$0xff]  ;;  %v63_v13 = vld [vmem:[%s5883_s30 + $0x40] sm:$0xff] }
   0xe   :  { %4052 = vmatprep.subr.mxu0 %v121_v3 }
   0xf   :  { %4053 = vmatpush3.msra.mxu0 %v121_v3 }
  0x10   :  { %4054 = vmatprep.subr.mxu0 %v120_v4 }
  0x11   :  { %4055 = vmatpush3.msra.mxu0 %v120_v4 }
  0x12   :  { %4056 = vmatprep.subr.mxu0 %v119_v5 }
  0x13   :  { %4057 = vmatpush3.msra.mxu0 %v119_v5 }
  0x14   :  { %4059 = vmatmul.mubr.msk.f32.vlgmr.msra.gmra.mxu0 %vm131_vm1, %v56_v6 }
  0x15   :  { %4061 = vmatprep.mubr.msk.f32.mxu0 %vm131_vm1, %v57_v7 }
  0x18   :  { %4062 = vmatmul.mubr.msk.f32.gmra.mxu0 %vm131_vm1, %v58_v8 }
  0x19   :  { %4064 = vmatprep.mubr.msk.f32.mxu0 %vm131_vm1, %v59_v9 }
  0x1c   :  { %4065 = vmatmul.mubr.msk.f32.gmra.mxu0 %vm131_vm1, %v60_v10 }
  0x1d   :  { %4067 = vmatprep.mubr.msk.f32.mxu0 %vm131_vm1, %v61_v11 }
  0x20   :  { %4068 = vmatmul.mubr.msk.f32.gmra.mxu0 %vm131_vm1, %v62_v12 }
  0x21   :  { %24 = vsyncpa [#allocation5], 0  ;;  %4070 = vmatprep.mubr.msk.f32.mxu0 %vm131_vm1, %v63_v13  ;;  %v64_v14 = vld [vmem:[%s5883_s30 + $0x48] sm:$0xff]  ;;  %v65_v15 = vld [vmem:[%s5883_s30 + $0x50] sm:$0xff]  ;;  %v777_v5 = vlaneseq  ;;  %v4588_v10 = vmov 0.00390625   ;;  %vm4591_vm7 = vmmov 0  }
  0x22   :  { %v66_v16 = vld [vmem:[%s5883_s30 + $0x58] sm:$0xff]  ;;  %v67_v17 = vld [vmem:[%s5883_s30 + $0x60] sm:$0xff]  ;;  %v68_v18 = vld [vmem:[%s5883_s30 + $0x68] sm:$0xff]  ;;  %vm944_vm9 = vcmask 64512   ;;  %vm1040_vm10 = vcmask 523264   ;;  %vm1151_vm13 = vcmask 130048  }
  0x23   :  { %v69_v19 = vld [vmem:[%s5883_s30 + $0x70] sm:$0xff]  ;;  %v70_v20 = vld [vmem:[%s5883_s30 + $0x78] sm:$0xff]  ;;  %v71_v21 = vld [vmem:[%s5883_s30 + $0x80] sm:$0xff]  ;;  %v4963_v6 = vand.u32 127, %v777_v5  ;;  %v4966_v8 = vshrl.u32 %v777_v5, 7  ;;  %s4592_s26 = smov 32  }
  0x24   :  { %4071 = vmatmul.mubr.msk.f32.gmra.mxu0 %vm131_vm1, %v64_v14  ;;  %v72_v22 = vld [vmem:[%s5883_s30 + $0x88] sm:$0xff]  ;;  %v73_v23 = vld [vmem:[%s5883_s30 + $0x90] sm:$0xff]  ;;  %v74_v24 = vld [vmem:[%s5883_s30 + $0x98] sm:$0xff]  ;;  %vm1250_vm15 = vcmask 261120   ;;  %s4593_s0 = smov 64   ;;  %s4594_s18 = smov 96  }
  0x25   :  { %4073 = vmatprep.mubr.msk.f32.mxu0 %vm131_vm1, %v65_v15  ;;  %v75_v25 = vld [vmem:[%s5883_s30 + $0xa0] sm:$0xff]  ;;  %v76_v26 = vld [vmem:[%s5883_s30 + $0xa8] sm:$0xff]  ;;  %v77_v27 = vld [vmem:[%s5883_s30 + $0xb0] sm:$0xff]  ;;  %v781_v7 = vadd.s32 128, %v4963_v6 }
  0x26   :  { %v78_v28 = vld [vmem:[%s5883_s30 + $0xb8] sm:$0xff]  ;;  %v79_v29 = vld [vmem:[%s5883_s30 + $0xc0] sm:$0xff]  ;;  %v80_v30 = vld [vmem:[%s5883_s30 + $0xc8] sm:$0xff] }
  0x27   :  { %v81_v31 = vld [vmem:[%s5883_s30 + $0xd0] sm:$0xff]  ;;  %v82_v32 = vld [vmem:[%s5883_s30 + $0xd8] sm:$0xff]  ;;  %v83_v33 = vld [vmem:[%s5883_s30 + $0xe0] sm:$0xff]  ;;  %v785_v9 = vshra.s32 %v781_v7, 8 }
  0x28   :  { %4074 = vmatmul.mubr.msk.f32.gmra.mxu0 %vm131_vm1, %v66_v16  ;;  %v84_v34 = vld [vmem:[%s5883_s30 + $0xe8] sm:$0xff]  ;;  %v85_v35 = vld [vmem:[%s5883_s30 + $0xf0] sm:$0xff]  ;;  %v86_v36 = vld [vmem:[%s5883_s30 + $0xf8] sm:$0xff] }
  0x29   :  { %4076 = vmatprep.mubr.msk.f32.mxu0 %vm131_vm1, %v67_v17  ;;  %v87_v37 = vld [vmem:[%s5883_s30 + $0x100] sm:$0xff]  ;;  %v88_v38 = vld [vmem:[%s5883_s30 + $0x108] sm:$0xff]  ;;  %v89_v39 = vld [vmem:[%s5883_s30 + $0x110] sm:$0xff]  ;;  %vm789_vm2 = vcmp.eq.s32.totalorder %v785_v9, %v4966_v8 }
  0x2a   :  { %v90_v40 = vld [vmem:[%s5883_s30 + $0x118] sm:$0xff]  ;;  %v91_v41 = vld [vmem:[%s5883_s30 + $0x120] sm:$0xff]  ;;  %v92_v42 = vld [vmem:[%s5883_s30 + $0x128] sm:$0xff]  ;;  %3720 = vmatprep.mubr.msk.f32.mxu1 %vm789_vm2, %v4588_v10 }
  0x2b   :  { %v93_v43 = vld [vmem:[%s5883_s30 + $0x130] sm:$0xff]  ;;  %v94_v44 = vld [vmem:[%s5883_s30 + $0x138] sm:$0xff]  ;;  %v95_v45 = vld [vmem:[%s5883_s30 + $0x140] sm:$0xff] }
  0x2c   :  { %4077 = vmatmul.mubr.msk.f32.gmra.mxu0 %vm131_vm1, %v68_v18  ;;  %v96_v46 = vld [vmem:[%s5883_s30 + $0x148] sm:$0xff]  ;;  %v97_v47 = vld [vmem:[%s5883_s30 + $0x150] sm:$0xff]  ;;  %v98_v48 = vld [vmem:[%s5883_s30 + $0x158] sm:$0xff] }
  0x2d   :  { %4079 = vmatprep.mubr.msk.f32.mxu0 %vm131_vm1, %v69_v19  ;;  %v99_v49 = vld [vmem:[%s5883_s30 + $0x160] sm:$0xff]  ;;  %v100_v50 = vld [vmem:[%s5883_s30 + $0x168] sm:$0xff]  ;;  %v101_v51 = vld [vmem:[%s5883_s30 + $0x170] sm:$0xff] }
  0x2e   :  { %v102_v52 = vld [vmem:[%s5883_s30 + $0x178] sm:$0xff]  ;;  %v103_v53 = vld [vmem:[%s5883_s30 + $0x180] sm:$0xff]  ;;  %v104_v54 = vld [vmem:[%s5883_s30 + $0x188] sm:$0xff] }
  0x2f   :  { %v105_v55 = vld [vmem:[%s5883_s30 + $0x190] sm:$0xff]  ;;  %v106_v56 = vld [vmem:[%s5883_s30 + $0x198] sm:$0xff]  ;;  %v107_v57 = vld [vmem:[%s5883_s30 + $0x1a0] sm:$0xff] }
  0x30   :  { %4080 = vmatmul.mubr.msk.f32.gmra.mxu0 %vm131_vm1, %v70_v20  ;;  %v108_v58 = vld [vmem:[%s5883_s30 + $0x1a8] sm:$0xff]  ;;  %v109_v59 = vld [vmem:[%s5883_s30 + $0x1b0] sm:$0xff]  ;;  %v110_v60 = vld [vmem:[%s5883_s30 + $0x1b8] sm:$0xff] }
  0x31   :  { %4082 = vmatprep.mubr.msk.f32.mxu0 %vm131_vm1, %v71_v21  ;;  %v111_v61 = vld [vmem:[%s5883_s30 + $0x1c0] sm:$0xff]  ;;  %v112_v62 = vld [vmem:[%s5883_s30 + $0x1c8] sm:$0xff]  ;;  %v113_v63 = vld [vmem:[%s5883_s30 + $0x1d0] sm:$0xff] }
  0x32   :  { %v114_v0 = vld [vmem:[%s5883_s30 + $0x1d8] sm:$0xff]  ;;  %v115_v1 = vld [vmem:[%s5883_s30 + $0x1e0] sm:$0xff]  ;;  %v116_v2 = vld [vmem:[%s5883_s30 + $0x1e8] sm:$0xff] }
  0x33   :  { %v117_v3 = vld [vmem:[%s5883_s30 + $0x1f0] sm:$0xff]  ;;  %v118_v4 = vld [vmem:[%s5883_s30 + $0x1f8] sm:$0xff] }
  0x34   :  { %4083 = vmatmul.mubr.msk.f32.gmra.mxu0 %vm131_vm1, %v72_v22 }
  0x35   :  { %4085 = vmatprep.mubr.msk.f32.mxu0 %vm131_vm1, %v73_v23 }
  0x38   :  { %4086 = vmatmul.mubr.msk.f32.gmra.mxu0 %vm131_vm1, %v74_v24 }
  0x39   :  { %4088 = vmatprep.mubr.msk.f32.mxu0 %vm131_vm1, %v75_v25 }
  0x3c   :  { %4089 = vmatmul.mubr.msk.f32.gmra.mxu0 %vm131_vm1, %v76_v26 }
  0x3d   :  { %4091 = vmatprep.mubr.msk.f32.mxu0 %vm131_vm1, %v77_v27 }
  0x40   :  { %4092 = vmatmul.mubr.msk.f32.gmra.mxu0 %vm131_vm1, %v78_v28  ;;  %v1018_v28 = vld [vmem:[%s5866_s6] sm:$0xff] }
  0x41   :  { %4094 = vmatprep.mubr.msk.f32.mxu0 %vm131_vm1, %v79_v29 }
  0x44   :  { %4095 = vmatmul.mubr.msk.f32.gmra.mxu0 %vm131_vm1, %v80_v30  ;;  %v4589_v30 = vmov 0  }
  0x45   :  { %4097 = vmatprep.mubr.msk.f32.mxu0 %vm131_vm1, %v81_v31  ;;  %4417 = vset.pattern.permute.xlu0 %v4589_v30  ;;  %v5001_v31 = vld [vmem:[%s5867_s7] sm:$0x3] }
  0x46   :  { %4418 = vset.pattern.permute.xlu1 %v4589_v30  ;;  %1021 = vperm.xlu0 %4417, %v1018_v28   ;;  %vm1440_vm3 = vcmp.gt.s32.totalorder %v5001_v31, 0  ;;  %vm1552_vm2 = vcmp.gt.s32.totalorder %v5001_v31, 1 }
  0x48   :  { %4098 = vmatmul.mubr.msk.f32.gmra.mxu0 %vm131_vm1, %v82_v32 }
  0x49   :  { %4100 = vmatprep.mubr.msk.f32.mxu0 %vm131_vm1, %v83_v33  ;;  %v1019_v33 = vld [vmem:[%s5866_s6 + $0x8] sm:$0xff] }
  0x4a   :  { %1024 = vperm.xlu0 %4417, %v1019_v33  }
  0x4c   :  { %4101 = vmatmul.mubr.msk.f32.gmra.mxu0 %vm131_vm1, %v84_v34 }
  0x4d   :  { %4103 = vmatprep.mubr.msk.f32.mxu0 %vm131_vm1, %v85_v35 }
  0x50   :  { %4104 = vmatmul.mubr.msk.f32.gmra.mxu0 %vm131_vm1, %v86_v36  ;;  %v1441_v36 = vsel %vm1440_vm3, 1, %v4589_v30 }
  0x51   :  { %4106 = vmatprep.mubr.msk.f32.mxu0 %vm131_vm1, %v87_v37  ;;  %1443 = vperm.xlu0 %4417, %v1441_v36  }
  0x54   :  { %4107 = vmatmul.mubr.msk.f32.gmra.mxu0 %vm131_vm1, %v88_v38 }
  0x55   :  { %4109 = vmatprep.mubr.msk.f32.mxu0 %vm131_vm1, %v89_v39 }
  0x58   :  { %4110 = vmatmul.mubr.msk.f32.gmra.mxu0 %vm131_vm1, %v90_v40 }
  0x59   :  { %4112 = vmatprep.mubr.msk.f32.mxu0 %vm131_vm1, %v91_v41 }
  0x5c   :  { %4113 = vmatmul.mubr.msk.f32.gmra.mxu0 %vm131_vm1, %v92_v42 }
  0x5d   :  { %4115 = vmatprep.mubr.msk.f32.mxu0 %vm131_vm1, %v93_v43 }
  0x60   :  { %4116 = vmatmul.mubr.msk.f32.gmra.mxu0 %vm131_vm1, %v94_v44 }
  0x61   :  { %4118 = vmatprep.mubr.msk.f32.mxu0 %vm131_vm1, %v95_v45 }
  0x64   :  { %4119 = vmatmul.mubr.msk.f32.gmra.mxu0 %vm131_vm1, %v96_v46  ;;  %v5020_v46 = vld [vmem:[%s5862_s2] ss:$0 sm:$0xff] }
  0x65   :  { %4121 = vmatprep.mubr.msk.f32.mxu0 %vm131_vm1, %v97_v47 }
  0x68   :  { %4122 = vmatmul.mubr.msk.f32.gmra.mxu0 %vm131_vm1, %v98_v48 }
  0x69   :  { %4124 = vmatprep.mubr.msk.f32.mxu0 %vm131_vm1, %v99_v49 }
  0x6c   :  { %4125 = vmatmul.mubr.msk.f32.gmra.mxu0 %vm131_vm1, %v100_v50 }
  0x6d   :  { %4127 = vmatprep.mubr.msk.f32.mxu0 %vm131_vm1, %v101_v51 }
  0x70   :  { %4128 = vmatmul.mubr.msk.f32.gmra.mxu0 %vm131_vm1, %v102_v52 }
  0x71   :  { %4130 = vmatprep.mubr.msk.f32.mxu0 %vm131_vm1, %v103_v53 }
  0x74   :  { %4131 = vmatmul.mubr.msk.f32.gmra.mxu0 %vm131_vm1, %v104_v54 }
  0x75   :  { %4133 = vmatprep.mubr.msk.f32.mxu0 %vm131_vm1, %v105_v55 }
  0x78   :  { %4134 = vmatmul.mubr.msk.f32.gmra.mxu0 %vm131_vm1, %v106_v56 }
  0x79   :  { %4136 = vmatprep.mubr.msk.f32.mxu0 %vm131_vm1, %v107_v57 }
  0x7c   :  { %4137 = vmatmul.mubr.msk.f32.gmra.mxu0 %vm131_vm1, %v108_v58 }
  0x7d   :  { %4139 = vmatprep.mubr.msk.f32.mxu0 %vm131_vm1, %v109_v59 }
  0x80   :  { %4140 = vmatmul.mubr.msk.f32.gmra.mxu0 %vm131_vm1, %v110_v60 }
  0x81   :  { %4142 = vmatprep.mubr.msk.f32.mxu0 %vm131_vm1, %v111_v61 }
  0x84   :  { %4143 = vmatmul.mubr.msk.f32.gmra.mxu0 %vm131_vm1, %v112_v62 }
  0x85   :  { %4145 = vmatprep.mubr.msk.f32.mxu0 %vm131_vm1, %v113_v63 }
  0x88   :  { %4146 = vmatmul.mubr.msk.f32.gmra.mxu0 %vm131_vm1, %v114_v0 }
  0x89   :  { %4148 = vmatprep.mubr.msk.f32.mxu0 %vm131_vm1, %v115_v1 }
  0x8c   :  { %4149 = vmatmul.mubr.msk.f32.gmra.mxu0 %vm131_vm1, %v116_v2 }
  0x8d   :  { %4151 = vmatprep.mubr.msk.f32.mxu0 %vm131_vm1, %v117_v3 }
  0x90   :  { %4152 = vmatmul.mubr.msk.f32.gmra.mxu0 %vm131_vm1, %v118_v4 }
  0xd4   :  { %v4970_v11 = vpop.f32.mrf.mxu0 }
  0xd6   :  { %v4972_v12 = vpop.f32.mrf.mxu0 }
  0xd8   :  { %v4974_v13 = vpop.f32.mrf.mxu0 }
  0xda   :  { %v4976_v14 = vpop.f32.mrf.mxu0 }
  0xdc   :  { %v4978_v15 = vpop.f32.mrf.mxu0 }
  0xde   :  { %v4980_v16 = vpop.f32.mrf.mxu0 }
  0xe0   :  { %v4982_v17 = vpop.f32.mrf.mxu0 }
  0xe2   :  { %v4984_v18 = vpop.f32.mrf.mxu0 }
  0xe4   :  { %v4986_v19 = vpop.f32.mrf.mxu0 }
  0xe6   :  { %v4988_v20 = vpop.f32.mrf.mxu0 }
  0xe8   :  { %v4075_v21 = vpop.f32.mrf.mxu0 }
  0xe9   :  { %v450_v1 = vadd.f32 %v4075_v21, %v5020_v46  ;;  %v440_v21 = vadd.f32 %v4986_v19, %v5020_v46  ;;  %v430_v19 = vadd.f32 %v4982_v17, %v5020_v46  ;;  %v420_v17 = vadd.f32 %v4978_v15, %v5020_v46 }
  0xea   :  { %v444_v22 = vpop.f32.mrf.mxu0 }
  0xeb   :  { %v445_v7 = vadd.f32 %v5020_v46, %v444_v22  ;;  %v435_v22 = vadd.f32 %v5020_v46, %v4988_v20  ;;  %v425_v20 = vadd.f32 %v5020_v46, %v4984_v18 }
  0xec   :  { %v4078_v23 = vpop.f32.mrf.mxu0 }
  0xed   :  { %v460_v55 = vadd.f32 %v4078_v23, %v5020_v46 }
  0xee   :  { %v454_v24 = vpop.f32.mrf.mxu0 }
  0xef   :  { %v455_v60 = vadd.f32 %v5020_v46, %v454_v24  ;;  %v726_v2 = vmax.f32 %v460_v55, 0.0  ;;  %v719_v55 = vmax.f32 %v425_v20, 0.0 }
  0xf0   :  { %v4081_v25 = vpop.f32.mrf.mxu0 }
  0xf1   :  { %v470_v47 = vadd.f32 %v4081_v25, %v5020_v46  ;;  %v725_v9 = vmax.f32 %v455_v60, 0.0 }
  0xf2   :  { %v464_v26 = vpop.f32.mrf.mxu0 }
  0xf3   :  { %v465_v50 = vadd.f32 %v5020_v46, %v464_v26  ;;  %v728_v56 = vmax.f32 %v470_v47, 0.0  ;;  %v724_v26 = vmax.f32 %v450_v1, 0.0  ;;  %v783_v1 = vadd.s32 384, %v4963_v6 }
  0xf4   :  { %v4990_v27 = vpop.f32.mrf.mxu0 }
  0xf5   :  { %v727_v61 = vmax.f32 %v465_v50, 0.0 }
  0xf6   :  { %v4995_v29 = vpop.f32.mrf.mxu0 }
  0xf8   :  { %v5004_v32 = vpop.f32.mrf.mxu0 }
  0xfa   :  { %v5010_v34 = vpop.f32.mrf.mxu0 }
  0xfc   :  { %v5012_v35 = vpop.f32.mrf.mxu0 }
  0xfe   :  { %v5015_v37 = vpop.f32.mrf.mxu0 }
 0x100   :  { %v4093_v38 = vpop.f32.mrf.mxu0 }
 0x102   :  { %v504_v39 = vpop.f32.mrf.mxu0 }
 0x104   :  { %v4096_v40 = vpop.f32.mrf.mxu0 }
 0x105   :  { %v520_v24 = vadd.f32 %v4096_v40, %v5020_v46  ;;  %v510_v40 = vadd.f32 %v4093_v38, %v5020_v46  ;;  %v500_v38 = vadd.f32 %v5012_v35, %v5020_v46  ;;  %v490_v35 = vadd.f32 %v5004_v32, %v5020_v46 }
 0x106   :  { %v514_v41 = vpop.f32.mrf.mxu0  ;;  %v480_v32 = vadd.f32 %v4990_v27, %v5020_v46 }
 0x107   :  { %v515_v33 = vadd.f32 %v5020_v46, %v514_v41  ;;  %v505_v41 = vadd.f32 %v5020_v46, %v504_v39  ;;  %v495_v39 = vadd.f32 %v5020_v46, %v5015_v37  ;;  %v734_v15 = vmax.f32 %v500_v38, 0.0 }
 0x108   :  { %v4099_v42 = vpop.f32.mrf.mxu0  ;;  %v485_v37 = vadd.f32 %v5020_v46, %v5010_v34 }
 0x109   :  { %v530_v63 = vadd.f32 %v4099_v42, %v5020_v46  ;;  %v723_v42 = vmax.f32 %v445_v7, 0.0  ;;  %v735_v18 = vmax.f32 %v505_v41, 0.0  ;;  %v395_v7 = vadd.f32 %v5020_v46, %v4972_v12 }
 0x10a   :  { %v524_v43 = vpop.f32.mrf.mxu0 }
 0x10b   :  { %v525_v4 = vadd.f32 %v5020_v46, %v524_v43  ;;  %v740_v25 = vmax.f32 %v530_v63, 0.0 }
 0x10c   :  { %v4102_v44 = vpop.f32.mrf.mxu0 }
 0x10d   :  { %v540_v52 = vadd.f32 %v4102_v44, %v5020_v46  ;;  %v739_v36 = vmax.f32 %v525_v4, 0.0  ;;  %v738_v44 = vmax.f32 %v520_v24, 0.0  ;;  %v784_v24 = vshra.s32 %v4963_v6, 8 }
 0x10e   :  { %v534_v45 = vpop.f32.mrf.mxu0 }
 0x10f   :  { %v535_v58 = vadd.f32 %v5020_v46, %v534_v45  ;;  %v742_v0 = vmax.f32 %v540_v52, 0.0  ;;  %v722_v45 = vmax.f32 %v440_v21, 0.0  ;;  %v720_v52 = vmax.f32 %v430_v19, 0.0 }
 0x110   :  { %v4105_v48 = vpop.f32.mrf.mxu0  ;;  %v787_v21 = vshra.s32 %v783_v1, 8  ;;  %vm788_vm4 = vcmp.eq.s32.totalorder %v784_v24, %v4966_v8 }
 0x111   :  { %v550_v49 = vadd.f32 %v4105_v48, %v5020_v46  ;;  %v741_v5 = vmax.f32 %v535_v58, 0.0  ;;  %v737_v48 = vmax.f32 %v515_v33, 0.0  ;;  %v410_v58 = vadd.f32 %v4974_v13, %v5020_v46 }
 0x112   :  { %v544_v51 = vpop.f32.mrf.mxu0  ;;  %v732_v13 = vmax.f32 %v490_v35, 0.0  ;;  %vm791_vm5 = vcmp.eq.s32.totalorder %v787_v21, %v4966_v8 }
 0x113   :  { %v545_v53 = vadd.f32 %v5020_v46, %v544_v51  ;;  %v744_v54 = vmax.f32 %v550_v49, 0.0  ;;  %v721_v49 = vmax.f32 %v435_v22, 0.0  ;;  %v736_v51 = vmax.f32 %v510_v40, 0.0 }
 0x114   :  { %v5028_v57 = vpop.f32.mrf.mxu0  ;;  %v716_v34 = vmax.f32 %v410_v58, 0.0 }
 0x115   :  { %v743_v59 = vmax.f32 %v545_v53, 0.0  ;;  %3860 = vmatprep.subr.mxu1 %v744_v54  ;;  %v415_v54 = vadd.f32 %v5020_v46, %v4980_v16  ;;  %v733_v16 = vmax.f32 %v495_v39, 0.0 }
 0x116   :  { %v5032_v62 = vpop.f32.mrf.mxu0  ;;  %3861 = vmatpush3.msra.mxu1 %v728_v56 }
 0x117   :  { %3862 = vmatprep.subr.mxu1 %v743_v59  ;;  %v718_v59 = vmax.f32 %v420_v17, 0.0  ;;  %v717_v63 = vmax.f32 %v415_v54, 0.0 }
 0x118   :  { %v5036_v3 = vpop.f32.mrf.mxu0  ;;  %3863 = vmatpush3.msra.mxu1 %v727_v61  ;;  %v405_v61 = vadd.f32 %v5020_v46, %v4976_v14  ;;  %v475_v14 = vadd.f32 %v5020_v46, %v4995_v29 }
 0x119   :  { %3864 = vmatprep.subr.mxu1 %v742_v0 }
 0x11a   :  { %v5040_v23 = vpop.f32.mrf.mxu0  ;;  %3865 = vmatpush3.msra.mxu1 %v726_v2  ;;  %v400_v2 = vadd.f32 %v4970_v11, %v5020_v46  ;;  %v729_v33 = vmax.f32 %v475_v14, 0.0 }
 0x11b   :  { %3866 = vmatprep.subr.mxu1 %v741_v5  ;;  %v731_v5 = vmax.f32 %v485_v37, 0.0 }
 0x11c   :  { %v5045_v28 = vpop.f32.mrf.mxu0  ;;  %3867 = vmatpush3.msra.mxu1 %v725_v9  ;;  %v715_v9 = vmax.f32 %v405_v61, 0.0  ;;  %v714_v11 = vmax.f32 %v400_v2, 0.0 }
 0x11d   :  { %3868 = vmatprep.subr.mxu1 %v740_v25  ;;  %v730_v25 = vmax.f32 %v480_v32, 0.0 }
 0x11e   :  { %v5050_v43 = vpop.f32.mrf.mxu0  ;;  %3869 = vmatpush3.msra.mxu1 %v724_v26 }
 0x11f   :  { %3870 = vmatprep.subr.mxu1 %v739_v36  ;;  %v713_v36 = vmax.f32 %v395_v7, 0.0 }
 0x120   :  { %v5055_v47 = vpop.f32.mrf.mxu0  ;;  %3871 = vmatpush3.msra.mxu1 %v723_v42 }
 0x121   :  { %3872 = vmatprep.subr.mxu1 %v738_v44 }
 0x122   :  { %v5060_v50 = vpop.f32.mrf.mxu0  ;;  %3873 = vmatpush3.msra.mxu1 %v722_v45 }
 0x123   :  { %3874 = vmatprep.subr.mxu1 %v737_v48 }
 0x124   :  { %v5066_v53 = vpop.f32.mrf.mxu0  ;;  %3875 = vmatpush3.msra.mxu1 %v721_v49 }
 0x125   :  { %3876 = vmatprep.subr.mxu1 %v736_v51  ;;  %v600_v24 = vadd.f32 %v5066_v53, %v5020_v46 }
 0x126   :  { %v5072_v56 = vpop.f32.mrf.mxu0  ;;  %3877 = vmatpush3.msra.mxu1 %v720_v52 }
 0x127   :  { %3878 = vmatprep.subr.mxu1 %v735_v18 }
 0x128   :  { %v5078_v60 = vpop.f32.mrf.mxu0  ;;  %3879 = vmatpush3.msra.mxu1 %v719_v55 }
 0x129   :  { %3880 = vmatprep.subr.mxu1 %v734_v15  ;;  %v610_v2 = vadd.f32 %v5078_v60, %v5020_v46 }
 0x12a   :  { %v5084_v0 = vpop.f32.mrf.mxu0  ;;  %3881 = vmatpush3.msra.mxu1 %v718_v59 }
 0x12b   :  { %3882 = vmatprep.subr.mxu1 %v733_v16 }
 0x12c   :  { %v4126_v4 = vpop.f32.mrf.mxu0  ;;  %3883 = vmatpush3.msra.mxu1 %v717_v63 }
 0x12d   :  { %3884 = vmatprep.subr.mxu1 %v732_v13  ;;  %v620_v59 = vadd.f32 %v4126_v4, %v5020_v46 }
 0x12e   :  { %v614_v27 = vpop.f32.mrf.mxu0  ;;  %3885 = vmatpush3.msra.mxu1 %v716_v34 }
 0x12f   :  { %3886 = vmatprep.subr.mxu1 %v731_v5  ;;  %v615_v63 = vadd.f32 %v5020_v46, %v614_v27  ;;  %v758_v34 = vmax.f32 %v620_v59, 0.0  ;;  %v605_v5 = vadd.f32 %v5020_v46, %v5084_v0 }
 0x130   :  { %v4129_v26 = vpop.f32.mrf.mxu0  ;;  %3887 = vmatpush3.msra.mxu1 %v715_v9 }
 0x131   :  { %3888 = vmatprep.subr.mxu1 %v730_v25  ;;  %v630_v52 = vadd.f32 %v4129_v26, %v5020_v46  ;;  %v757_v7 = vmax.f32 %v615_v63, 0.0  ;;  %v756_v25 = vmax.f32 %v610_v2, 0.0  ;;  %v755_v26 = vmax.f32 %v605_v5, 0.0  ;;  %v1038_v5 = vld [vmem:[%s5865_s5 + $0x30] sm:$0xff] }
 0x132   :  { %v624_v29 = vpop.f32.mrf.mxu0  ;;  %3889 = vmatpush3.msra.mxu1 %v714_v11  ;;  %v595_v11 = vadd.f32 %v5020_v46, %v5072_v56 }
 0x133   :  { %3890 = vmatprep.subr.mxu1 %v729_v33  ;;  %v625_v54 = vadd.f32 %v5020_v46, %v624_v29  ;;  %v760_v37 = vmax.f32 %v630_v52, 0.0  ;;  %v754_v29 = vmax.f32 %v600_v24, 0.0  ;;  %v1034_v24 = vld [vmem:[%s5865_s5 + $0x10] sm:$0xff] }
 0x134   :  { %v5098_v12 = vpop.f32.mrf.mxu0  ;;  %3891 = vmatpush3.msra.mxu1 %v713_v36  ;;  %v590_v36 = vadd.f32 %v5055_v47, %v5020_v46 }
 0x135   :  { %3721 = vmatmul.mubr.msk.f32.vlgmr.msra.gmra.mxu1 %vm788_vm4, %v4588_v10  ;;  %v759_v32 = vmax.f32 %v625_v54, 0.0  ;;  %vm1670_vm4 = vcmp.gt.s32.totalorder %v5001_v31, 2 }
 0x136   :  { %v5101_v22 = vpop.f32.mrf.mxu0  ;;  %3722 = vmatprep.mubr.msk.f32.mxu1 %vm791_vm5, %v4588_v10 }
 0x138   :  { %v5104_v42 = vpop.f32.mrf.mxu0 }
 0x13a   :  { %v5106_v40 = vpop.f32.mrf.mxu0 }
 0x13c   :  { %v4138_v44 = vpop.f32.mrf.mxu0 }
 0x13d   :  { %v660_v56 = vadd.f32 %v4138_v44, %v5020_v46  ;;  %v650_v44 = vadd.f32 %v5104_v42, %v5020_v46  ;;  %v640_v42 = vadd.f32 %v5098_v12, %v5020_v46 }
 0x13e   :  { %v5108_v19 = vpop.f32.mrf.mxu0 }
 0x13f   :  { %v655_v47 = vadd.f32 %v5020_v46, %v5108_v19  ;;  %v766_v52 = vmax.f32 %v660_v56, 0.0  ;;  %v645_v19 = vadd.f32 %v5020_v46, %v5106_v40  ;;  %v635_v40 = vadd.f32 %v5020_v46, %v5101_v22 }
 0x140   :  { %v4141_v45 = vpop.f32.mrf.mxu0  ;;  %v4590_v22 = vmov 0.0  }
 0x141   :  { %v670_v0 = vadd.f32 %v4141_v45, %v5020_v46  ;;  %v580_v45 = vadd.f32 %v5045_v28, %v5020_v46  ;;  %v570_v28 = vadd.f32 %v5036_v3, %v5020_v46  ;;  %v560_v3 = vadd.f32 %v5028_v57, %v5020_v46  ;;  %4251 = vmatprep.subr.mxu0 %v4590_v22 }
 0x142   :  { %v664_v41 = vpop.f32.mrf.mxu0  ;;  %4259 = vmatprep.mubr.msk.f32.mxu0 %vm4591_vm7, %v4590_v22 }
 0x143   :  { %v665_v53 = vadd.f32 %v5020_v46, %v664_v41  ;;  %v746_v12 = vmax.f32 %v560_v3, 0.0 }
 0x144   :  { %v4144_v48 = vpop.f32.mrf.mxu0 }
 0x145   :  { %v680_v9 = vadd.f32 %v4144_v48, %v5020_v46  ;;  %v767_v41 = vmax.f32 %v665_v53, 0.0  ;;  %v3724_v53 = vld [vmem:[%s5864_s4] ss:$0 sm:$0xff] }
 0x146   :  { %v674_v20 = vpop.f32.mrf.mxu0 }
 0x147   :  { %v675_v60 = vadd.f32 %v5020_v46, %v674_v20  ;;  %v770_v33 = vmax.f32 %v680_v9, 0.0  ;;  %v585_v20 = vadd.f32 %v5020_v46, %v5060_v50  ;;  %v1036_v9 = vld [vmem:[%s5865_s5 + $0x20] sm:$0xff] }
 0x148   :  { %v4147_v49 = vpop.f32.mrf.mxu0 }
 0x149   :  { %v690_v13 = vadd.f32 %v4147_v49, %v5020_v46  ;;  %v769_v48 = vmax.f32 %v675_v60, 0.0  ;;  %v753_v49 = vmax.f32 %v595_v11, 0.0  ;;  %v751_v50 = vmax.f32 %v585_v20, 0.0 }
 0x14a   :  { %v684_v38 = vpop.f32.mrf.mxu0 }
 0x14b   :  { %v685_v4 = vadd.f32 %v5020_v46, %v684_v38  ;;  %v772_v27 = vmax.f32 %v690_v13, 0.0  ;;  %v768_v38 = vmax.f32 %v670_v0, 0.0  ;;  %v1022_v13 = vpop.permute.xlu0 %1021 }
 0x14c   :  { %v4150_v51 = vpop.f32.mrf.mxu0  ;;  %vm1026_vm8 = vcmp.eq.s32.totalorder %v4963_v6, %v1022_v13 }
 0x14d   :  { %v700_v35 = vadd.f32 %v4150_v51, %v5020_v46  ;;  %v771_v21 = vmax.f32 %v685_v4, 0.0  ;;  %v752_v51 = vmax.f32 %v590_v36, 0.0 }
 0x14e   :  { %v694_v17 = vpop.f32.mrf.mxu0 }
 0x14f   :  { %v695_v16 = vadd.f32 %v5020_v46, %v694_v17  ;;  %v774_v1 = vmax.f32 %v700_v35, 0.0  ;;  %v575_v17 = vadd.f32 %v5020_v46, %v5050_v43  ;;  %v565_v43 = vadd.f32 %v5020_v46, %v5040_v23  ;;  %v1025_v60 = vpop.permute.xlu0 %1024 }
 0x150   :  { %v4153_v39 = vpop.f32.mrf.mxu0  ;;  %v764_v35 = vmax.f32 %v650_v44, 0.0  ;;  %v555_v23 = vadd.f32 %v5020_v46, %v5032_v62  ;;  %v1039_v62 = vld [vmem:[%s5865_s5 + $0x38] sm:$0xff]  ;;  %vm1027_vm11 = vcmp.eq.s32.totalorder %v4963_v6, %v1025_v60 }
 0x151   :  { %v710_v18 = vadd.f32 %v4153_v39, %v5020_v46  ;;  %v773_v14 = vmax.f32 %v695_v16, 0.0  ;;  %v750_v39 = vmax.f32 %v580_v45, 0.0  ;;  %v749_v54 = vmax.f32 %v575_v17, 0.0  ;;  %v1237_v44 = vld [vmem:[%s5868_s8 + $0x18] sm:$0xff] }
 0x152   :  { %v704_v55 = vpop.f32.mrf.mxu0  ;;  %v747_v59 = vmax.f32 %v565_v43, 0.0  ;;  %v762_v16 = vmax.f32 %v640_v42, 0.0  ;;  %v745_v57 = vmax.f32 %v555_v23, 0.0  ;;  %v3727_v11 = vsel %vm1027_vm11, 1.0, %v4590_v22  ;;  %v5250_v43 = vld [vmem:[%s5869_s9 + $0x8] sm:$0xff] }
 0x153   :  { %v776_v15 = vmax.f32 %v710_v18, 0.0  ;;  %v705_v58 = vadd.f32 %v5020_v46, %v704_v55  ;;  %v765_v18 = vmax.f32 %v655_v47, 0.0  ;;  %v782_v55 = vadd.s32 256, %v4963_v6  ;;  %v936_v46 = vld [vmem:[%s5863_s3] sm:$0xff] }
 0x155   :  { %v775_v61 = vmax.f32 %v705_v58, 0.0  ;;  %3895 = vmatprep.subr.mxu1 %v776_v15  ;;  %v748_v15 = vmax.f32 %v570_v28, 0.0  ;;  %v763_v58 = vmax.f32 %v645_v19, 0.0  ;;  %v1235_v28 = vld [vmem:[%s5868_s8 + $0x8] sm:$0xff]  ;;  %v5237_v19 = vld [vmem:[%s5869_s9 + $0x18] sm:$0xff] }
 0x156   :  { %3896 = vmatpush3.msra.mxu1 %v760_v37  ;;  %v786_v37 = vshra.s32 %v782_v55, 8  ;;  %4252 = vmatpush3.msra.mxu0 %v5237_v19 }
 0x157   :  { %3897 = vmatprep.subr.mxu1 %v775_v61  ;;  %v761_v61 = vmax.f32 %v635_v40, 0.0  ;;  %4253 = vmatprep.subr.mxu0 %v4590_v22 }
 0x158   :  { %3898 = vmatpush3.msra.mxu1 %v759_v32  ;;  %vm790_vm6 = vcmp.eq.s32.totalorder %v786_v37, %v4966_v8 }
 0x159   :  { %3899 = vmatprep.subr.mxu1 %v774_v1 }
 0x15a   :  { %3900 = vmatpush3.msra.mxu1 %v758_v34 }
 0x15b   :  { %3901 = vmatprep.subr.mxu1 %v773_v14  ;;  %v3726_v14 = vsel %vm1026_vm8, 1.0, %v4590_v22 }
 0x15c   :  { %3902 = vmatpush3.msra.mxu1 %v757_v7  ;;  %v1037_v7 = vld [vmem:[%s5865_s5 + $0x28] sm:$0xff] }
 0x15d   :  { %3903 = vmatprep.subr.mxu1 %v772_v27  ;;  %v1035_v27 = vld [vmem:[%s5865_s5 + $0x18] sm:$0xff] }
 0x15e   :  { %3904 = vmatpush3.msra.mxu1 %v756_v25  ;;  %v1033_v25 = vld [vmem:[%s5865_s5 + $0x8] sm:$0xff] }
 0x15f   :  { %3905 = vmatprep.subr.mxu1 %v771_v21  ;;  %v1032_v21 = vld [vmem:[%s5865_s5] sm:$0xff] }
 0x160   :  { %3906 = vmatpush3.msra.mxu1 %v755_v26  ;;  %v1123_v26 = vand.u32 1, %v4966_v8 }
 0x161   :  { %3907 = vmatprep.subr.mxu1 %v770_v33  ;;  %v1127_v33 = vshra.s32 %v4966_v8, 1 }
 0x162   :  { %3908 = vmatpush3.msra.mxu1 %v754_v29  ;;  %v1125_v0 = vmul.u32 8, %v1123_v26 }
 0x163   :  { %3909 = vmatprep.subr.mxu1 %v769_v48  ;;  %v5210_v48 = vadd.s32 8, %v4966_v8 }
 0x164   :  { %3910 = vmatpush3.msra.mxu1 %v753_v49  ;;  %v1129_v36 = vadd.s32 %v1127_v33, %v1125_v0 }
 0x165   :  { %3911 = vmatprep.subr.mxu1 %v768_v38  ;;  %v1124_v38 = vand.u32 1, %v5210_v48 }
 0x166   :  { %3912 = vmatpush3.msra.mxu1 %v752_v51  ;;  %vm1131_vm12 = vcmp.eq.s32.totalorder %v4963_v6, %v1129_v36  ;;  %v1128_v51 = vshra.s32 %v5210_v48, 1 }
 0x167   :  { %3913 = vmatprep.subr.mxu1 %v767_v41  ;;  %v3730_v29 = vsel %vm1131_vm12, 1.0, %v4590_v22  ;;  %v1126_v45 = vmul.u32 8, %v1124_v38 }
 0x168   :  { %3914 = vmatpush3.msra.mxu1 %v751_v50 }
 0x169   :  { %3915 = vmatprep.subr.mxu1 %v766_v52  ;;  %v1130_v47 = vadd.s32 %v1128_v51, %v1126_v45  ;;  %v1236_v52 = vld [vmem:[%s5868_s8 + $0x10] sm:$0xff] }
 0x16a   :  { %3916 = vmatpush3.msra.mxu1 %v750_v39  ;;  %v1234_v39 = vld [vmem:[%s5868_s8] sm:$0xff] }
 0x16b   :  { %3917 = vmatprep.subr.mxu1 %v765_v18  ;;  %vm1132_vm14 = vcmp.eq.s32.totalorder %v4963_v6, %v1130_v47  ;;  %v5244_v18 = vld [vmem:[%s5869_s9 + $0x10] sm:$0xff] }
 0x16c   :  { %3918 = vmatpush3.msra.mxu1 %v749_v54  ;;  %v3731_v50 = vsel %vm1132_vm14, 1.0, %v4590_v22  ;;  %4254 = vmatpush3.msra.mxu0 %v5244_v18  ;;  %v5257_v54 = vld [vmem:[%s5869_s9] sm:$0xff] }
 0x16d   :  { %3919 = vmatprep.subr.mxu1 %v764_v35  ;;  %4255 = vmatprep.subr.mxu0 %v4590_v22  ;;  %v3736_v35 = vld [vmem:[%s5870_s10] ss:$0 sm:$0xff] }
 0x16e   :  { %3920 = vmatpush3.msra.mxu1 %v748_v15  ;;  %4256 = vmatpush3.msra.mxu0 %v5250_v43 }
 0x16f   :  { %3921 = vmatprep.subr.mxu1 %v763_v58  ;;  %4257 = vmatprep.subr.mxu0 %v4590_v22  ;;  %v5294_v58 = vld [vmem:[%s5871_s11] ss:$0 sm:$0xff] }
 0x170   :  { %3922 = vmatpush3.msra.mxu1 %v747_v59  ;;  %4258 = vmatpush3.msra.mxu0 %v5257_v54 }
 0x171   :  { %3923 = vmatprep.subr.mxu1 %v762_v16  ;;  %4273 = vmatprep.subr.mxu0 %v4590_v22 }
 0x172   :  { %3924 = vmatpush3.msra.mxu1 %v746_v12 }
 0x173   :  { %3925 = vmatprep.subr.mxu1 %v761_v61 }
 0x174   :  { %3926 = vmatpush3.msra.mxu1 %v745_v57 }
 0x175   :  { %3723 = vmatmul.mubr.msk.f32.vlgmr.msra.gmra.mxu1 %vm790_vm6, %v4588_v10  ;;  %4154 = vmatprep.subr.mxu1 %v4590_v22 }
 0x176   :  { %4155 = vmatpush3.msra.mxu1 %v936_v46  ;;  %4156 = vmatprep.mubr.msk.f32.mxu1 %vm4591_vm7, %v4590_v22 }
 0x177   :  { %4159 = vmatprep.subr.mxu1 %v1039_v62 }
 0x1f5   :  { %v3892_v10 = vpop.f32.mrf.mxu1 }
 0x1f7   :  { %v3893_v63 = vpop.f32.mrf.mxu1 }
 0x1f8   :  { %v3894_v2 = vadd.f32 %v3893_v63, %v3892_v10 }
 0x235   :  { %v3927_v32 = vpop.f32.mrf.mxu1 }
 0x237   :  { %v3928_v1 = vpop.f32.mrf.mxu1 }
 0x238   :  { %v3929_v34 = vadd.f32 %v3928_v1, %v3927_v32 }
 0x23a   :  { %v933_v4 = vadd.f32 %v3929_v34, %v3894_v2  ;;  %v5304_v2 = vpop.permute.xlu0 %1443 }
 0x23b   :  { %vm1445_vm1 = vcmp.eq.s32.totalorder %v5304_v2, 1 }
 0x23c   :  { %4157 = vmatmul.mubr.msk.f32.vlgmr.msra.gmra.mxu1 %vm944_vm9, %v933_v4 }
 0x23d   :  { %4160 = vmatpush3.msra.mxu1 %v1039_v62  ;;  %4175 = vmatprep.mubr.msk.f32.mxu1 %vm1040_vm10, %v3726_v14 }
 0x23e   :  { %4161 = vmatprep.subr.mxu1 %v1038_v5 }
 0x23f   :  { %4162 = vmatpush3.msra.mxu1 %v1038_v5 }
 0x240   :  { %4163 = vmatprep.subr.mxu1 %v1037_v7 }
 0x241   :  { %4164 = vmatpush3.msra.mxu1 %v1037_v7 }
 0x242   :  { %4165 = vmatprep.subr.mxu1 %v1036_v9 }
 0x243   :  { %4166 = vmatpush3.msra.mxu1 %v1036_v9 }
 0x244   :  { %4167 = vmatprep.subr.mxu1 %v1035_v27 }
 0x245   :  { %4168 = vmatpush3.msra.mxu1 %v1035_v27 }
 0x246   :  { %4169 = vmatprep.subr.mxu1 %v1034_v24 }
 0x247   :  { %4170 = vmatpush3.msra.mxu1 %v1034_v24 }
 0x248   :  { %4171 = vmatprep.subr.mxu1 %v1033_v25 }
 0x249   :  { %4172 = vmatpush3.msra.mxu1 %v1033_v25 }
 0x24a   :  { %4173 = vmatprep.subr.mxu1 %v1032_v21 }
 0x24b   :  { %4174 = vmatpush3.msra.mxu1 %v1032_v21 }
 0x24c   :  { %4176 = vmatmul.mubr.msk.f32.vlgmr.msra.gmra.mxu1 %vm1040_vm10, %v3727_v11 }
 0x24d   :  { %4182 = vmatprep.mubr.msk.f32.mxu1 %vm1151_vm13, %v3730_v29 }
 0x2fc   :  { %v1014_v20 = vpop.f32.mrf.mxu1 }
 0x2fd   :  { %v5212_v49 = vadd.f32 %v3724_v53, %v1014_v20 }
 0x2fe   :  { %v4158_v56 = vpop.f32.mrf.mxu1 }
 0x2ff   :  { %1435 = vrot.lane.b32.xlu0 %v5212_v49, %s4592_s26  ;;  %v1553_v56 = vsel %vm1552_vm2, 1, %v4589_v30 }
 0x30c   :  { %v4177_v41 = vpop.f32.mrf.mxu1 }
 0x30d   :  { %4178 = vmatprep.subr.mxu1 %v4177_v41 }
 0x30e   :  { %v1113_v17 = vpop.f32.mrf.mxu1  ;;  %4179 = vmatpush3.msra.mxu1 %v4177_v41 }
 0x30f   :  { %4180 = vmatprep.subr.mxu1 %v1113_v17 }
 0x310   :  { %4181 = vmatpush3.msra.mxu1 %v1113_v17 }
 0x311   :  { %4183 = vmatmul.mubr.msk.f32.vlgmr.msra.gmra.mxu1 %vm1151_vm13, %v3731_v50  ;;  %4185 = vmatprep.subr.mxu1 %v1237_v44 }
 0x312   :  { %4186 = vmatpush3.msra.mxu1 %v1237_v44 }
 0x313   :  { %4187 = vmatprep.subr.mxu1 %v1236_v52 }
 0x314   :  { %4188 = vmatpush3.msra.mxu1 %v1236_v52 }
 0x315   :  { %4189 = vmatprep.subr.mxu1 %v1235_v28 }
 0x316   :  { %4190 = vmatpush3.msra.mxu1 %v1235_v28 }
 0x317   :  { %4191 = vmatprep.subr.mxu1 %v1234_v39 }
 0x318   :  { %4192 = vmatpush3.msra.mxu1 %v1234_v39 }
 0x319   :  { %4196 = vmatprep.subr.mxu1 %v4590_v22 }
 0x371   :  { %v5306_v4 = vpop.permute.xlu0 %1435 }
 0x3d1   :  { %v4184_v55 = vpop.f32.mrf.mxu1 }
 0x3d3   :  { %v1224_v42 = vpop.f32.mrf.mxu1 }
 0x3d4   :  { %4193 = vmatprep.mubr.msk.f32.mxu1 %vm1250_vm15, %v1224_v42 }
 0x3d5   :  { %4194 = vmatmul.mubr.msk.f32.vlgmr.msra.gmra.mxu1 %vm1250_vm15, %v4184_v55 }
 0x3d6   :  { %4197 = vmatpush3.msra.mxu1 %v5237_v19  ;;  %4204 = vmatprep.mubr.msk.f32.mxu1 %vm4591_vm7, %v4590_v22 }
 0x3d7   :  { %4198 = vmatprep.subr.mxu1 %v4590_v22 }
 0x3d8   :  { %4199 = vmatpush3.msra.mxu1 %v5244_v18 }
 0x3d9   :  { %4200 = vmatprep.subr.mxu1 %v4590_v22 }
 0x3da   :  { %4201 = vmatpush3.msra.mxu1 %v5250_v43 }
 0x3db   :  { %4202 = vmatprep.subr.mxu1 %v4590_v22 }
 0x3dc   :  { %4203 = vmatpush3.msra.mxu1 %v5257_v54 }
 0x3dd   :  { %4205 = vmatmul.mubr.msk.f32.vlgmr.msra.gmra.mxu1 %vm1250_vm15, %v5212_v49  ;;  %4207 = vmatprep.subr.mxu1 %v4590_v22 }
 0x3de   :  { %4208 = vmatpush3.msra.mxu1 %v5237_v19  ;;  %4215 = vmatprep.mubr.msk.f32.mxu1 %vm4591_vm7, %v4590_v22 }
 0x3df   :  { %4209 = vmatprep.subr.mxu1 %v4590_v22 }
 0x3e0   :  { %4210 = vmatpush3.msra.mxu1 %v5244_v18 }
 0x3e1   :  { %4211 = vmatprep.subr.mxu1 %v4590_v22 }
 0x3e2   :  { %4212 = vmatpush3.msra.mxu1 %v5250_v43 }
 0x3e3   :  { %4213 = vmatprep.subr.mxu1 %v4590_v22 }
 0x3e4   :  { %4214 = vmatpush3.msra.mxu1 %v5257_v54 }
 0x3e5   :  { %4218 = vmatprep.subr.mxu1 %v4590_v22 }
 0x495   :  { %v4195_v3 = vpop.f32.mrf.mxu1 }
 0x496   :  { %v5289_v15 = vadd.f32 %v4195_v3, %v3736_v35 }
 0x497   :  { %v1323_v40 = vpop.f32.mrf.mxu1 }
 0x498   :  { %v5298_v16 = vadd.f32 %v3736_v35, %v1323_v40 }
 0x49d   :  { %v1407_v23 = vpop.f32.mrf.mxu1 }
 0x49e   :  { %v1408_v59 = vadd.f32 %v5294_v58, %v1407_v23 }
 0x49f   :  { %v4206_v37 = vpop.f32.mrf.mxu1 }
 0x4a0   :  { %1419 = vrot.lane.b32.xlu1 %v1408_v59, %s4593_s0  ;;  %v1411_v12 = vadd.f32 %v1408_v59, %v5298_v16 }
 0x4a2   :  { %v3741_v61 = vmul.f32 -1.442695, %v1411_v12 }
 0x4a4   :  { %4419 = vpow2.f32 %v3741_v61 }
 0x4b1   :  { %v4420_v57 = vpop.eup %4419 }
 0x4b2   :  { %v1415_v46 = vadd.f32 1.0, %v4420_v57 }
 0x4b4   :  { %4421 = vrcp.f32 %v1415_v46 }
 0x4c1   :  { %v4422_v62 = vpop.eup %4421 }
 0x4c2   :  { %v1429_v34 = vsub.f32 1.0, %v4422_v62  ;;  %v1438_v5 = vmul.f32 %v4422_v62, %v5306_v4 }
 0x512   :  { %v1420_v10 = vpop.permute.xlu1 %1419 }
 0x513   :  { %v1422_v63 = vmul.f32 %v4422_v62, %v1420_v10 }
 0x515   :  { %1424 = vrot.lane.b32.xlu1 %v1422_v63, %s4593_s0 }
 0x587   :  { %v1425_v32 = vpop.permute.xlu1 %1424 }
 0x588   :  { %v1427_v13 = vadd.f32 %v1425_v32, %v5298_v16 }
 0x58a   :  { %4423 = vtanh.f32 %v1427_v13 }
 0x597   :  { %v4424_v1 = vpop.eup %4423 }
 0x598   :  { %1431 = vrot.lane.b32.xlu1 %v4424_v1, %s4594_s18  ;;  %v1671_v1 = vsel %vm1670_vm4, 1, %v4589_v30 }
 0x60a   :  { %v1432_v14 = vpop.permute.xlu1 %1431 }
 0x60b   :  { %v1434_v7 = vmul.f32 %v1432_v14, %v1429_v34 }
 0x60d   :  { %v1439_v9 = vadd.f32 %v1438_v5, %v1434_v7 }
 0x60f   :  { %v5313_v27 = vsel %vm1445_vm1, %v1439_v9, %v5306_v4 }
 0x610   :  { %1448 = vrot.lane.b32.xlu1 %v5313_v27, %s4594_s18  ;;  %v1548_v47 = vrot.slane %v5313_v27, 6 }
 0x682   :  { %v1449_v24 = vpop.permute.xlu1 %1448 }
 0x683   :  { %4216 = vmatmul.mubr.msk.f32.vlgmr.msra.gmra.mxu1 %vm1250_vm15, %v1449_v24 }
 0x684   :  { %4219 = vmatpush3.msra.mxu1 %v5237_v19  ;;  %4226 = vmatprep.mubr.msk.f32.mxu1 %vm4591_vm7, %v4590_v22 }
 0x685   :  { %4220 = vmatprep.subr.mxu1 %v4590_v22 }
 0x686   :  { %4221 = vmatpush3.msra.mxu1 %v5244_v18 }
 0x687   :  { %4222 = vmatprep.subr.mxu1 %v4590_v22 }
 0x688   :  { %4223 = vmatpush3.msra.mxu1 %v5250_v43 }
 0x689   :  { %4224 = vmatprep.subr.mxu1 %v4590_v22 }
 0x68a   :  { %4225 = vmatpush3.msra.mxu1 %v5257_v54 }
 0x68b   :  { %4229 = vmatprep.subr.mxu1 %v4590_v22 }
 0x743   :  { %v1518_v25 = vpop.f32.mrf.mxu1 }
 0x744   :  { %v1519_v60 = vadd.f32 %v5294_v58, %v1518_v25 }
 0x745   :  { %v4217_v21 = vpop.f32.mrf.mxu1 }
 0x746   :  { %v1523_v11 = vrot.slane %v1519_v60, 6 }
 0x748   :  { %1532 = vrot.lane.b32.xlu0 %v1523_v11, %s4593_s0  ;;  %v1525_v26 = vadd.f32 %v1523_v11, %v5298_v16 }
 0x74a   :  { %v3743_v0 = vmul.f32 -1.442695, %v1525_v26 }
 0x74c   :  { %4425 = vpow2.f32 %v3743_v0 }
 0x759   :  { %v4426_v33 = vpop.eup %4425 }
 0x75a   :  { %v1529_v36 = vadd.f32 1.0, %v4426_v33 }
 0x75c   :  { %4427 = vrcp.f32 %v1529_v36 }
 0x769   :  { %v4428_v29 = vpop.eup %4427 }
 0x76a   :  { %v1542_v41 = vsub.f32 1.0, %v4428_v29  ;;  %v1550_v44 = vmul.f32 %v4428_v29, %v1548_v47 }
 0x7ba   :  { %v1533_v53 = vpop.permute.xlu0 %1532 }
 0x7bb   :  { %v1535_v20 = vmul.f32 %v4428_v29, %v1533_v53 }
 0x7bd   :  { %1537 = vrot.lane.b32.xlu1 %v1535_v20, %s4593_s0 }
 0x7c1   :  { %1555 = vperm.xlu1 %4418, %v1553_v56  }
 0x82f   :  { %v1538_v38 = vpop.permute.xlu1 %1537 }
 0x830   :  { %v1540_v45 = vadd.f32 %v1538_v38, %v5298_v16 }
 0x832   :  { %4429 = vtanh.f32 %v1540_v45 }
 0x83c   :  { %v5338_v39 = vpop.permute.xlu1 %1555 }
 0x83d   :  { %vm1557_vm3 = vcmp.eq.s32.totalorder %v5338_v39, 1 }
 0x83f   :  { %v4430_v51 = vpop.eup %4429 }
 0x840   :  { %1544 = vrot.lane.b32.xlu0 %v4430_v51, %s4594_s18 }
 0x8b2   :  { %v1545_v17 = vpop.permute.xlu0 %1544 }
 0x8b3   :  { %v1547_v50 = vmul.f32 %v1545_v17, %v1542_v41  ;;  %v5398_v17 = vld [vmem:[%s5867_s7] sm:$0x3] }
 0x8b4   :  { %vm1787_vm6 = vcmp.gt.s32.totalorder %v5398_v17, 3  ;;  %vm1901_vm9 = vcmp.gt.s32.totalorder %v5398_v17, 4  ;;  %vm2013_vm12 = vcmp.gt.s32.totalorder %v5398_v17, 5  ;;  %vm2131_vm2 = vcmp.gt.s32.totalorder %v5398_v17, 6 }
 0x8b5   :  { %v1551_v52 = vadd.f32 %v1550_v44, %v1547_v50  ;;  %v1788_v44 = vsel %vm1787_vm6, 1, %v4589_v30  ;;  %vm2248_vm6 = vcmp.gt.s32.totalorder %v5398_v17, 7 }
 0x8b7   :  { %v1559_v28 = vrot.slane %v1551_v52, 2 }
 0x8b9   :  { %1560 = vrot.lane.b32.xlu0 %v1559_v28, %s4594_s18 }
 0x92b   :  { %v1561_v55 = vpop.permute.xlu0 %1560 }
 0x92c   :  { %v5343_v42 = vsel %vm1557_vm3, %v1561_v55, %v1449_v24 }
 0x92d   :  { %4227 = vmatmul.mubr.msk.f32.vlgmr.msra.gmra.mxu1 %vm1250_vm15, %v5343_v42  ;;  %v1664_v10 = vrot.slane %v5343_v42, 4 }
 0x92e   :  { %4230 = vmatpush3.msra.mxu1 %v5237_v19  ;;  %4237 = vmatprep.mubr.msk.f32.mxu1 %vm4591_vm7, %v4590_v22 }
 0x92f   :  { %4231 = vmatprep.subr.mxu1 %v4590_v22 }
 0x930   :  { %4232 = vmatpush3.msra.mxu1 %v5244_v18 }
 0x931   :  { %4233 = vmatprep.subr.mxu1 %v4590_v22 }
 0x932   :  { %4234 = vmatpush3.msra.mxu1 %v5250_v43 }
 0x933   :  { %4235 = vmatprep.subr.mxu1 %v4590_v22 }
 0x934   :  { %4236 = vmatpush3.msra.mxu1 %v5257_v54 }
 0x935   :  { %4240 = vmatprep.subr.mxu1 %v4590_v22 }
 0x9ed   :  { %v1634_v35 = vpop.f32.mrf.mxu1 }
 0x9ee   :  { %v1635_v3 = vadd.f32 %v5294_v58, %v1634_v35 }
 0x9ef   :  { %v4228_v40 = vpop.f32.mrf.mxu1 }
 0x9f0   :  { %v1639_v23 = vrot.slane %v1635_v3, 4 }
 0x9f2   :  { %1648 = vrot.lane.b32.xlu1 %v1639_v23, %s4593_s0  ;;  %v1641_v59 = vadd.f32 %v1639_v23, %v5298_v16 }
 0x9f4   :  { %v3745_v37 = vmul.f32 -1.442695, %v1641_v59 }
 0x9f6   :  { %4431 = vpow2.f32 %v3745_v37 }
 0xa03   :  { %v4432_v12 = vpop.eup %4431 }
 0xa04   :  { %v1645_v61 = vadd.f32 1.0, %v4432_v12 }
 0xa06   :  { %4433 = vrcp.f32 %v1645_v61 }
 0xa13   :  { %v4434_v57 = vpop.eup %4433 }
 0xa14   :  { %v1658_v14 = vsub.f32 1.0, %v4434_v57 }
 0xa64   :  { %v1649_v46 = vpop.permute.xlu1 %1648 }
 0xa65   :  { %v1651_v62 = vmul.f32 %v4434_v57, %v1649_v46  ;;  %v1902_v46 = vsel %vm1901_vm9, 1, %v4589_v30 }
 0xa67   :  { %1653 = vrot.lane.b32.xlu0 %v1651_v62, %s4593_s0 }
 0xa6b   :  { %1665 = vrot.lane.b32.xlu0 %v1664_v10, %s4592_s26 }
 0xad9   :  { %v1654_v63 = vpop.permute.xlu0 %1653 }
 0xada   :  { %v1656_v32 = vadd.f32 %v1654_v63, %v5298_v16 }
 0xadc   :  { %4435 = vtanh.f32 %v1656_v32 }
 0xadd   :  { %v1666_v34 = vpop.permute.xlu0 %1665 }
 0xade   :  { %v1668_v7 = vmul.f32 %v4434_v57, %v1666_v34 }
 0xae9   :  { %v4436_v13 = vpop.eup %4435 }
 0xaea   :  { %1660 = vrot.lane.b32.xlu1 %v4436_v13, %s4594_s18 }
 0xaee   :  { %1673 = vperm.xlu1 %4418, %v1671_v1  }
 0xb5c   :  { %v1661_v5 = vpop.permute.xlu1 %1660 }
 0xb5d   :  { %v1663_v9 = vmul.f32 %v1661_v5, %v1658_v14 }
 0xb5f   :  { %v1669_v24 = vadd.f32 %v1668_v7, %v1663_v9 }
 0xb61   :  { %v1677_v25 = vrot.slane %v1669_v24, 4 }
 0xb63   :  { %1678 = vrot.lane.b32.xlu0 %v1677_v25, %s4594_s18 }
 0xb69   :  { %v5368_v60 = vpop.permute.xlu1 %1673 }
 0xb6a   :  { %vm1675_vm5 = vcmp.eq.s32.totalorder %v5368_v60, 1 }
 0xbd5   :  { %v1679_v31 = vpop.permute.xlu0 %1678 }
 0xbd6   :  { %v5374_v21 = vsel %vm1675_vm5, %v1679_v31, %v5343_v42 }
 0xbd7   :  { %4238 = vmatmul.mubr.msk.f32.vlgmr.msra.gmra.mxu1 %vm1250_vm15, %v5374_v21  ;;  %v1781_v51 = vrot.slane %v5374_v21, 2 }
 0xbd8   :  { %4241 = vmatpush3.msra.mxu1 %v5237_v19  ;;  %4248 = vmatprep.mubr.msk.f32.mxu1 %vm4591_vm7, %v4590_v22 }
 0xbd9   :  { %4242 = vmatprep.subr.mxu1 %v4590_v22 }
 0xbda   :  { %4243 = vmatpush3.msra.mxu1 %v5244_v18 }
 0xbdb   :  { %4244 = vmatprep.subr.mxu1 %v4590_v22 }
 0xbdc   :  { %4245 = vmatpush3.msra.mxu1 %v5250_v43 }
 0xbdd   :  { %4246 = vmatprep.subr.mxu1 %v4590_v22 }
 0xbde   :  { %4247 = vmatpush3.msra.mxu1 %v5257_v54 }
 0xbdf   :  { %4262 = vmatprep.subr.mxu1 %v4590_v22 }
 0xc97   :  { %v1751_v11 = vpop.f32.mrf.mxu1 }
 0xc98   :  { %v1752_v26 = vadd.f32 %v5294_v58, %v1751_v11 }
 0xc99   :  { %v4239_v0 = vpop.f32.mrf.mxu1 }
 0xc9a   :  { %v1756_v33 = vrot.slane %v1752_v26, 2 }
 0xc9c   :  { %1765 = vrot.lane.b32.xlu1 %v1756_v33, %s4593_s0  ;;  %v1758_v36 = vadd.f32 %v1756_v33, %v5298_v16 }
 0xc9e   :  { %v3747_v29 = vmul.f32 -1.442695, %v1758_v36 }
 0xca0   :  { %4437 = vpow2.f32 %v3747_v29 }
 0xcad   :  { %v4438_v53 = vpop.eup %4437 }
 0xcae   :  { %v1762_v20 = vadd.f32 1.0, %v4438_v53 }
 0xcb0   :  { %4439 = vrcp.f32 %v1762_v20 }
 0xcbd   :  { %v4440_v56 = vpop.eup %4439 }
 0xcbe   :  { %v1775_v28 = vsub.f32 1.0, %v4440_v56 }
 0xd0e   :  { %v1766_v38 = vpop.permute.xlu1 %1765 }
 0xd0f   :  { %v1768_v45 = vmul.f32 %v4440_v56, %v1766_v38 }
 0xd11   :  { %1770 = vrot.lane.b32.xlu0 %v1768_v45, %s4593_s0 }
 0xd15   :  { %1782 = vrot.lane.b32.xlu0 %v1781_v51, %s4592_s26 }
 0xd83   :  { %v1771_v47 = vpop.permute.xlu0 %1770 }
 0xd84   :  { %v1773_v41 = vadd.f32 %v1771_v47, %v5298_v16 }
 0xd86   :  { %4441 = vtanh.f32 %v1773_v41 }
 0xd87   :  { %v1783_v52 = vpop.permute.xlu0 %1782 }
 0xd88   :  { %v1785_v35 = vmul.f32 %v4440_v56, %v1783_v52 }
 0xd93   :  { %v4442_v50 = vpop.eup %4441 }
 0xd94   :  { %1777 = vrot.lane.b32.xlu1 %v4442_v50, %s4594_s18 }
 0xd98   :  { %1790 = vperm.xlu1 %4418, %v1788_v44  }
 0xe06   :  { %v1778_v55 = vpop.permute.xlu1 %1777 }
 0xe07   :  { %v1780_v3 = vmul.f32 %v1778_v55, %v1775_v28 }
 0xe09   :  { %v1786_v16 = vadd.f32 %v1785_v35, %v1780_v3 }
 0xe0b   :  { %v1794_v40 = vrot.slane %v1786_v16, 6 }
 0xe0d   :  { %1795 = vrot.lane.b32.xlu0 %v1794_v40, %s4594_s18 }
 0xe13   :  { %v5404_v23 = vpop.permute.xlu1 %1790 }
 0xe14   :  { %vm1792_vm8 = vcmp.eq.s32.totalorder %v5404_v23, 1 }
 0xe7f   :  { %v1796_v59 = vpop.permute.xlu0 %1795 }
 0xe80   :  { %v5410_v37 = vsel %vm1792_vm8, %v1796_v59, %v5374_v21 }
 0xe81   :  { %4249 = vmatmul.mubr.msk.f32.vlgmr.msra.gmra.mxu1 %vm1250_vm15, %v5410_v37 }
 0xe82   :  { %4263 = vmatpush3.msra.mxu1 %v5237_v19  ;;  %4270 = vmatprep.mubr.msk.f32.mxu1 %vm4591_vm7, %v4590_v22 }
 0xe83   :  { %4264 = vmatprep.subr.mxu1 %v4590_v22 }
 0xe84   :  { %4265 = vmatpush3.msra.mxu1 %v5244_v18 }
 0xe85   :  { %4266 = vmatprep.subr.mxu1 %v4590_v22 }
 0xe86   :  { %4267 = vmatpush3.msra.mxu1 %v5250_v43 }
 0xe87   :  { %4268 = vmatprep.subr.mxu1 %v4590_v22 }
 0xe88   :  { %4269 = vmatpush3.msra.mxu1 %v5257_v54 }
 0xf41   :  { %v1868_v12 = vpop.f32.mrf.mxu1 }
 0xf42   :  { %v1869_v61 = vadd.f32 %v5294_v58, %v1868_v12 }
 0xf43   :  { %v4250_v57 = vpop.f32.mrf.mxu1 }
 0xf44   :  { %1880 = vrot.lane.b32.xlu1 %v1869_v61, %s4593_s0  ;;  %v1872_v62 = vadd.f32 %v1869_v61, %v5289_v15 }
 0xf46   :  { %v3749_v10 = vmul.f32 -1.442695, %v1872_v62 }
 0xf48   :  { %1904 = vperm.xlu1 %4418, %v1902_v46   ;;  %4443 = vpow2.f32 %v3749_v10 }
 0xf4c   :  { %1896 = vrot.lane.b32.xlu1 %v5410_v37, %s4592_s26 }
 0xf55   :  { %v4444_v63 = vpop.eup %4443 }
 0xf56   :  { %v1876_v32 = vadd.f32 1.0, %v4444_v63 }
 0xf58   :  { %4445 = vrcp.f32 %v1876_v32 }
 0xf65   :  { %v4446_v13 = vpop.eup %4445 }
 0xf66   :  { %v1890_v25 = vsub.f32 1.0, %v4446_v13 }
 0xfb6   :  { %v1881_v1 = vpop.permute.xlu1 %1880 }
 0xfb7   :  { %v1883_v34 = vmul.f32 %v4446_v13, %v1881_v1 }
 0xfb9   :  { %1885 = vrot.lane.b32.xlu0 %v1883_v34, %s4593_s0 }
 0xfc3   :  { %v5433_v9 = vpop.permute.xlu1 %1904 }
 0xfc4   :  { %vm1906_vm11 = vcmp.eq.s32.totalorder %v5433_v9, 1 }
 0xfc7   :  { %v1897_v24 = vpop.permute.xlu1 %1896 }
 0xfc8   :  { %v1899_v11 = vmul.f32 %v4446_v13, %v1897_v24 }
0x102b   :  { %v1886_v14 = vpop.permute.xlu0 %1885 }
0x102c   :  { %v1888_v5 = vadd.f32 %v1886_v14, %v5289_v15 }
0x102e   :  { %4447 = vtanh.f32 %v1888_v5 }
0x103b   :  { %v4448_v7 = vpop.eup %4447 }
0x103c   :  { %1892 = vrot.lane.b32.xlu0 %v4448_v7, %s4594_s18 }
0x10ae   :  { %v1893_v31 = vpop.permute.xlu0 %1892 }
0x10af   :  { %v1895_v26 = vmul.f32 %v1893_v31, %v1890_v25 }
0x10b1   :  { %v1900_v0 = vadd.f32 %v1899_v11, %v1895_v26  ;;  %v2132_v11 = vsel %vm2131_vm2, 1, %v4589_v30  ;;  %vm2288_vm2 = vcmask 1045504  }
0x10b3   :  { %v5438_v33 = vsel %vm1906_vm11, %v1900_v0, %v1897_v24 }
0x10b4   :  { %1909 = vrot.lane.b32.xlu0 %v5438_v33, %s4594_s18  ;;  %v2009_v52 = vrot.slane %v5438_v33, 6 }
0x1126   :  { %v1910_v36 = vpop.permute.xlu0 %1909 }
0x1127   :  { %4260 = vmatmul.mubr.msk.f32.vlgmr.msra.gmra.mxu0 %vm1250_vm15, %v1910_v36 }
0x1128   :  { %4274 = vmatpush3.msra.mxu0 %v5237_v19  ;;  %4281 = vmatprep.mubr.msk.f32.mxu0 %vm4591_vm7, %v4590_v22 }
0x1129   :  { %4275 = vmatprep.subr.mxu0 %v4590_v22 }
0x112a   :  { %4276 = vmatpush3.msra.mxu0 %v5244_v18 }
0x112b   :  { %4277 = vmatprep.subr.mxu0 %v4590_v22 }
0x112c   :  { %4278 = vmatpush3.msra.mxu0 %v5250_v43 }
0x112d   :  { %4279 = vmatprep.subr.mxu0 %v4590_v22 }
0x112e   :  { %4280 = vmatpush3.msra.mxu0 %v5257_v54  ;;  %v2014_v54 = vsel %vm2013_vm12, 1, %v4589_v30  ;;  %vm2285_vm12 = vcmask 1041408  }
0x112f   :  { %4295 = vmatprep.subr.mxu0 %v4590_v22 }
0x11e7   :  { %v1979_v29 = vpop.f32.mrf.mxu0 }
0x11e8   :  { %v1980_v19 = vadd.f32 %v5294_v58, %v1979_v29 }
0x11e9   :  { %v4261_v53 = vpop.f32.mrf.mxu0 }
0x11ea   :  { %v1984_v20 = vrot.slane %v1980_v19, 6 }
0x11ec   :  { %1993 = vrot.lane.b32.xlu1 %v1984_v20, %s4593_s0  ;;  %v1986_v56 = vadd.f32 %v1984_v20, %v5289_v15 }
0x11ee   :  { %v3751_v18 = vmul.f32 -1.442695, %v1986_v56 }
0x11f0   :  { %4449 = vpow2.f32 %v3751_v18 }
0x11fd   :  { %v4450_v38 = vpop.eup %4449 }
0x11fe   :  { %v1990_v45 = vadd.f32 1.0, %v4450_v38  ;;  %v5489_v38 = vld [vmem:[%s5869_s9 + $0x38] sm:$0xff] }
0x1200   :  { %4451 = vrcp.f32 %v1990_v45 }
0x120d   :  { %v4452_v43 = vpop.eup %4451 }
0x120e   :  { %v2003_v28 = vsub.f32 1.0, %v4452_v43  ;;  %v2011_v3 = vmul.f32 %v4452_v43, %v2009_v52 }
0x125e   :  { %v1994_v51 = vpop.permute.xlu1 %1993 }
0x125f   :  { %v1996_v47 = vmul.f32 %v4452_v43, %v1994_v51  ;;  %v5501_v43 = vld [vmem:[%s5869_s9 + $0x30] sm:$0xff]  ;;  %v5510_v51 = vld [vmem:[%s5869_s9 + $0x28] sm:$0xff] }
0x1261   :  { %1998 = vrot.lane.b32.xlu0 %v1996_v47, %s4593_s0  ;;  %v5517_v47 = vld [vmem:[%s5869_s9 + $0x20] sm:$0xff] }
0x1265   :  { %2016 = vperm.xlu0 %4417, %v2014_v54  }
0x12d3   :  { %v1999_v41 = vpop.permute.xlu0 %1998 }
0x12d4   :  { %v2001_v50 = vadd.f32 %v1999_v41, %v5289_v15 }
0x12d6   :  { %4453 = vtanh.f32 %v2001_v50 }
0x12e0   :  { %v5463_v59 = vpop.permute.xlu0 %2016 }
0x12e1   :  { %vm2018_vm14 = vcmp.eq.s32.totalorder %v5463_v59, 1 }
0x12e3   :  { %v4454_v44 = vpop.eup %4453 }
0x12e4   :  { %2005 = vrot.lane.b32.xlu1 %v4454_v44, %s4594_s18 }
0x1356   :  { %v2006_v55 = vpop.permute.xlu1 %2005 }
0x1357   :  { %v2008_v35 = vmul.f32 %v2006_v55, %v2003_v28 }
0x1359   :  { %v2012_v16 = vadd.f32 %v2011_v3, %v2008_v35 }
0x135b   :  { %v2020_v40 = vrot.slane %v2012_v16, 2 }
0x135d   :  { %2021 = vrot.lane.b32.xlu1 %v2020_v40, %s4594_s18 }
0x13cf   :  { %v2022_v12 = vpop.permute.xlu1 %2021 }
0x13d0   :  { %v5468_v61 = vsel %vm2018_vm14, %v2022_v12, %v1910_v36 }
0x13d1   :  { %4271 = vmatmul.mubr.msk.f32.vlgmr.msra.gmra.mxu1 %vm1250_vm15, %v5468_v61  ;;  %v2125_v7 = vrot.slane %v5468_v61, 4 }
0x1491   :  { %v2095_v57 = vpop.f32.mrf.mxu1 }
0x1492   :  { %v2096_v46 = vadd.f32 %v5294_v58, %v2095_v57 }
0x1493   :  { %v4272_v62 = vpop.f32.mrf.mxu1 }
0x1494   :  { %v2100_v10 = vrot.slane %v2096_v46, 4 }
0x1496   :  { %2109 = vrot.lane.b32.xlu0 %v2100_v10, %s4593_s0  ;;  %v2102_v63 = vadd.f32 %v2100_v10, %v5289_v15  ;;  %v2249_v10 = vsel %vm2248_vm6, 1, %v4589_v30 }
0x1498   :  { %v3753_v32 = vmul.f32 -1.442695, %v2102_v63  ;;  %v2260_v63 = vrot.slane %v5343_v42, 6  ;;  %v2264_v42 = vrot.slane %v5374_v21, 4 }
0x149a   :  { %4455 = vpow2.f32 %v3753_v32  ;;  %v2272_v32 = vrot.slane %v5468_v61, 6 }
0x14a7   :  { %v4456_v13 = vpop.eup %4455 }
0x14a8   :  { %v2106_v1 = vadd.f32 1.0, %v4456_v13 }
0x14aa   :  { %4457 = vrcp.f32 %v2106_v1 }
0x14b7   :  { %v4458_v34 = vpop.eup %4457 }
0x14b8   :  { %v2119_v0 = vsub.f32 1.0, %v4458_v34 }
0x1508   :  { %v2110_v14 = vpop.permute.xlu0 %2109 }
0x1509   :  { %v2112_v5 = vmul.f32 %v4458_v34, %v2110_v14 }
0x150b   :  { %2114 = vrot.lane.b32.xlu1 %v2112_v5, %s4593_s0 }
0x150f   :  { %2126 = vrot.lane.b32.xlu1 %v2125_v7, %s4592_s26 }
0x157d   :  { %v2115_v24 = vpop.permute.xlu1 %2114 }
0x157e   :  { %v2117_v25 = vadd.f32 %v2115_v24, %v5289_v15 }
0x1580   :  { %4459 = vtanh.f32 %v2117_v25 }
0x1581   :  { %v2127_v26 = vpop.permute.xlu1 %2126 }
0x1582   :  { %v2129_v29 = vmul.f32 %v4458_v34, %v2127_v26  ;;  %v3757_v26 = vld [vmem:[%s5868_s8 + $0x28] sm:$0xff] }
0x158d   :  { %v4460_v31 = vpop.eup %4459 }
0x158e   :  { %2121 = vrot.lane.b32.xlu0 %v4460_v31, %s4594_s18  ;;  %v3759_v31 = vld [vmem:[%s5868_s8 + $0x38] sm:$0xff] }
0x158f   :  { %4284 = vmatprep.subr.mxu1 %v3759_v31 }
0x1590   :  { %4285 = vmatpush3.msra.mxu1 %v3759_v31 }
0x1592   :  { %2134 = vperm.xlu0 %4417, %v2132_v11   ;;  %v3758_v11 = vld [vmem:[%s5868_s8 + $0x30] sm:$0xff] }
0x1593   :  { %4286 = vmatprep.subr.mxu1 %v3758_v11 }
0x1594   :  { %4287 = vmatpush3.msra.mxu1 %v3758_v11 }
0x1595   :  { %4288 = vmatprep.subr.mxu1 %v3757_v26 }
0x1596   :  { %4289 = vmatpush3.msra.mxu1 %v3757_v26 }
0x1600   :  { %v2122_v36 = vpop.permute.xlu0 %2121 }
0x1601   :  { %v2124_v19 = vmul.f32 %v2122_v36, %v2119_v0 }
0x1603   :  { %v2130_v53 = vadd.f32 %v2129_v29, %v2124_v19  ;;  %v3756_v29 = vld [vmem:[%s5868_s8 + $0x20] sm:$0xff] }
0x1604   :  { %4290 = vmatprep.subr.mxu1 %v3756_v29 }
0x1605   :  { %v2138_v20 = vrot.slane %v2130_v53, 4  ;;  %4291 = vmatpush3.msra.mxu1 %v3756_v29 }
0x1606   :  { %4306 = vmatprep.subr.mxu1 %v4590_v22 }
0x1607   :  { %2139 = vrot.lane.b32.xlu1 %v2138_v20, %s4594_s18 }
0x160d   :  { %v5483_v56 = vpop.permute.xlu0 %2134 }
0x160e   :  { %vm2136_vm4 = vcmp.eq.s32.totalorder %v5483_v56, 1 }
0x1679   :  { %v2140_v18 = vpop.permute.xlu1 %2139 }
0x167a   :  { %v5494_v45 = vsel %vm2136_vm4, %v2140_v18, %v5468_v61  ;;  %v2268_v61 = vrot.slane %v5410_v37, 2  ;;  %v5583_v18 = vld [vmem:[%s5871_s11 + $0x1] ss:$0 sm:$0xff] }
0x167b   :  { %4282 = vmatmul.mubr.msk.f32.vlgmr.msra.gmra.mxu0 %vm1250_vm15, %v5494_v45  ;;  %v2276_v13 = vrot.slane %v5494_v45, 4 }
0x167c   :  { %4296 = vmatpush3.msra.mxu0 %v5489_v38  ;;  %4303 = vmatprep.mubr.msk.f32.mxu0 %vm4591_vm7, %v4590_v22 }
0x167d   :  { %4297 = vmatprep.subr.mxu0 %v4590_v22 }
0x167e   :  { %4298 = vmatpush3.msra.mxu0 %v5501_v43 }
0x167f   :  { %4299 = vmatprep.subr.mxu0 %v4590_v22 }
0x1680   :  { %4300 = vmatpush3.msra.mxu0 %v5510_v51 }
0x1681   :  { %4301 = vmatprep.subr.mxu0 %v4590_v22 }
0x1682   :  { %4302 = vmatpush3.msra.mxu0 %v5517_v47 }
0x1683   :  { %4304 = vmatmul.mubr.msk.f32.vlgmr.msra.gmra.mxu0 %vm1250_vm15, %v5212_v49  ;;  %4317 = vmatprep.subr.mxu0 %v4590_v22 }
0x1684   :  { %4318 = vmatpush3.msra.mxu0 %v5489_v38  ;;  %4325 = vmatprep.mubr.msk.f32.mxu0 %vm4591_vm7, %v4590_v22 }
0x1685   :  { %4319 = vmatprep.subr.mxu0 %v4590_v22 }
0x1686   :  { %4320 = vmatpush3.msra.mxu0 %v5501_v43 }
0x1687   :  { %4321 = vmatprep.subr.mxu0 %v4590_v22 }
0x1688   :  { %4322 = vmatpush3.msra.mxu0 %v5510_v51 }
0x1689   :  { %4323 = vmatprep.subr.mxu0 %v4590_v22 }
0x168a   :  { %4324 = vmatpush3.msra.mxu0 %v5517_v47 }
0x168b   :  { %4339 = vmatprep.subr.mxu0 %v4590_v22 }
0x173b   :  { %v2212_v49 = vpop.f32.mrf.mxu0 }
0x173c   :  { %v2213_v54 = vadd.f32 %v5294_v58, %v2212_v49  ;;  %v2242_v58 = vrot.slane %v5494_v45, 2 }
0x173d   :  { %v4283_v41 = vpop.f32.mrf.mxu0 }
0x173e   :  { %v2217_v50 = vrot.slane %v2213_v54, 2 }
0x1740   :  { %2226 = vrot.lane.b32.xlu0 %v2217_v50, %s4593_s0  ;;  %v2219_v28 = vadd.f32 %v2217_v50, %v5289_v15 }
0x1742   :  { %v3755_v55 = vmul.f32 -1.442695, %v2219_v28 }
0x1743   :  { %v5537_v44 = vpop.f32.mrf.mxu0 }
0x1744   :  { %4461 = vpow2.f32 %v3755_v55  ;;  %v2471_v49 = vadd.f32 %v5583_v18, %v5537_v44 }
0x1745   :  { %v4305_v52 = vpop.f32.mrf.mxu0 }
0x1751   :  { %v4462_v35 = vpop.eup %4461 }
0x1752   :  { %v2223_v3 = vadd.f32 1.0, %v4462_v35 }
0x1754   :  { %4463 = vrcp.f32 %v2223_v3 }
0x1761   :  { %v4464_v16 = vpop.eup %4463 }
0x1762   :  { %v2236_v17 = vsub.f32 1.0, %v4464_v16 }
0x17b2   :  { %v2227_v40 = vpop.permute.xlu0 %2226 }
0x17b3   :  { %v2229_v12 = vmul.f32 %v4464_v16, %v2227_v40 }
0x17b5   :  { %2231 = vrot.lane.b32.xlu1 %v2229_v12, %s4593_s0 }
0x17b9   :  { %2243 = vrot.lane.b32.xlu1 %v2242_v58, %s4592_s26 }
0x1827   :  { %v2232_v57 = vpop.permute.xlu1 %2231 }
0x1828   :  { %v2234_v46 = vadd.f32 %v2232_v57, %v5289_v15 }
0x182a   :  { %4465 = vtanh.f32 %v2234_v46 }
0x182b   :  { %v2244_v15 = vpop.permute.xlu1 %2243 }
0x182c   :  { %v2246_v34 = vmul.f32 %v4464_v16, %v2244_v15 }
0x1837   :  { %v4466_v62 = vpop.eup %4465 }
0x1838   :  { %2238 = vrot.lane.b32.xlu0 %v4466_v62, %s4594_s18 }
0x183c   :  { %2251 = vperm.xlu0 %4417, %v2249_v10  }
0x1840   :  { %2261 = vrot.lane.b32.xlu0 %v2260_v63, %s4592_s26 }
0x1844   :  { %2273 = vrot.lane.b32.xlu0 %v2272_v32, %s4592_s26 }
0x1848   :  { %2277 = vrot.lane.b32.xlu0 %v2276_v13, %s4592_s26 }
0x18aa   :  { %v2239_v1 = vpop.permute.xlu0 %2238 }
0x18ab   :  { %v2241_v14 = vmul.f32 %v2239_v1, %v2236_v17 }
0x18ad   :  { %v2247_v5 = vadd.f32 %v2246_v34, %v2241_v14 }
0x18af   :  { %v2255_v7 = vrot.slane %v2247_v5, 6 }
0x18b1   :  { %2256 = vrot.lane.b32.xlu1 %v2255_v7, %s4594_s18 }
0x18b5   :  { %2265 = vrot.lane.b32.xlu1 %v2264_v42, %s4592_s26 }
0x18b7   :  { %v5558_v24 = vpop.permute.xlu0 %2251 }
0x18b8   :  { %vm2253_vm9 = vcmp.eq.s32.totalorder %v5558_v24, 1 }
0x18b9   :  { %2269 = vrot.lane.b32.xlu1 %v2268_v61, %s4592_s26 }
0x18bb   :  { %v2262_v0 = vpop.permute.xlu0 %2261 }
0x18bc   :  { %v2286_v19 = vsel %vm2285_vm12, %v5313_v27, %v2262_v0 }
0x18bf   :  { %v2274_v27 = vpop.permute.xlu0 %2273 }
0x18c0   :  { %v2290_v41 = vsel %vm2285_vm12, %v5438_v33, %v2274_v27  ;;  %v3766_v33 = vld [vmem:[%s5870_s10 + $0x1] ss:$0 sm:$0xff] }
0x18c3   :  { %v2278_v54 = vpop.permute.xlu0 %2277 }
0x18c4   :  { %v2291_v50 = vsel %vm324_vm0, %v2290_v41, %v2278_v54 }
0x1923   :  { %v2257_v25 = vpop.permute.xlu1 %2256 }
0x1924   :  { %v2259_v21 = vsel %vm2253_vm9, %v2257_v25, %v5494_v45 }
0x1925   :  { %v2281_v37 = vrot.slane %v2259_v21, 2 }
0x1927   :  { %2282 = vrot.lane.b32.xlu1 %v2281_v37, %s4592_s26  ;;  %v2266_v36 = vpop.permute.xlu1 %2265 }
0x1928   :  { %v2287_v53 = vsel %vm324_vm0, %v2286_v19, %v2266_v36 }
0x192b   :  { %v2270_v20 = vpop.permute.xlu1 %2269 }
0x192c   :  { %v2289_v45 = vsel %vm2288_vm2, %v2287_v53, %v2270_v20 }
0x192d   :  { %2315 = vrot.lane.b32.xlu0 %v2289_v45, %s4594_s18 }
0x1931   :  { %2482 = vrot.lane.b32.xlu0 %v2471_v49, %s4593_s0 }
0x1999   :  { %v2283_v52 = vpop.permute.xlu1 %2282 }
0x199a   :  { %v2292_v28 = vsel %vm2288_vm2, %v2291_v50, %v2283_v52 }
0x199b   :  { %2317 = vrot.lane.b32.xlu1 %v2292_v28, %s4594_s18 }
0x199f   :  { %v2316_v55 = vpop.permute.xlu0 %2315 }
0x19a0   :  { %4292 = vmatprep.mubr.msk.f32.mxu1 %vm1250_vm15, %v2316_v55 }
0x19a3   :  { %v2483_v10 = vpop.permute.xlu0 %2482 }
0x1a0d   :  { %v2318_v35 = vpop.permute.xlu1 %2317 }
0x1a0e   :  { %4293 = vmatmul.mubr.msk.f32.vlgmr.msra.gmra.mxu1 %vm1250_vm15, %v2318_v35 }
0x1a0f   :  { %4307 = vmatpush3.msra.mxu1 %v5489_v38  ;;  %4314 = vmatprep.mubr.msk.f32.mxu1 %vm4591_vm7, %v4590_v22 }
0x1a10   :  { %4308 = vmatprep.subr.mxu1 %v4590_v22 }
0x1a11   :  { %4309 = vmatpush3.msra.mxu1 %v5501_v43 }
0x1a12   :  { %4310 = vmatprep.subr.mxu1 %v4590_v22 }
0x1a13   :  { %4311 = vmatpush3.msra.mxu1 %v5510_v51 }
0x1a14   :  { %4312 = vmatprep.subr.mxu1 %v4590_v22 }
0x1a15   :  { %4313 = vmatpush3.msra.mxu1 %v5517_v47 }
0x1a16   :  { %4328 = vmatprep.subr.mxu1 %v4590_v22 }
0x1ace   :  { %v4294_v44 = vpop.f32.mrf.mxu1 }
0x1acf   :  { %v5611_v3 = vadd.f32 %v4294_v44, %v3766_v33 }
0x1ad0   :  { %v2389_v16 = vpop.f32.mrf.mxu1 }
0x1ad1   :  { %v5613_v40 = vadd.f32 %v3766_v33, %v2389_v16 }
0x1ad3   :  { %v2474_v12 = vadd.f32 %v2471_v49, %v5613_v40 }
0x1ad5   :  { %v3771_v58 = vmul.f32 -1.442695, %v2474_v12 }
0x1ad7   :  { %4467 = vpow2.f32 %v3771_v58 }
0x1ae4   :  { %v4468_v57 = vpop.eup %4467 }
0x1ae5   :  { %v2478_v46 = vadd.f32 1.0, %v4468_v57 }
0x1ae7   :  { %4469 = vrcp.f32 %v2478_v46 }
0x1af4   :  { %v4470_v62 = vpop.eup %4469 }
0x1af5   :  { %v2485_v63 = vmul.f32 %v4470_v62, %v2483_v10  ;;  %v2492_v17 = vsub.f32 1.0, %v4470_v62  ;;  %v2498_v34 = vmul.f32 %v4470_v62, %v5306_v4 }
0x1af7   :  { %2487 = vrot.lane.b32.xlu1 %v2485_v63, %s4593_s0 }
0x1b69   :  { %v2488_v32 = vpop.permute.xlu1 %2487 }
0x1b6a   :  { %v2490_v13 = vadd.f32 %v2488_v32, %v5613_v40 }
0x1b6c   :  { %4471 = vtanh.f32 %v2490_v13 }
0x1b79   :  { %v4472_v15 = vpop.eup %4471 }
0x1b7a   :  { %2494 = vrot.lane.b32.xlu0 %v4472_v15, %s4594_s18 }
0x1bec   :  { %v2495_v1 = vpop.permute.xlu0 %2494 }
0x1bed   :  { %v2497_v14 = vmul.f32 %v2495_v1, %v2492_v17 }
0x1bef   :  { %v2499_v5 = vadd.f32 %v2498_v34, %v2497_v14 }
0x1bf1   :  { %v5623_v7 = vsel %vm1445_vm1, %v2499_v5, %v5306_v4 }
0x1bf2   :  { %2502 = vrot.lane.b32.xlu1 %v5623_v7, %s4594_s18  ;;  %v2602_v20 = vrot.slane %v5623_v7, 6 }
0x1c64   :  { %v2503_v42 = vpop.permute.xlu1 %2502 }
0x1c65   :  { %4315 = vmatmul.mubr.msk.f32.vlgmr.msra.gmra.mxu1 %vm1250_vm15, %v2503_v42 }
0x1c66   :  { %4329 = vmatpush3.msra.mxu1 %v5489_v38  ;;  %4336 = vmatprep.mubr.msk.f32.mxu1 %vm4591_vm7, %v4590_v22 }
0x1c67   :  { %4330 = vmatprep.subr.mxu1 %v4590_v22 }
0x1c68   :  { %4331 = vmatpush3.msra.mxu1 %v5501_v43 }
0x1c69   :  { %4332 = vmatprep.subr.mxu1 %v4590_v22 }
0x1c6a   :  { %4333 = vmatpush3.msra.mxu1 %v5510_v51 }
0x1c6b   :  { %4334 = vmatprep.subr.mxu1 %v4590_v22 }
0x1c6c   :  { %4335 = vmatpush3.msra.mxu1 %v5517_v47 }
0x1c6d   :  { %4350 = vmatprep.subr.mxu1 %v4590_v22 }
0x1d25   :  { %v2572_v2 = vpop.f32.mrf.mxu1 }
0x1d26   :  { %v2573_v4 = vadd.f32 %v5583_v18, %v2572_v2 }
0x1d27   :  { %v4316_v61 = vpop.f32.mrf.mxu1 }
0x1d28   :  { %v2577_v25 = vrot.slane %v2573_v4, 6 }
0x1d2a   :  { %2586 = vrot.lane.b32.xlu0 %v2577_v25, %s4593_s0  ;;  %v2579_v31 = vadd.f32 %v2577_v25, %v5613_v40 }
0x1d2c   :  { %v3773_v11 = vmul.f32 -1.442695, %v2579_v31 }
0x1d2e   :  { %4473 = vpow2.f32 %v3773_v11 }
0x1d3b   :  { %v4474_v21 = vpop.eup %4473 }
0x1d3c   :  { %v2583_v37 = vadd.f32 1.0, %v4474_v21 }
0x1d3e   :  { %4475 = vrcp.f32 %v2583_v37 }
0x1d4b   :  { %v4476_v26 = vpop.eup %4475 }
0x1d4c   :  { %v2596_v45 = vsub.f32 1.0, %v4476_v26  ;;  %v2604_v54 = vmul.f32 %v4476_v26, %v2602_v20 }
0x1d9c   :  { %v2587_v0 = vpop.permute.xlu0 %2586 }
0x1d9d   :  { %v2589_v36 = vmul.f32 %v4476_v26, %v2587_v0 }
0x1d9f   :  { %2591 = vrot.lane.b32.xlu1 %v2589_v36, %s4593_s0 }
0x1e11   :  { %v2592_v29 = vpop.permute.xlu1 %2591 }
0x1e12   :  { %v2594_v19 = vadd.f32 %v2592_v29, %v5613_v40 }
0x1e14   :  { %4477 = vtanh.f32 %v2594_v19 }
0x1e21   :  { %v4478_v53 = vpop.eup %4477 }
0x1e22   :  { %2598 = vrot.lane.b32.xlu0 %v4478_v53, %s4594_s18 }
0x1e94   :  { %v2599_v49 = vpop.permute.xlu0 %2598 }
0x1e95   :  { %v2601_v27 = vmul.f32 %v2599_v49, %v2596_v45 }
0x1e97   :  { %v2605_v41 = vadd.f32 %v2604_v54, %v2601_v27 }
0x1e99   :  { %v2607_v50 = vrot.slane %v2605_v41, 2 }
0x1e9b   :  { %2608 = vrot.lane.b32.xlu1 %v2607_v50, %s4594_s18 }
0x1f0d   :  { %v2609_v52 = vpop.permute.xlu1 %2608 }
0x1f0e   :  { %v5648_v28 = vsel %vm1557_vm3, %v2609_v52, %v2503_v42 }
0x1f0f   :  { %4326 = vmatmul.mubr.msk.f32.vlgmr.msra.gmra.mxu0 %vm1250_vm15, %v5648_v28  ;;  %v2712_v10 = vrot.slane %v5648_v28, 4 }
0x1f10   :  { %4340 = vmatpush3.msra.mxu0 %v5489_v38  ;;  %4347 = vmatprep.mubr.msk.f32.mxu0 %vm4591_vm7, %v4590_v22 }
0x1f11   :  { %4341 = vmatprep.subr.mxu0 %v4590_v22 }
0x1f12   :  { %4342 = vmatpush3.msra.mxu0 %v5501_v43 }
0x1f13   :  { %4343 = vmatprep.subr.mxu0 %v4590_v22 }
0x1f14   :  { %4344 = vmatpush3.msra.mxu0 %v5510_v51 }
0x1f15   :  { %4345 = vmatprep.subr.mxu0 %v4590_v22 }
0x1f16   :  { %4346 = vmatpush3.msra.mxu0 %v5517_v47 }
0x1f17   :  { %4361 = vmatprep.subr.mxu0 %v4590_v22 }
0x1fcf   :  { %v2682_v39 = vpop.f32.mrf.mxu0 }
0x1fd0   :  { %v2683_v55 = vadd.f32 %v5583_v18, %v2682_v39 }
0x1fd1   :  { %v4327_v35 = vpop.f32.mrf.mxu0 }
0x1fd2   :  { %v2687_v33 = vrot.slane %v2683_v55, 4 }
0x1fd4   :  { %2696 = vrot.lane.b32.xlu0 %v2687_v33, %s4593_s0  ;;  %v2689_v44 = vadd.f32 %v2687_v33, %v5613_v40 }
0x1fd6   :  { %v3775_v16 = vmul.f32 -1.442695, %v2689_v44 }
0x1fd8   :  { %4479 = vpow2.f32 %v3775_v16 }
0x1fe5   :  { %v4480_v12 = vpop.eup %4479 }
0x1fe6   :  { %v2693_v58 = vadd.f32 1.0, %v4480_v12 }
0x1fe8   :  { %4481 = vrcp.f32 %v2693_v58 }
0x1ff5   :  { %v4482_v57 = vpop.eup %4481 }
0x1ff6   :  { %v2706_v17 = vsub.f32 1.0, %v4482_v57 }
0x2046   :  { %v2697_v46 = vpop.permute.xlu0 %2696 }
0x2047   :  { %v2699_v62 = vmul.f32 %v4482_v57, %v2697_v46 }
0x2049   :  { %2701 = vrot.lane.b32.xlu1 %v2699_v62, %s4593_s0 }
0x204d   :  { %2713 = vrot.lane.b32.xlu1 %v2712_v10, %s4592_s26 }
0x20bb   :  { %v2702_v63 = vpop.permute.xlu1 %2701 }
0x20bc   :  { %v2704_v32 = vadd.f32 %v2702_v63, %v5613_v40 }
0x20be   :  { %4483 = vtanh.f32 %v2704_v32 }
0x20bf   :  { %v2714_v15 = vpop.permute.xlu1 %2713 }
0x20c0   :  { %v2716_v34 = vmul.f32 %v4482_v57, %v2714_v15 }
0x20cb   :  { %v4484_v13 = vpop.eup %4483 }
0x20cc   :  { %2708 = vrot.lane.b32.xlu0 %v4484_v13, %s4594_s18 }
0x213e   :  { %v2709_v1 = vpop.permute.xlu0 %2708 }
0x213f   :  { %v2711_v14 = vmul.f32 %v2709_v1, %v2706_v17 }
0x2141   :  { %v2717_v5 = vadd.f32 %v2716_v34, %v2711_v14 }
0x2143   :  { %v2719_v42 = vrot.slane %v2717_v5, 4 }
0x2145   :  { %2720 = vrot.lane.b32.xlu0 %v2719_v42, %s4594_s18 }
0x21b7   :  { %v2721_v2 = vpop.permute.xlu0 %2720 }
0x21b8   :  { %v5674_v4 = vsel %vm1675_vm5, %v2721_v2, %v5648_v28 }
0x21b9   :  { %4337 = vmatmul.mubr.msk.f32.vlgmr.msra.gmra.mxu1 %vm1250_vm15, %v5674_v4  ;;  %v2823_v19 = vrot.slane %v5674_v4, 2 }
0x21ba   :  { %4351 = vmatpush3.msra.mxu1 %v5489_v38  ;;  %4358 = vmatprep.mubr.msk.f32.mxu1 %vm4591_vm7, %v4590_v22 }
0x21bb   :  { %4352 = vmatprep.subr.mxu1 %v4590_v22 }
0x21bc   :  { %4353 = vmatpush3.msra.mxu1 %v5501_v43 }
0x21bd   :  { %4354 = vmatprep.subr.mxu1 %v4590_v22 }
0x21be   :  { %4355 = vmatpush3.msra.mxu1 %v5510_v51 }
0x21bf   :  { %4356 = vmatprep.subr.mxu1 %v4590_v22 }
0x21c0   :  { %4357 = vmatpush3.msra.mxu1 %v5517_v47 }
0x21c1   :  { %4372 = vmatprep.subr.mxu1 %v4590_v22 }
0x2279   :  { %v2793_v60 = vpop.f32.mrf.mxu1 }
0x227a   :  { %v2794_v61 = vadd.f32 %v5583_v18, %v2793_v60 }
0x227b   :  { %v4338_v25 = vpop.f32.mrf.mxu1 }
0x227c   :  { %v2798_v31 = vrot.slane %v2794_v61, 2 }
0x227e   :  { %2807 = vrot.lane.b32.xlu1 %v2798_v31, %s4593_s0  ;;  %v2800_v11 = vadd.f32 %v2798_v31, %v5613_v40 }
0x2280   :  { %v3777_v21 = vmul.f32 -1.442695, %v2800_v11 }
0x2282   :  { %4485 = vpow2.f32 %v3777_v21 }
0x228f   :  { %v4486_v37 = vpop.eup %4485 }
0x2290   :  { %v2804_v26 = vadd.f32 1.0, %v4486_v37 }
0x2292   :  { %4487 = vrcp.f32 %v2804_v26 }
0x229f   :  { %v4488_v0 = vpop.eup %4487 }
0x22a0   :  { %v2817_v27 = vsub.f32 1.0, %v4488_v0 }
0x22f0   :  { %v2808_v36 = vpop.permute.xlu1 %2807 }
0x22f1   :  { %v2810_v29 = vmul.f32 %v4488_v0, %v2808_v36 }
0x22f3   :  { %2812 = vrot.lane.b32.xlu0 %v2810_v29, %s4593_s0 }
0x22f7   :  { %2824 = vrot.lane.b32.xlu0 %v2823_v19, %s4592_s26 }
0x2365   :  { %v2813_v53 = vpop.permute.xlu0 %2812 }
0x2366   :  { %v2815_v20 = vadd.f32 %v2813_v53, %v5613_v40 }
0x2368   :  { %4489 = vtanh.f32 %v2815_v20 }
0x2369   :  { %v2825_v49 = vpop.permute.xlu0 %2824 }
0x236a   :  { %v2827_v41 = vmul.f32 %v4488_v0, %v2825_v49 }
0x2375   :  { %v4490_v45 = vpop.eup %4489 }
0x2376   :  { %2819 = vrot.lane.b32.xlu1 %v4490_v45, %s4594_s18 }
0x23e8   :  { %v2820_v54 = vpop.permute.xlu1 %2819 }
0x23e9   :  { %v2822_v50 = vmul.f32 %v2820_v54, %v2817_v27 }
0x23eb   :  { %v2828_v52 = vadd.f32 %v2827_v41, %v2822_v50 }
0x23ed   :  { %v2830_v39 = vrot.slane %v2828_v52, 6 }
0x23ef   :  { %2831 = vrot.lane.b32.xlu1 %v2830_v39, %s4594_s18 }
0x2461   :  { %v2832_v55 = vpop.permute.xlu1 %2831 }
0x2462   :  { %v5700_v35 = vsel %vm1792_vm8, %v2832_v55, %v5674_v4 }
0x2463   :  { %4348 = vmatmul.mubr.msk.f32.vlgmr.msra.gmra.mxu0 %vm1250_vm15, %v5700_v35 }
0x2464   :  { %4362 = vmatpush3.msra.mxu0 %v5489_v38  ;;  %4369 = vmatprep.mubr.msk.f32.mxu0 %vm4591_vm7, %v4590_v22 }
0x2465   :  { %4363 = vmatprep.subr.mxu0 %v4590_v22 }
0x2466   :  { %4364 = vmatpush3.msra.mxu0 %v5501_v43 }
0x2467   :  { %4365 = vmatprep.subr.mxu0 %v4590_v22 }
0x2468   :  { %4366 = vmatpush3.msra.mxu0 %v5510_v51 }
0x2469   :  { %4367 = vmatprep.subr.mxu0 %v4590_v22 }
0x246a   :  { %4368 = vmatpush3.msra.mxu0 %v5517_v47 }
0x2523   :  { %v2904_v23 = vpop.f32.mrf.mxu0 }
0x2524   :  { %v2905_v40 = vadd.f32 %v5583_v18, %v2904_v23 }
0x2525   :  { %v4349_v33 = vpop.f32.mrf.mxu0 }
0x2526   :  { %2916 = vrot.lane.b32.xlu0 %v2905_v40, %s4593_s0  ;;  %v2908_v44 = vadd.f32 %v2905_v40, %v5611_v3 }
0x2528   :  { %v3779_v16 = vmul.f32 -1.442695, %v2908_v44 }
0x252a   :  { %4491 = vpow2.f32 %v3779_v16 }
0x2537   :  { %v4492_v12 = vpop.eup %4491 }
0x2538   :  { %v2912_v58 = vadd.f32 1.0, %v4492_v12 }
0x253a   :  { %4493 = vrcp.f32 %v2912_v58 }
0x2547   :  { %v4494_v57 = vpop.eup %4493 }
0x2548   :  { %v2926_v15 = vsub.f32 1.0, %v4494_v57 }
0x2598   :  { %v2917_v46 = vpop.permute.xlu0 %2916 }
0x2599   :  { %v2919_v62 = vmul.f32 %v4494_v57, %v2917_v46 }
0x259b   :  { %2921 = vrot.lane.b32.xlu1 %v2919_v62, %s4593_s0 }
0x259f   :  { %2932 = vrot.lane.b32.xlu1 %v5700_v35, %s4592_s26 }
0x260d   :  { %v2922_v10 = vpop.permute.xlu1 %2921 }
0x260e   :  { %v2924_v63 = vadd.f32 %v2922_v10, %v5611_v3 }
0x2610   :  { %4495 = vtanh.f32 %v2924_v63 }
0x2611   :  { %v2933_v13 = vpop.permute.xlu1 %2932 }
0x2612   :  { %v2935_v1 = vmul.f32 %v4494_v57, %v2933_v13 }
0x261d   :  { %v4496_v32 = vpop.eup %4495 }
0x261e   :  { %2928 = vrot.lane.b32.xlu0 %v4496_v32, %s4594_s18 }
0x2690   :  { %v2929_v17 = vpop.permute.xlu0 %2928 }
0x2691   :  { %v2931_v34 = vmul.f32 %v2929_v17, %v2926_v15 }
0x2693   :  { %v2936_v14 = vadd.f32 %v2935_v1, %v2931_v34 }
0x2695   :  { %v5723_v5 = vsel %vm1906_vm11, %v2936_v14, %v2933_v13 }
0x2696   :  { %2939 = vrot.lane.b32.xlu0 %v5723_v5, %s4594_s18  ;;  %v3039_v0 = vrot.slane %v5723_v5, 6 }
0x2708   :  { %v2940_v42 = vpop.permute.xlu0 %2939 }
0x2709   :  { %4359 = vmatmul.mubr.msk.f32.vlgmr.msra.gmra.mxu1 %vm1250_vm15, %v2940_v42 }
0x270a   :  { %4373 = vmatpush3.msra.mxu1 %v5489_v38  ;;  %4380 = vmatprep.mubr.msk.f32.mxu1 %vm4591_vm7, %v4590_v22 }
0x270b   :  { %4374 = vmatprep.subr.mxu1 %v4590_v22 }
0x270c   :  { %4375 = vmatpush3.msra.mxu1 %v5501_v43 }
0x270d   :  { %4376 = vmatprep.subr.mxu1 %v4590_v22 }
0x270e   :  { %4377 = vmatpush3.msra.mxu1 %v5510_v51 }
0x270f   :  { %4378 = vmatprep.subr.mxu1 %v4590_v22 }
0x2710   :  { %4379 = vmatpush3.msra.mxu1 %v5517_v47 }
0x27c9   :  { %v3009_v9 = vpop.f32.mrf.mxu1 }
0x27ca   :  { %v3010_v2 = vadd.f32 %v5583_v18, %v3009_v9 }
0x27cb   :  { %v4360_v60 = vpop.f32.mrf.mxu1 }
0x27cc   :  { %v3014_v38 = vrot.slane %v3010_v2, 6 }
0x27ce   :  { %3023 = vrot.lane.b32.xlu1 %v3014_v38, %s4593_s0  ;;  %v3016_v61 = vadd.f32 %v3014_v38, %v5611_v3 }
0x27d0   :  { %v3781_v25 = vmul.f32 -1.442695, %v3016_v61 }
0x27d2   :  { %4497 = vpow2.f32 %v3781_v25 }
0x27df   :  { %v4498_v43 = vpop.eup %4497 }
0x27e0   :  { %v3020_v31 = vadd.f32 1.0, %v4498_v43 }
0x27e2   :  { %4499 = vrcp.f32 %v3020_v31 }
0x27ef   :  { %v4500_v11 = vpop.eup %4499 }
0x27f0   :  { %v3033_v36 = vsub.f32 1.0, %v4500_v11  ;;  %v3041_v53 = vmul.f32 %v4500_v11, %v3039_v0 }
0x2840   :  { %v3024_v51 = vpop.permute.xlu1 %3023 }
0x2841   :  { %v3026_v21 = vmul.f32 %v4500_v11, %v3024_v51  ;;  %v3272_v11 = vrot.slane %v5648_v28, 6  ;;  %v3276_v51 = vrot.slane %v5674_v4, 4 }
0x2843   :  { %3028 = vrot.lane.b32.xlu0 %v3026_v21, %s4593_s0 }
0x28b5   :  { %v3029_v47 = vpop.permute.xlu0 %3028 }
0x28b6   :  { %v3031_v37 = vadd.f32 %v3029_v47, %v5611_v3 }
0x28b8   :  { %4501 = vtanh.f32 %v3031_v37 }
0x28c5   :  { %v4502_v26 = vpop.eup %4501 }
0x28c6   :  { %3035 = vrot.lane.b32.xlu1 %v4502_v26, %s4594_s18 }
0x2938   :  { %v3036_v29 = vpop.permute.xlu1 %3035 }
0x2939   :  { %v3038_v19 = vmul.f32 %v3036_v29, %v3033_v36 }
0x293b   :  { %v3042_v20 = vadd.f32 %v3041_v53, %v3038_v19 }
0x293d   :  { %v3044_v45 = vrot.slane %v3042_v20, 2 }
0x293f   :  { %3045 = vrot.lane.b32.xlu0 %v3044_v45, %s4594_s18 }
0x29b1   :  { %v3046_v49 = vpop.permute.xlu0 %3045 }
0x29b2   :  { %v3049_v27 = vsel %vm2018_vm14, %v3046_v49, %v2940_v42  ;;  %v3280_v49 = vrot.slane %v5700_v35, 2  ;;  %v3395_v35 = vld [vmem:[%s5872_s12 + $0x18] sm:$0xff] }
0x29b3   :  { %4370 = vmatmul.mubr.msk.f32.vlgmr.msra.gmra.mxu0 %vm1250_vm15, %v3049_v27  ;;  %v3149_v16 = vrot.slane %v3049_v27, 4  ;;  %4390 = vmatprep.subr.mxu0 %v3395_v35 }
0x29b4   :  { %4391 = vmatpush3.msra.mxu0 %v3395_v35 }
0x2a73   :  { %v3119_v54 = vpop.f32.mrf.mxu0 }
0x2a74   :  { %v3120_v41 = vadd.f32 %v5583_v18, %v3119_v54 }
0x2a75   :  { %v4371_v50 = vpop.f32.mrf.mxu0 }
0x2a76   :  { %v3124_v52 = vrot.slane %v3120_v41, 4  ;;  %v1141_v50 = vshra.s32 %v4966_v8, 3 }
0x2a78   :  { %3133 = vrot.lane.b32.xlu1 %v3124_v52, %s4593_s0  ;;  %v3126_v39 = vadd.f32 %v3124_v52, %v5611_v3 }
0x2a7a   :  { %v3783_v55 = vmul.f32 -1.442695, %v3126_v39 }
0x2a7c   :  { %4503 = vpow2.f32 %v3783_v55  ;;  %v3394_v55 = vld [vmem:[%s5872_s12 + $0x10] sm:$0xff] }
0x2a7d   :  { %4392 = vmatprep.subr.mxu0 %v3394_v55 }
0x2a7e   :  { %4393 = vmatpush3.msra.mxu0 %v3394_v55 }
0x2a89   :  { %v4504_v23 = vpop.eup %4503 }
0x2a8a   :  { %v3130_v40 = vadd.f32 1.0, %v4504_v23 }
0x2a8c   :  { %4505 = vrcp.f32 %v3130_v40 }
0x2a99   :  { %v4506_v33 = vpop.eup %4505 }
0x2a9a   :  { %v3143_v62 = vsub.f32 1.0, %v4506_v33 }
0x2aea   :  { %v3134_v44 = vpop.permute.xlu1 %3133 }
0x2aeb   :  { %v3136_v59 = vmul.f32 %v4506_v33, %v3134_v44 }
0x2aed   :  { %3138 = vrot.lane.b32.xlu0 %v3136_v59, %s4593_s0 }
0x2af1   :  { %3150 = vrot.lane.b32.xlu0 %v3149_v16, %s4592_s26 }
0x2b5f   :  { %v3139_v12 = vpop.permute.xlu0 %3138 }
0x2b60   :  { %v3141_v58 = vadd.f32 %v3139_v12, %v5611_v3 }
0x2b62   :  { %4507 = vtanh.f32 %v3141_v58 }
0x2b63   :  { %v3151_v46 = vpop.permute.xlu0 %3150 }
0x2b64   :  { %v3153_v63 = vmul.f32 %v4506_v33, %v3151_v46 }
0x2b6f   :  { %v4508_v57 = vpop.eup %4507 }
0x2b70   :  { %3145 = vrot.lane.b32.xlu1 %v4508_v57, %s4594_s18 }
0x2be2   :  { %v3146_v10 = vpop.permute.xlu1 %3145 }
0x2be3   :  { %v3148_v32 = vmul.f32 %v3146_v10, %v3143_v62  ;;  %v1142_v62 = vshra.s32 %v5210_v48, 3 }
0x2be5   :  { %v3154_v13 = vadd.f32 %v3153_v63, %v3148_v32 }
0x2be7   :  { %v3156_v15 = vrot.slane %v3154_v13, 4  ;;  %v3393_v13 = vld [vmem:[%s5872_s12 + $0x8] sm:$0xff] }
0x2be8   :  { %4394 = vmatprep.subr.mxu0 %v3393_v13 }
0x2be9   :  { %3157 = vrot.lane.b32.xlu1 %v3156_v15, %s4594_s18  ;;  %4395 = vmatpush3.msra.mxu0 %v3393_v13 }
0x2c5b   :  { %v3158_v17 = vpop.permute.xlu1 %3157 }
0x2c5c   :  { %v3160_v1 = vsel %vm2136_vm4, %v3158_v17, %v3049_v27 }
0x2c5d   :  { %4381 = vmatmul.mubr.msk.f32.vlgmr.msra.gmra.mxu1 %vm1250_vm15, %v3160_v1  ;;  %v3260_v31 = vrot.slane %v3160_v1, 2  ;;  %v3288_v20 = vrot.slane %v3160_v1, 4 }
0x2d1d   :  { %v3230_v34 = vpop.f32.mrf.mxu1 }
0x2d1e   :  { %v3231_v14 = vadd.f32 %v5583_v18, %v3230_v34  ;;  %v3284_v18 = vrot.slane %v3049_v27, 6  ;;  %v1137_v27 = vand.u32 7, %v4966_v8 }
0x2d1f   :  { %v4382_v42 = vpop.f32.mrf.mxu1 }
0x2d20   :  { %v3235_v9 = vrot.slane %v3231_v14, 2  ;;  %v1139_v41 = vmul.u32 2, %v1137_v27 }
0x2d22   :  { %3244 = vrot.lane.b32.xlu0 %v3235_v9, %s4593_s0  ;;  %v3237_v2 = vadd.f32 %v3235_v9, %v5611_v3  ;;  %v1143_v52 = vadd.s32 %v1141_v50, %v1139_v41 }
0x2d24   :  { %v3785_v60 = vmul.f32 -1.442695, %v3237_v2  ;;  %vm1145_vm7 = vcmp.eq.s32.totalorder %v4963_v6, %v1143_v52 }
0x2d25   :  { %v3732_v39 = vsel %vm1145_vm7, 1.0, %v4590_v22 }
0x2d26   :  { %4509 = vpow2.f32 %v3785_v60  ;;  %4387 = vmatprep.mubr.msk.f32.mxu1 %vm1151_vm13, %v3732_v39 }
0x2d33   :  { %v4510_v38 = vpop.eup %4509 }
0x2d34   :  { %v3241_v61 = vadd.f32 1.0, %v4510_v38 }
0x2d36   :  { %4511 = vrcp.f32 %v3241_v61 }
0x2d43   :  { %v4512_v25 = vpop.eup %4511 }
0x2d44   :  { %v3254_v0 = vsub.f32 1.0, %v4512_v25 }
0x2d94   :  { %v3245_v43 = vpop.permute.xlu0 %3244 }
0x2d95   :  { %v3247_v56 = vmul.f32 %v4512_v25, %v3245_v43 }
0x2d97   :  { %3249 = vrot.lane.b32.xlu1 %v3247_v56, %s4593_s0 }
0x2d9b   :  { %3261 = vrot.lane.b32.xlu1 %v3260_v31, %s4592_s26 }
0x2d9f   :  { %3285 = vrot.lane.b32.xlu1 %v3284_v18, %s4592_s26 }
0x2da3   :  { %3273 = vrot.lane.b32.xlu1 %v3272_v11, %s4592_s26 }
0x2da7   :  { %3277 = vrot.lane.b32.xlu1 %v3276_v51, %s4592_s26 }
0x2e09   :  { %v3250_v21 = vpop.permute.xlu1 %3249 }
0x2e0a   :  { %v3252_v47 = vadd.f32 %v3250_v21, %v5611_v3  ;;  %v3511_v21 = vld [vmem:[%s5874_s14 + $0x8] sm:$0xff] }
0x2e0c   :  { %4513 = vtanh.f32 %v3252_v47  ;;  %v3510_v47 = vld [vmem:[%s5874_s14] sm:$0xff]  ;;  %s4595_s14 = smov [#allocation2]  }
0x2e0d   :  { %v3262_v26 = vpop.permute.xlu1 %3261  ;;  %s3616_s24 = sshll.u32 %s4595_s14, 4  ;;  %s3617_s24 = int_to_ptr.vmem [resolvable:$true] %s3616_s24 }
0x2e0e   :  { %v3264_v29 = vmul.f32 %v4512_v25, %v3262_v26  ;;  %s4524_s9 = scalar_lea.vmem %s3617_s24, 256  ;;  %p4529_p1 = scmp.lt.s32.totalorder %s3617_s24, %s3617_s24 }
0x2e0f   :  { %p4525_p0 = scmp.ne.s32.totalorder %s3617_s24, %s4524_s9  ;;  %p4530_p2 = scmp.lt.s32.totalorder %s4524_s9, %s4524_s9 }
0x2e11   :  { %v3286_v54 = vpop.permute.xlu1 %3285  ;;  %p4531_p3 = por %p4530_p2, %p4529_p1 }
0x2e12   :  { %v3300_v8 = vsel %vm2285_vm12, %v5723_v5, %v3286_v54  ;;  %v1138_v5 = vand.u32 7, %v5210_v48  ;;  %v3392_v48 = vld [vmem:[%s5872_s12] sm:$0xff] }
0x2e13   :  { %4396 = vmatprep.subr.mxu0 %v3392_v48  ;;  %p4532_p4 = pnand %p4531_p3, %p4525_p0 }
0x2e14   :  { %v1140_v46 = vmul.u32 2, %v1138_v5  ;;  %4397 = vmatpush3.msra.mxu0 %v3392_v48 }
0x2e15   :  { %v3274_v24 = vpop.permute.xlu1 %3273 }
0x2e16   :  { %v3297_v16 = vsel %vm2285_vm12, %v5623_v7, %v3274_v24  ;;  %v1144_v10 = vadd.s32 %v1142_v62, %v1140_v46 }
0x2e18   :  { %vm1146_vm1 = vcmp.eq.s32.totalorder %v4963_v6, %v1144_v10 }
0x2e19   :  { %v4514_v37 = vpop.eup %4513  ;;  %v3278_v44 = vpop.permute.xlu1 %3277  ;;  %v3733_v7 = vsel %vm1146_vm1, 1.0, %v4590_v22  ;;  %v3788_v22 = vld [vmem:[%s5873_s13] ss:$0 sm:$0xff] }
0x2e1a   :  { %3256 = vrot.lane.b32.xlu0 %v4514_v37, %s4594_s18  ;;  %v3298_v12 = vsel %vm324_vm0, %v3297_v16, %v3278_v44 }
0x2e8c   :  { %v3257_v36 = vpop.permute.xlu0 %3256 }
0x2e8d   :  { %v3259_v19 = vmul.f32 %v3257_v36, %v3254_v0 }
0x2e8f   :  { %v3265_v53 = vadd.f32 %v3264_v29, %v3259_v19 }
0x2e91   :  { %v3267_v28 = vrot.slane %v3265_v53, 6 }
0x2e93   :  { %3268 = vrot.lane.b32.xlu0 %v3267_v28, %s4594_s18 }
0x2e97   :  { %3289 = vrot.lane.b32.xlu0 %v3288_v20, %s4592_s26 }
0x2f05   :  { %v3269_v4 = vpop.permute.xlu0 %3268 }
0x2f06   :  { %v3271_v3 = vsel %vm2253_vm9, %v3269_v4, %v3160_v1 }
0x2f07   :  { %v3293_v45 = vrot.slane %v3271_v3, 2 }
0x2f09   :  { %3294 = vrot.lane.b32.xlu0 %v3293_v45, %s4592_s26  ;;  %v3290_v23 = vpop.permute.xlu0 %3289 }
0x2f0a   :  { %v3301_v40 = vsel %vm324_vm0, %v3300_v8, %v3290_v23 }
0x2f0d   :  { %3281 = vrot.lane.b32.xlu0 %v3280_v49, %s4592_s26 }
0x2f7b   :  { %v3295_v33 = vpop.permute.xlu0 %3294 }
0x2f7c   :  { %v3302_v59 = vsel %vm2288_vm2, %v3301_v40, %v3295_v33 }
0x2f7d   :  { %3307 = vrot.lane.b32.xlu1 %v3302_v59, %s4594_s18 }
0x2f7f   :  { %v3282_v58 = vpop.permute.xlu0 %3281 }
0x2f80   :  { %v3299_v57 = vsel %vm2288_vm2, %v3298_v12, %v3282_v58 }
0x2f81   :  { %3305 = vrot.lane.b32.xlu0 %v3299_v57, %s4594_s18 }
0x2fef   :  { %v3308_v63 = vpop.permute.xlu1 %3307 }
0x2ff0   :  { %4383 = vmatprep.subr.mxu1 %v3308_v63 }
0x2ff1   :  { %4384 = vmatpush3.msra.mxu1 %v3308_v63 }
0x2ff3   :  { %v3306_v32 = vpop.permute.xlu0 %3305 }
0x2ff4   :  { %4385 = vmatprep.subr.mxu1 %v3306_v32 }
0x2ff5   :  { %4386 = vmatpush3.msra.mxu1 %v3306_v32 }
0x2ff6   :  { %4388 = vmatmul.mubr.msk.f32.vlgmr.msra.gmra.mxu1 %vm1151_vm13, %v3733_v7 }
0x30b6   :  { %v4389_v15 = vpop.f32.mrf.mxu1 }
0x30b8   :  { %v3383_v17 = vpop.f32.mrf.mxu1 }
0x30b9   :  { %4398 = vmatprep.mubr.msk.f32.mxu0 %vm1250_vm15, %v3383_v17 }
0x30ba   :  { %4399 = vmatmul.mubr.msk.f32.vlgmr.msra.gmra.mxu0 %vm1250_vm15, %v4389_v15 }
0x317a   :  { %v4400_v1 = vpop.f32.mrf.mxu0 }
0x317b   :  { %v3481_v34 = vadd.f32 %v4400_v1, %v3788_v22 }
0x317c   :  { %v3475_v14 = vpop.f32.mrf.mxu0 }
0x317d   :  { %3485 = vst.msk [vmem:[#allocation2 + $0x8] sm:$0xff] %vm1040_vm10, %v3481_v34  ;;  %v3476_v42 = vadd.f32 %v3788_v22, %v3475_v14  ;;  %v3489_v9 = vsel %vm1040_vm10, %v3481_v34, -inf }
0x317e   :  { %3490 = vmax.xlane.f32.xlu0 %v3489_v9 }
0x317f   :  { %3484 = vst.msk [vmem:[#allocation2] sm:$0xff] %vm1040_vm10, %v3476_v42  ;;  %v3486_v2 = vsel %vm1040_vm10, %v3476_v42, -inf }
0x3180   :  { %3487 = vmax.xlane.f32.xlu1 %v3486_v2 }
0x3207   :  { %v5819_v60 = vpop.xlane.xlu0 %3490 }
0x3208   :  { %vm3550_vm0 = vcmp.eq.f32.partialorder %v3481_v34, %v5819_v60  ;;  %v3493_v26 = vsub.f32 %v3481_v34, %v5819_v60 }
0x3209   :  { %v3552_v38 = vsel %vm3550_vm0, %v4963_v6, 64  ;;  %v5823_v61 = vpop.xlane.xlu1 %3487 }
0x320a   :  { %vm3549_vm13 = vcmp.eq.f32.partialorder %v3476_v42, %v5823_v61  ;;  %v3568_v25 = vsel %vm1040_vm10, %v3552_v38, 2147483647  ;;  %v3492_v37 = vsub.f32 %v3476_v42, %v5823_v61  ;;  %v3496_v36 = vmul.f32 1.442695, %v3493_v26 }
0x320b   :  { %v3551_v43 = vsel %vm3549_vm13, %v4963_v6, 64  ;;  %v3570_v56 = vshra.s32 %v3568_v25, 16  ;;  %v3569_v20 = vand.u32 65535, %v3568_v25 }
0x320c   :  { %v3553_v31 = vsel %vm1040_vm10, %v3551_v43, 2147483647  ;;  %v3494_v0 = vmul.f32 1.442695, %v3492_v37 }
0x320d   :  { %v3572_v18 = vcvt.s32.f32 %v3570_v56  ;;  %v3555_v11 = vshra.s32 %v3553_v31, 16  ;;  %v3554_v4 = vand.u32 65535, %v3553_v31  ;;  %v3571_v45 = vcvt.s32.f32 %v3569_v20 }
0x320e   :  { %4515 = vpow2.f32 %v3494_v0 }
0x320f   :  { %3573 = vmin.xlane.f32.xlu1 %v3572_v18  ;;  %v3557_v51 = vcvt.s32.f32 %v3555_v11  ;;  %4517 = vpow2.f32 %v3496_v36  ;;  %v3556_v54 = vcvt.s32.f32 %v3554_v4 }
0x3211   :  { %3558 = vmin.xlane.f32.xlu0 %v3557_v51 }
0x321b   :  { %v4516_v29 = vpop.eup %4515 }
0x321c   :  { %v4518_v19 = vpop.eup %4517  ;;  %v3498_v53 = vsel %vm1040_vm10, %v4516_v29, 0.0 }
0x321d   :  { %v3501_v28 = vsel %vm1040_vm10, %v4518_v19, 0.0 }
0x3220   :  { %3516 = vperm.xlu1 %4418, %v3511_v21  }
0x3227   :  { %3513 = vperm.xlu0 %4417, %v3510_v47  }
0x3244   :  { %3499 = vadd.xlane.f32.xlu1 %v3498_v53 }
0x3246   :  { %3502 = vadd.xlane.f32.xlu0 %v3501_v28 }
0x3298   :  { %v3574_v3 = vpop.xlane.xlu1 %3573 }
0x3299   :  { %vm3575_vm15 = vcmp.eq.f32.partialorder %v3572_v18, %v3574_v3  ;;  %v3580_v40 = vcvt.f32.s32 %v3574_v3 }
0x329a   :  { %v3559_v49 = vpop.xlane.xlu0 %3558  ;;  %v3576_v27 = vsel %vm3575_vm15, %v3571_v45, inf }
0x329b   :  { %vm3560_vm3 = vcmp.eq.f32.partialorder %v3557_v51, %v3559_v49  ;;  %3577 = vmin.xlane.f32.xlu1 %v3576_v27  ;;  %v3565_v33 = vcvt.f32.s32 %v3559_v49  ;;  %v3581_v59 = vshll.u32 %v3580_v40, 16 }
0x329c   :  { %v3517_v41 = vpop.permute.xlu1 %3516  ;;  %v3561_v50 = vsel %vm3560_vm3, %v3556_v54, inf }
0x329d   :  { %vm3519_vm5 = vcmp.eq.s32.totalorder %v4963_v6, %v3517_v41  ;;  %3562 = vmin.xlane.f32.xlu0 %v3561_v50  ;;  %v3566_v57 = vshll.u32 %v3565_v33, 16 }
0x329e   :  { %v3521_v52 = vsel %vm3519_vm5, %v3481_v34, 0.0 }
0x329f   :  { %v3525_v39 = vsel %vm1040_vm10, %v3521_v52, 0.0 }
0x32a0   :  { %3526 = vadd.xlane.f32.xlu1 %v3525_v39 }
0x32a2   :  { %v3514_v24 = vpop.permute.xlu0 %3513 }
0x32a3   :  { %vm3518_vm8 = vcmp.eq.s32.totalorder %v4963_v6, %v3514_v24 }
0x32a4   :  { %v3520_v35 = vsel %vm3518_vm8, %v3476_v42, 0.0 }
0x32a5   :  { %v3522_v55 = vsel %vm1040_vm10, %v3520_v35, 0.0  ;;  %vm3530_vm10 = vcmask 7168  }
0x32a6   :  { %3523 = vadd.xlane.f32.xlu0 %v3522_v55 }
0x32cd   :  { %v3500_v23 = vpop.xlane.xlu1 %3499 }
0x32ce   :  { %4519 = vlog2.f32 %v3500_v23 }
0x32cf   :  { %v3503_v8 = vpop.xlane.xlu0 %3502 }
0x32d0   :  { %4521 = vlog2.f32 %v3503_v8 }
0x32db   :  { %v4520_v58 = vpop.eup %4519 }
0x32dc   :  { %v3505_v10 = vmul.f32 0.6931472, %v4520_v58 }
0x32dd   :  { %v4522_v62 = vpop.eup %4521 }
0x32de   :  { %v3507_v32 = vmul.f32 0.6931472, %v4522_v62  ;;  %v3508_v17 = vadd.f32 %v3505_v10, %v5823_v61 }
0x32e0   :  { %v3509_v1 = vadd.f32 %v3507_v32, %v5819_v60 }
0x3324   :  { %v3578_v44 = vpop.xlane.xlu1 %3577 }
0x3325   :  { %v3579_v16 = vcvt.f32.s32 %v3578_v44 }
0x3326   :  { %v3563_v12 = vpop.xlane.xlu0 %3562 }
0x3327   :  { %v3582_v5 = vadd.s32 %v3581_v59, %v3579_v16  ;;  %v3564_v46 = vcvt.f32.s32 %v3563_v12 }
0x3329   :  { %vm3584_vm11 = vcmp.eq.s32.totalorder %v3582_v5, %v3511_v21  ;;  %v3567_v6 = vadd.s32 %v3566_v57, %v3564_v46  ;;  %v3527_v15 = vpop.xlane.xlu1 %3526 }
0x332a   :  { %v3586_v63 = vsel %vm3584_vm11, 1, %v4589_v30  ;;  %v3529_v2 = vsub.f32 %v3509_v1, %v3527_v15 }
0x332b   :  { %vm3583_vm14 = vcmp.eq.s32.totalorder %v3567_v6, %v3510_v47  ;;  %v3588_v13 = vsel %vm3530_vm10, %v3586_v63, 0 }
0x332c   :  { %v3585_v7 = vsel %vm3583_vm14, 1, %v4589_v30  ;;  %v3532_v30 = vsel %vm3530_vm10, %v3529_v2, 0.0 }
0x332d   :  { %v3587_v48 = vsel %vm3530_vm10, %v3585_v7, 0 }
0x332e   :  { %v3589_v22 = vadd.s32 %v3588_v13, %v3587_v48 }
0x332f   :  { %v3524_v34 = vpop.xlane.xlu0 %3523 }
0x3330   :  { %v3528_v14 = vsub.f32 %v3508_v17, %v3524_v34  ;;  %v3591_v42 = vshrl.u32 %v3589_v22, 16  ;;  %v3590_v9 = vand.u32 65535, %v3589_v22 }
0x3332   :  { %v3593_v38 = vcvt.s32.f32 %v3591_v42  ;;  %v3592_v25 = vcvt.s32.f32 %v3590_v9  ;;  %v3531_v43 = vsel %vm3530_vm10, %v3528_v14, 0.0 }
0x3333   :  { %v3533_v56 = vadd.f32 %v3532_v30, %v3531_v43 }
0x3334   :  { %3596 = vadd.xlane.f32.xlu0 %v3593_v38  ;;  %3594 = vadd.xlane.f32.xlu1 %v3592_v25 }
0x3338   :  { %3534 = vadd.xlane.f32.xlu0 %v3533_v56 }
0x3339   :  { %4535 = shalt.err (!%p4532_p4)
}
0x333a   :  { %s4596_s25 = smov 128   ;;  %s4597_s27 = smov 8   ;;  %vm3547_vm4 = vcmask 0  }
0x333b   :  { %3622 = dma.vmem_to_hbm [thread:$0]  %s3617_s24, 256, %s5875_s15, [#allocation3], %s4596_s25, %s4596_s25, %s4597_s27  }
0x333c   :  { %s4598_s15 = smov [#allocation4]   ;;  %s4599_s2 = smov [#allocation6]  }
0x333d   :  { %s3629_s29 = sshll.u32 %s4598_s15, 4  ;;  %s3639_s4 = sshll.u32 %s4599_s2, 4  ;;  %s3630_s29 = int_to_ptr.vmem [resolvable:$true] %s3629_s29  ;;  %s3640_s4 = int_to_ptr.vmem [resolvable:$true] %s3639_s4 }
0x333e   :  { %s4544_s11 = scalar_lea.vmem %s3630_s29, 16  ;;  %s4548_s10 = scalar_lea.vmem %s3630_s29, 32 }
0x333f   :  { %p4545_p5 = scmp.ne.s32.totalorder %s3630_s29, %s4544_s11  ;;  %p4549_p6 = scmp.lt.s32.totalorder %s3630_s29, %s3630_s29 }
0x3340   :  { %p4550_p7 = scmp.lt.s32.totalorder %s4548_s10, %s4544_s11 }
0x3342   :  { %p4551_p8 = por %p4550_p7, %p4549_p6 }
0x3344   :  { %p4552_p9 = pnand %p4551_p8, %p4545_p5 }
0x33bd   :  { %v3597_v60 = vpop.xlane.xlu0 %3596  ;;  %v3595_v61 = vpop.xlane.xlu1 %3594 }
0x33be   :  { %v3599_v31 = vcvt.f32.s32 %v3597_v60  ;;  %v3598_v11 = vcvt.f32.s32 %v3595_v61 }
0x33c0   :  { %v3600_v18 = vshll.u32 %v3599_v31, 16 }
0x33c1   :  { %v3535_v51 = vpop.xlane.xlu0 %3534 }
0x33c2   :  { %v3601_v21 = vadd.s32 %v3600_v18, %v3598_v11  ;;  %v3536_v47 = vrot.slane %v3535_v51, 4 }
0x33c4   :  { %v3602_v37 = vrot.slane %v3601_v21, 4  ;;  %v3537_v26 = vadd.f32 %v3536_v47, %v3535_v51 }
0x33c6   :  { %v3603_v0 = vadd.s32 %v3602_v37, %v3601_v21  ;;  %v3538_v36 = vrot.slane %v3537_v26, 2 }
0x33c8   :  { %v3539_v29 = vadd.f32 %v3538_v36, %v3537_v26  ;;  %v3604_v19 = vrot.slane %v3603_v0, 2 }
0x33ca   :  { %v3540_v53 = vrot.slane %v3539_v29, 1  ;;  %v3605_v28 = vadd.s32 %v3604_v19, %v3603_v0 }
0x33cc   :  { %v3541_v20 = vadd.f32 %v3540_v53, %v3539_v29  ;;  %v3606_v4 = vrot.slane %v3605_v28, 1 }
0x33ce   :  { %4401 = vpush %v3541_v20  ;;  %v3607_v3 = vadd.s32 %v3606_v4, %v3605_v28 }
0x33d0   :  { %4403 = vpush %v3607_v3 }
0x33ff   :  { %s4402_s5 = spop %4401 }
0x3400   :  { %s3545_s3 = smul.f32 0.0625, %s4402_s5 }
0x3401   :  { %s4404_s8 = spop %4403 }
0x3402   :  { %v3546_v45 = vstv %s3545_s3  ;;  %v3609_v49 = vstv %s4404_s8 }
0x3403   :  { %3610 = vst.msk [vmem:[#allocation6] sm:$0x1] %vm3547_vm4, %v3609_v49  ;;  %3548 = vst.msk [vmem:[#allocation4] sm:$0x1] %vm3547_vm4, %v3546_v45 }
0x3404   :  { %4555 = shalt.err (!%p4552_p9)
}
0x3405   :  { %3632 = dma.vmem_to_hbm [thread:$0]  %s3630_s29, 16, %s5876_s16, [#allocation5]  }
0x3406   :  { %s4564_s26 = scalar_lea.vmem %s3640_s4, 16  ;;  %s4568_s7 = scalar_lea.vmem %s3640_s4, 32 }
0x3407   :  { %p4565_p10 = scmp.ne.s32.totalorder %s3640_s4, %s4564_s26  ;;  %p4569_p11 = scmp.lt.s32.totalorder %s3640_s4, %s3640_s4 }
0x3408   :  { %p4570_p12 = scmp.lt.s32.totalorder %s4568_s7, %s4564_s26 }
0x340a   :  { %p4571_p13 = por %p4570_p12, %p4569_p11 }
0x340c   :  { %p4572_p0 = pnand %p4571_p13, %p4565_p10 }
0x340e   :  { %4575 = shalt.err (!%p4572_p0)
}
0x340f   :  { %3642 = dma.vmem_to_hbm [thread:$0]  %s3640_s4, 16, %s5877_s17, [#allocation5]  }
0x3410   :  { %4584 = dma.done.wait [#allocation3], 256  }
0x3411   :  { %4585 = vsyncadd [#allocation3], 4294967040 }
0x3412   :  { %4586 = dma.done.wait [#allocation5], 32  }
0x3413   :  { %4587 = vsyncadd [#allocation5], 4294967264 }
0x3414   :  { %3652 = vsyncpa [#allocation3], 1 }
0x3415   :  { %3653 = vsyncpa [#allocation5], 1 }

</bundles_post_ra>
